<compile_context>
chip_gen: v7x
topology: tpu7x:2x2x1
jax: 0.10.0
libtpu: 0.0.40
codegen_flags: <defaults>
</compile_context>

<pallas_src>
import functools

import jax
import jax.numpy as jnp
from jax.experimental import pallas as pl
from jax.experimental.pallas import tpu as pltpu

# ------------------------------ configuration ------------------------------
BATCH = 128               # per perf review: batch the head (was 2)
BLOCK_B = 32              # batch rows per grid step
IN_CHANNELS = 64          # input_channels (kept small for the demo)
HIDDEN_SIZE = 1           # RewardPredictor hidden_size (module default)
HEIGHT = WIDTH = 6
PIXELS = HEIGHT * WIDTH   # 36 (module default)
LIMIT = 5                 # -> 2*limit+1 = 11 reward bins (default 300, kept small)
NUM_BINS = 2 * LIMIT + 1
FC_HIDDEN = 256
BN_EPS = 1e-5

BIN_PAD = 128             # reward-bin axis padded 11 -> 128 (unmasked stores)

# TODO(synk): hidden_size > 1 is not implemented (the module default is 1).


# ------------------------------ Pallas kernel ------------------------------
def _reward_head_kernel(x_ref, cw_ref, sc_ref, fc1w_ref, fc2w_ref, aux_ref,
                        o_ref, h_ref, sum_ref, sq_ref, *, batch, block_b, pixels):
    """Fused 1x1 conv + ReLU + train-mode BN + Linear + ReLU + Linear."""
    b = pl.program_id(0)

    @pl.when(b == 0)
    def _():
        sum_ref[...] = jnp.zeros_like(sum_ref)
        sq_ref[...] = jnp.zeros_like(sq_ref)

    # --- 1x1 conv (channel contraction on the VPU) + ReLU, lane-dense (bb, P).
    x = x_ref[...]                                    # (block_b, C, P) f32
    cw = cw_ref[...]                                  # (C, P) f32, pre-replicated
    conv = jnp.sum(x * cw[None, :, :], axis=1) + sc_ref[0]
    conv = jnp.maximum(conv, 0.0)                     # (block_b, P)

    # --- fc1 on the MXU straight away (independent of the BN statistics); the BN
    #     affine is applied to this product algebraically at the last grid step.
    p = jnp.dot(conv.astype(jnp.bfloat16), fc1w_ref[...],
                preferred_element_type=jnp.float32)   # (block_b, 256)
    row = pl.multiple_of(b * block_b, block_b)
    h_ref[pl.ds(row, block_b), :] = p

    # --- accumulate BatchNorm batch statistics (sum, sum of squares).
    sum_ref[...] += jnp.sum(jnp.sum(conv, axis=1, keepdims=True),
                            axis=0, keepdims=True)
    sq_ref[...] += jnp.sum(jnp.sum(conv * conv, axis=1, keepdims=True),
                           axis=0, keepdims=True)

    # --- last block: finish BN affine + ReLU + fc2 for the whole batch at once.
    @pl.when(b == pl.num_programs(0) - 1)
    def _():
        gamma = sc_ref[1]
        beta = sc_ref[2]
        inv_count = 1.0 / float(batch * pixels)
        mean = sum_ref[...] * inv_count                        # (1, 1)
        var = sq_ref[...] * inv_count - mean * mean            # biased, as PyTorch
        scale = jax.lax.rsqrt(var + BN_EPS) * gamma            # (1, 1)
        shift = beta - scale * mean                            # (1, 1)
        fc1_b = aux_ref[0:1, :]                                # (1, 256)
        w1_colsum = aux_ref[1:2, :]                            # (1, 256)
        h = scale * h_ref[...] + (shift * w1_colsum + fc1_b)   # (batch, 256)
        h = jnp.maximum(h, 0.0)
        out = jnp.dot(h.astype(jnp.bfloat16), fc2w_ref[...],
                      preferred_element_type=jnp.float32)      # (batch, BIN_PAD)
        o_ref[...] = out + aux_ref[2:3, :BIN_PAD]


# ------------------------------ wrapper ------------------------------
def reward_predictor_forward(params, x_nchw, *, block_b=BLOCK_B):
    n, c, hh, ww = x_nchw.shape
    pixels = hh * ww
    assert pixels == PIXELS and HIDDEN_SIZE == 1
    assert n % block_b == 0

    x = x_nchw.reshape(n, c, pixels).astype(jnp.float32)       # (N, C, 36), unpadded

    # conv weight from torch layout (hidden, C, 1, 1) -> pre-replicated (C, P).
    cw_rep = jnp.tile(params["conv_w"].reshape(c, 1), (1, pixels)).astype(jnp.float32)

    # per-channel scalars (conv bias, BN gamma, BN beta) -> one SMEM array.
    scalars = jnp.stack([params["conv_b"].reshape(()),
                         params["bn_g"].reshape(()),
                         params["bn_b"].reshape(())]).astype(jnp.float32)

    # fc weights stored (in, out); bf16 on the MXU, f32 accumulation.
    fc1_w = params["fc1_w"].astype(jnp.bfloat16)                            # (36, 256)
    fc2_w = jnp.pad(params["fc2_w"],
                    ((0, 0), (0, BIN_PAD - NUM_BINS))).astype(jnp.bfloat16)  # (256, 128)

    # small f32 row constants packed into ONE VMEM operand:
    #   row 0: fc1 bias, row 1: column sums of (bf16-rounded) fc1_w, row 2: fc2 bias.
    w1_colsum = jnp.sum(fc1_w.astype(jnp.float32), axis=0)
    aux = jnp.zeros((3, FC_HIDDEN), jnp.float32)
    aux = aux.at[0].set(params["fc1_b"].astype(jnp.float32))
    aux = aux.at[1].set(w1_colsum)
    aux = aux.at[2, :BIN_PAD].set(jnp.pad(params["fc2_b"].astype(jnp.float32),
                                          (0, BIN_PAD - NUM_BINS)))

    nb = n // block_b
    out = pl.pallas_call(
        functools.partial(_reward_head_kernel,
                          batch=n, block_b=block_b, pixels=pixels),
        out_shape=jax.ShapeDtypeStruct((n, BIN_PAD), jnp.float32),
        grid=(nb,),
        in_specs=[
            pl.BlockSpec((block_b, c, pixels), lambda b: (b, 0, 0)),   # x (pipelined)
            pl.BlockSpec((c, pixels), lambda b: (0, 0)),               # conv weight
            pl.BlockSpec(memory_space=pltpu.MemorySpace.SMEM),         # scalars
            pl.BlockSpec((pixels, FC_HIDDEN), lambda b: (0, 0)),       # fc1_w (bf16)
            pl.BlockSpec((FC_HIDDEN, BIN_PAD), lambda b: (0, 0)),      # fc2_w (bf16)
            pl.BlockSpec((3, FC_HIDDEN), lambda b: (0, 0)),            # aux rows
        ],
        out_specs=pl.BlockSpec((n, BIN_PAD), lambda b: (0, 0)),        # VMEM-resident
        scratch_shapes=[
            pltpu.VMEM((n, FC_HIDDEN), jnp.float32),   # fc1 products, whole batch
            pltpu.VMEM((1, 1), jnp.float32),           # sum(conv)
            pltpu.VMEM((1, 1), jnp.float32),           # sum(conv^2)
        ],
        compiler_params=pltpu.CompilerParams(
            dimension_semantics=("arbitrary",)),       # BN couples all batch blocks
    )(x, cw_rep, scalars, fc1_w, fc2_w, aux)
    return out[:, :NUM_BINS]


# ------------------------------ reference (pure JAX) ------------------------------
def reward_predictor_reference(params, x_nchw):
    n, c, hh, ww = x_nchw.shape
    x = x_nchw.astype(jnp.float32)
    wc = params["conv_w"].reshape(HIDDEN_SIZE, c)
    conv = jnp.einsum("nchw,kc->nkhw", x, wc) + params["conv_b"].reshape(1, -1, 1, 1)
    conv = jnp.maximum(conv, 0.0)
    mean = jnp.mean(conv, axis=(0, 2, 3), keepdims=True)
    var = jnp.mean((conv - mean) ** 2, axis=(0, 2, 3), keepdims=True)
    bn = (conv - mean) * jax.lax.rsqrt(var + BN_EPS)
    bn = bn * params["bn_g"].reshape(1, -1, 1, 1) + params["bn_b"].reshape(1, -1, 1, 1)
    flat = bn.reshape(n, -1)                       # Flatten(-3, -1)
    h = jnp.maximum(flat @ params["fc1_w"] + params["fc1_b"], 0.0)
    return h @ params["fc2_w"] + params["fc2_b"]


# ------------------------------ parameters ------------------------------
def init_params(key):
    keys = jax.random.split(key, 6)

    def w(k, shape, scale=0.05):
        return scale * jax.random.normal(k, shape, jnp.float32)

    return {
        "conv_w": w(keys[0], (HIDDEN_SIZE, IN_CHANNELS, 1, 1)),   # torch layout
        "conv_b": w(keys[1], (HIDDEN_SIZE,)),
        "bn_g": jnp.ones((HIDDEN_SIZE,), jnp.float32),
        "bn_b": jnp.zeros((HIDDEN_SIZE,), jnp.float32),
        "fc1_w": w(keys[2], (PIXELS * HIDDEN_SIZE, FC_HIDDEN)),   # stored (in, out)
        "fc1_b": w(keys[3], (FC_HIDDEN,)),
        "fc2_w": w(keys[4], (FC_HIDDEN, NUM_BINS)),
        "fc2_b": w(keys[5], (NUM_BINS,)),
    }


# ------------------------------ main ------------------------------
if __name__ == "__main__":
    key = jax.random.PRNGKey(0)
    pkey, xkey = jax.random.split(key)
    params = init_params(pkey)
    x = jax.random.normal(xkey, (BATCH, IN_CHANNELS, HEIGHT, WIDTH), jnp.float32)

    fwd = jax.jit(reward_predictor_forward)
    out = fwd(params, x)
    jax.block_until_ready(out)

    assert out.shape == (BATCH, NUM_BINS)
    assert bool(jnp.all(jnp.isfinite(out)))

    ref = reward_predictor_reference(params, x)
    max_err = float(jnp.max(jnp.abs(out - ref)))
    # bf16 MXU weights/activations introduce ~1e-3-level abs error vs the f32 reference.
    assert max_err < 2e-2, f"max abs err {max_err}"
    print("KERNEL_OK")
</pallas_src>

<mosaic_0001>
module attributes {stable_mosaic.version = 11 : i64} {
  func.func @_reward_head_kernel(%arg0: i32, %arg1: memref<32x64x36xf32, #tpu.memory_space<vmem>>, %arg2: memref<64x36xf32, #tpu.memory_space<vmem>>, %arg3: memref<3xf32, #tpu.memory_space<smem>>, %arg4: memref<36x256xbf16, #tpu.memory_space<vmem>>, %arg5: memref<256x128xbf16, #tpu.memory_space<vmem>>, %arg6: memref<3x256xf32, #tpu.memory_space<vmem>>, %arg7: memref<128x128xf32, #tpu.memory_space<vmem>>, %arg8: memref<128x256xf32, #tpu.memory_space<vmem>>, %arg9: memref<1x1xf32, #tpu.memory_space<vmem>>, %arg10: memref<1x1xf32, #tpu.memory_space<vmem>>) attributes {dimension_semantics = [#tpu.dimension_semantics<arbitrary>], iteration_bounds = array<i64: 4>, scalar_prefetch = 0 : i64, scratch_operands = 3 : i64, tpu.core_type = #tpu.core_type<tc>, window_params = [{transform_indices = @transform_0, window_bounds = array<i64: 32, 64, 36>}, {pipeline_mode = #tpu.pipeline_mode<synchronous>, transform_indices = @transform_1, window_bounds = array<i64: 64, 36>}, {transform_indices = @transform_2, window_bounds = array<i64: 3>}, {pipeline_mode = #tpu.pipeline_mode<synchronous>, transform_indices = @transform_3, window_bounds = array<i64: 36, 256>}, {pipeline_mode = #tpu.pipeline_mode<synchronous>, transform_indices = @transform_4, window_bounds = array<i64: 256, 128>}, {pipeline_mode = #tpu.pipeline_mode<synchronous>, transform_indices = @transform_5, window_bounds = array<i64: 3, 256>}, {pipeline_mode = #tpu.pipeline_mode<synchronous>, transform_indices = @transform_6, window_bounds = array<i64: 128, 128>}]} {
    %c0_i32 = arith.constant 0 : i32
    %0 = arith.cmpi eq, %arg0, %c0_i32 : i32
    %1 = arith.extui %0 : i1 to i32
    %c0_i32_0 = arith.constant 0 : i32
    %2 = arith.cmpi ne, %1, %c0_i32_0 : i32
    scf.if %2 {
      %cst_24 = arith.constant 0.000000e+00 : f32
      %39 = vector.broadcast %cst_24 : f32 to vector<1x1xf32>
      %c0_25 = arith.constant 0 : index
      %c0_26 = arith.constant 0 : index
      %40 = vector.load %arg9[%c0_25, %c0_26] : memref<1x1xf32, #tpu.memory_space<vmem>>, vector<1x1xf32>
      tpu.vector_store %arg9[%c0_25, %c0_26], %39 {strides = array<i32>} : memref<1x1xf32, #tpu.memory_space<vmem>>, vector<1x1xf32>,
      %cst_27 = arith.constant 0.000000e+00 : f32
      %41 = vector.broadcast %cst_27 : f32 to vector<1x1xf32>
      %c0_28 = arith.constant 0 : index
      %c0_29 = arith.constant 0 : index
      %42 = vector.load %arg10[%c0_28, %c0_29] : memref<1x1xf32, #tpu.memory_space<vmem>>, vector<1x1xf32>
      tpu.vector_store %arg10[%c0_28, %c0_29], %41 {strides = array<i32>} : memref<1x1xf32, #tpu.memory_space<vmem>>, vector<1x1xf32>,
    } else {
    }
    %c0 = arith.constant 0 : index
    %c0_1 = arith.constant 0 : index
    %c0_2 = arith.constant 0 : index
    %3 = vector.load %arg1[%c0, %c0_1, %c0_2] : memref<32x64x36xf32, #tpu.memory_space<vmem>>, vector<32x64x36xf32>
    %c0_3 = arith.constant 0 : index
    %c0_4 = arith.constant 0 : index
    %4 = vector.load %arg2[%c0_3, %c0_4] : memref<64x36xf32, #tpu.memory_space<vmem>>, vector<64x36xf32>
    %5 = vector.shape_cast %4 : vector<64x36xf32> to vector<1x64x36xf32>
    %6 = vector.broadcast %5 : vector<1x64x36xf32> to vector<32x64x36xf32>
    %7 = arith.mulf %3, %6 : vector<32x64x36xf32>
    %cst = arith.constant dense<0.000000e+00> : vector<32x36xf32>
    %8 = vector.multi_reduction <add>, %7, %cst [1] : vector<32x64x36xf32> to vector<32x36xf32>
    %c0_5 = arith.constant 0 : index
    %9 = memref.load %arg3[%c0_5] : memref<3xf32, #tpu.memory_space<smem>>
    %10 = vector.broadcast %9 : f32 to vector<32x36xf32>
    %11 = arith.addf %8, %10 : vector<32x36xf32>
    %cst_6 = arith.constant 0.000000e+00 : f32
    %12 = vector.broadcast %cst_6 : f32 to vector<32x36xf32>
    %13 = arith.maximumf %11, %12 : vector<32x36xf32>
    %14 = arith.truncf %13 : vector<32x36xf32> to vector<32x36xbf16>
    %c0_7 = arith.constant 0 : index
    %c0_8 = arith.constant 0 : index
    %15 = vector.load %arg4[%c0_7, %c0_8] : memref<36x256xbf16, #tpu.memory_space<vmem>>, vector<36x256xbf16>
    %cst_9 = arith.constant dense<0.000000e+00> : vector<32x256xf32>
    %16 = tpu.matmul %14, %15, %cst_9 {dimension_numbers = #tpu.dot_dimension_numbers<[1], [0], [0], [1], [0, 0, 1, 1], [], []>} : vector<32x36xbf16>, vector<36x256xbf16>, vector<32x256xf32> -> vector<32x256xf32>
    %c32_i32 = arith.constant 32 : i32
    %17 = arith.muli %arg0, %c32_i32 : i32
    %18 = tpu.assume_multiple %17, 32 : i32
    %19 = arith.index_cast %18 : i32 to index
    %c0_10 = arith.constant 0 : index
    %20 = vector.load %arg8[%19, %c0_10] : memref<128x256xf32, #tpu.memory_space<vmem>>, vector<32x256xf32>
    tpu.vector_store %arg8[%19, %c0_10], %16 {strides = array<i32>} : memref<128x256xf32, #tpu.memory_space<vmem>>, vector<32x256xf32>,
    %c0_11 = arith.constant 0 : index
    %c0_12 = arith.constant 0 : index
    %21 = vector.load %arg9[%c0_11, %c0_12] : memref<1x1xf32, #tpu.memory_space<vmem>>, vector<1x1xf32>
    %cst_13 = arith.constant dense<0.000000e+00> : vector<32xf32>
    %22 = vector.multi_reduction <add>, %13, %cst_13 [1] : vector<32x36xf32> to vector<32xf32>
    %23 = vector.shape_cast %22 : vector<32xf32> to vector<32x1xf32>
    %cst_14 = arith.constant dense<0.000000e+00> : vector<1xf32>
    %24 = vector.multi_reduction <add>, %23, %cst_14 [0] : vector<32x1xf32> to vector<1xf32>
    %25 = vector.shape_cast %24 : vector<1xf32> to vector<1x1xf32>
    %26 = arith.addf %21, %25 : vector<1x1xf32>
    %c0_15 = arith.constant 0 : index
    %c0_16 = arith.constant 0 : index
    %27 = vector.load %arg9[%c0_15, %c0_16] : memref<1x1xf32, #tpu.memory_space<vmem>>, vector<1x1xf32>
    tpu.vector_store %arg9[%c0_15, %c0_16], %26 {strides = array<i32>} : memref<1x1xf32, #tpu.memory_space<vmem>>, vector<1x1xf32>,
    %c0_17 = arith.constant 0 : index
    %c0_18 = arith.constant 0 : index
    %28 = vector.load %arg10[%c0_17, %c0_18] : memref<1x1xf32, #tpu.memory_space<vmem>>, vector<1x1xf32>
    %29 = arith.mulf %13, %13 : vector<32x36xf32>
    %cst_19 = arith.constant dense<0.000000e+00> : vector<32xf32>
    %30 = vector.multi_reduction <add>, %29, %cst_19 [1] : vector<32x36xf32> to vector<32xf32>
    %31 = vector.shape_cast %30 : vector<32xf32> to vector<32x1xf32>
    %cst_20 = arith.constant dense<0.000000e+00> : vector<1xf32>
    %32 = vector.multi_reduction <add>, %31, %cst_20 [0] : vector<32x1xf32> to vector<1xf32>
    %33 = vector.shape_cast %32 : vector<1xf32> to vector<1x1xf32>
    %34 = arith.addf %28, %33 : vector<1x1xf32>
    %c0_21 = arith.constant 0 : index
    %c0_22 = arith.constant 0 : index
    %35 = vector.load %arg10[%c0_21, %c0_22] : memref<1x1xf32, #tpu.memory_space<vmem>>, vector<1x1xf32>
    tpu.vector_store %arg10[%c0_21, %c0_22], %34 {strides = array<i32>} : memref<1x1xf32, #tpu.memory_space<vmem>>, vector<1x1xf32>,
    %c3_i32 = arith.constant 3 : i32
    %36 = arith.cmpi eq, %arg0, %c3_i32 : i32
    %37 = arith.extui %36 : i1 to i32
    %c0_i32_23 = arith.constant 0 : i32
    %38 = arith.cmpi ne, %37, %c0_i32_23 : i32
    scf.if %38 {
      %c1 = arith.constant 1 : index
      %39 = memref.load %arg3[%c1] : memref<3xf32, #tpu.memory_space<smem>>
      %c2 = arith.constant 2 : index
      %40 = memref.load %arg3[%c2] : memref<3xf32, #tpu.memory_space<smem>>
      %c0_24 = arith.constant 0 : index
      %c0_25 = arith.constant 0 : index
      %41 = vector.load %arg9[%c0_24, %c0_25] : memref<1x1xf32, #tpu.memory_space<vmem>>, vector<1x1xf32>
      %cst_26 = arith.constant 2.17013891E-4 : f32
      %42 = vector.broadcast %cst_26 : f32 to vector<1x1xf32>
      %43 = arith.mulf %41, %42 : vector<1x1xf32>
      %c0_27 = arith.constant 0 : index
      %c0_28 = arith.constant 0 : index
      %44 = vector.load %arg10[%c0_27, %c0_28] : memref<1x1xf32, #tpu.memory_space<vmem>>, vector<1x1xf32>
      %cst_29 = arith.constant 2.17013891E-4 : f32
      %45 = vector.broadcast %cst_29 : f32 to vector<1x1xf32>
      %46 = arith.mulf %44, %45 : vector<1x1xf32>
      %47 = arith.mulf %43, %43 : vector<1x1xf32>
      %48 = arith.subf %46, %47 : vector<1x1xf32>
      %cst_30 = arith.constant 9.99999974E-6 : f32
      %49 = vector.broadcast %cst_30 : f32 to vector<1x1xf32>
      %50 = arith.addf %48, %49 : vector<1x1xf32>
      %51 = math.rsqrt %50 : vector<1x1xf32>
      %52 = vector.broadcast %39 : f32 to vector<1x1xf32>
      %53 = arith.mulf %51, %52 : vector<1x1xf32>
      %54 = arith.mulf %53, %43 : vector<1x1xf32>
      %55 = vector.broadcast %40 : f32 to vector<1x1xf32>
      %56 = arith.subf %55, %54 : vector<1x1xf32>
      %c0_31 = arith.constant 0 : index
      %c0_32 = arith.constant 0 : index
      %57 = vector.load %arg6[%c0_31, %c0_32] : memref<3x256xf32, #tpu.memory_space<vmem>>, vector<1x256xf32>
      %c1_33 = arith.constant 1 : index
      %c0_34 = arith.constant 0 : index
      %58 = vector.load %arg6[%c1_33, %c0_34] : memref<3x256xf32, #tpu.memory_space<vmem>>, vector<1x256xf32>
      %c0_35 = arith.constant 0 : index
      %c0_36 = arith.constant 0 : index
      %59 = vector.load %arg8[%c0_35, %c0_36] : memref<128x256xf32, #tpu.memory_space<vmem>>, vector<128x256xf32>
      %60 = vector.broadcast %53 : vector<1x1xf32> to vector<128x256xf32>
      %61 = arith.mulf %60, %59 : vector<128x256xf32>
      %62 = vector.broadcast %56 : vector<1x1xf32> to vector<1x256xf32>
      %63 = arith.mulf %62, %58 : vector<1x256xf32>
      %64 = arith.addf %63, %57 : vector<1x256xf32>
      %65 = vector.broadcast %64 : vector<1x256xf32> to vector<128x256xf32>
      %66 = arith.addf %61, %65 : vector<128x256xf32>
      %cst_37 = arith.constant 0.000000e+00 : f32
      %67 = vector.broadcast %cst_37 : f32 to vector<128x256xf32>
      %68 = arith.maximumf %66, %67 : vector<128x256xf32>
      %69 = arith.truncf %68 : vector<128x256xf32> to vector<128x256xbf16>
      %c0_38 = arith.constant 0 : index
      %c0_39 = arith.constant 0 : index
      %70 = vector.load %arg5[%c0_38, %c0_39] : memref<256x128xbf16, #tpu.memory_space<vmem>>, vector<256x128xbf16>
      %cst_40 = arith.constant dense<0.000000e+00> : vector<128x128xf32>
      %71 = tpu.matmul %69, %70, %cst_40 {dimension_numbers = #tpu.dot_dimension_numbers<[1], [0], [0], [1], [0, 0, 1, 1], [], []>} : vector<128x256xbf16>, vector<256x128xbf16>, vector<128x128xf32> -> vector<128x128xf32>
      %c2_41 = arith.constant 2 : index
      %c0_42 = arith.constant 0 : index
      %72 = vector.load %arg6[%c2_41, %c0_42] : memref<3x256xf32, #tpu.memory_space<vmem>>, vector<1x128xf32>
      %73 = vector.broadcast %72 : vector<1x128xf32> to vector<128x128xf32>
      %74 = arith.addf %71, %73 : vector<128x128xf32>
      %c0_43 = arith.constant 0 : index
      %c0_44 = arith.constant 0 : index
      %75 = vector.load %arg7[%c0_43, %c0_44] : memref<128x128xf32, #tpu.memory_space<vmem>>, vector<128x128xf32>
      tpu.vector_store %arg7[%c0_43, %c0_44], %74 {strides = array<i32>} : memref<128x128xf32, #tpu.memory_space<vmem>>, vector<128x128xf32>,
    } else {
    }
    return
  }
  func.func @transform_0(%arg0: i32) -> (i32, i32, i32) {
    %c0_i32 = arith.constant 0 : i32
    %c0_i32_0 = arith.constant 0 : i32
    %c0_i32_1 = arith.constant 0 : i32
    return %arg0, %c0_i32, %c0_i32_0 : i32, i32, i32
  }
  func.func @transform_1(%arg0: i32) -> (i32, i32) {
    %c0_i32 = arith.constant 0 : i32
    %c0_i32_0 = arith.constant 0 : i32
    %c0_i32_1 = arith.constant 0 : i32
    return %c0_i32, %c0_i32_0 : i32, i32
  }
  func.func @transform_2(%arg0: i32) -> i32 {
    %c0_i32 = arith.constant 0 : i32
    %c0_i32_0 = arith.constant 0 : i32
    return %c0_i32 : i32
  }
  func.func @transform_3(%arg0: i32) -> (i32, i32) {
    %c0_i32 = arith.constant 0 : i32
    %c0_i32_0 = arith.constant 0 : i32
    %c0_i32_1 = arith.constant 0 : i32
    return %c0_i32, %c0_i32_0 : i32, i32
  }
  func.func @transform_4(%arg0: i32) -> (i32, i32) {
    %c0_i32 = arith.constant 0 : i32
    %c0_i32_0 = arith.constant 0 : i32
    %c0_i32_1 = arith.constant 0 : i32
    return %c0_i32, %c0_i32_0 : i32, i32
  }
  func.func @transform_5(%arg0: i32) -> (i32, i32) {
    %c0_i32 = arith.constant 0 : i32
    %c0_i32_0 = arith.constant 0 : i32
    %c0_i32_1 = arith.constant 0 : i32
    return %c0_i32, %c0_i32_0 : i32, i32
  }
  func.func @transform_6(%arg0: i32) -> (i32, i32) {
    %c0_i32 = arith.constant 0 : i32
    %c0_i32_0 = arith.constant 0 : i32
    %c0_i32_1 = arith.constant 0 : i32
    return %c0_i32, %c0_i32_0 : i32, i32
  }
}

</mosaic_0001>

<bundles_post_ra>
// kernel: reward_predictor_forward.1
= control target key start
LH: loop header
LB: loop body
LE: loop exit
PB: predicated region body
PF: predicated region fallthrough
CT: control target
= control target key end

     0   :  { %11 = vsyncpa [#allocation6], 0  ;;  %s2716_s21 = smov 0   ;;  %s5005_s0 = inlined_call_operand.vmem [shape: f32[128,64,36], index: 0, kind: input, shape index: {}]   ;;  %s5006_s1 = inlined_call_operand.vmem [shape: f32[64,36], index: 1, kind: input, shape index: {}]   ;;  %s5007_s2 = inlined_call_operand.vmem [shape: f32[3], index: 2, kind: input, shape index: {}]   ;;  %s5008_s3 = inlined_call_operand.vmem [shape: bf16[36,256], index: 3, kind: input, shape index: {}]   ;;  %s5009_s4 = inlined_call_operand.vmem [shape: bf16[256,128], index: 4, kind: input, shape index: {}]   ;;  %s5010_s5 = inlined_call_operand.vmem [shape: f32[3,256], index: 5, kind: input, shape index: {}]   ;;  %s5011_s6 = inlined_call_operand.vmem [shape: f32[128,128], index: 6, kind: output, shape index: {}]  }
   0x1 LB: > { %s2722_s22 = sadd.s32 4294967295, %s2675_s21   ;;  %p2461_p0 = scmp.ge.s32.totalorder %s2675_s21, 1  ;;  %s2675_s21 = sphi %s2716_s21, %s17_s21  }
   0x2   : > { %p174_p1 = scmp.lt.s32.totalorder %s2675_s21, 5  ;;  %s190_s25 = sshll.u32 %s5007_s2, 4  ;;  %s191_s25 = int_to_ptr.vmem [resolvable:$true] %s190_s25 }
   0x3   : > { %p2601_p4 = scmp.eq.s32.totalorder %s2722_s22, 0  ;;  %s2650_s27 = scalar_lea.vmem %s191_s25, 16 }
   0x4   : > { %p2730_p3 = pnand %p2461_p0, %p174_p1  ;;  %p2651_p7 = scmp.ne.s32.totalorder %s191_s25, %s2650_s27 }
   0x5   : > { %p2658_p11 = scmp.lt.s32.totalorder %s191_s25, %s191_s25  ;;  %p2659_p12 = scmp.lt.s32.totalorder %s2650_s27, %s2650_s27 }
   0x6   : > { %p2597_p5 = pneg %p2730_p3 }
   0x7   : > { %p2660_p13 = por %p2659_p12, %p2658_p11 }
   0x8   : > { %p2598_p6 = pnand %p2601_p4, %p2597_p5 }
   0xa   : > { %p2652_p8 = pneg %p2598_p6 }
   0xc   : > { %p2653_p9 = pnand %p2652_p8, %p2651_p7 }
   0xe   : > { %p2654_p10 = pneg %p2653_p9 }
  0x10   : > { %p2661_p2 = pnand %p2660_p13, %p2654_p10 }
  0x12   : > { %2664 = shalt.err (!%p2661_p2)
}
  0x13   : > { %s2677_s28 = smov [#allocation5]   ;;  %222 = sbr.rel (%p2730_p3) target bundleno = 958 (0x3be), region = 44 }
  0x14   : > { %2600 = dma.vmem_to_smem (!%p2598_p6), %s191_s25, 16, %s2677_s28, [#allocation6]  }
  0x1a   : > { %2670 = dma.done.wait (%p2601_p4), [#allocation6], 16  }
  0x1b   : > { %2672 = vsyncadd (%p2601_p4), [#allocation6], 4294967280 }
  0x1c   : > { %228 = sfence }
  0x1d   : > { %s2746_s29 = sshll.u32 %s2722_s22, 5  ;;  %p5047_p1 = scmp.ne.s32.totalorder %s2722_s22, 0 }
  0x1e   : > { %p250_p0 = scmp.lt.s32.totalorder %s2746_s29, 127  ;;  %vm261_vm0 = vcmask (!%p5047_p1), 0   ;;  %v2678_v0 = vmov (!%p5047_p1), 0.0  }
  0x1f   : > { %260 = sbr.rel (%p5047_p1) target bundleno = 38 (0x26), region = 52  ;;  %262 = vst.msk [vmem:[#allocation3] sm:$0x1] (!%p5047_p1), %vm261_vm0, %v2678_v0  ;;  %263 = vst.msk [vmem:[#allocation4] sm:$0x1] (!%p5047_p1), %vm261_vm0, %v2678_v0 }
  0x20   : > { %s251_s30 = scalar_select %p250_p0, %s2746_s29, 127 }
  0x22   : > { %s2505_s7 = sshll.u32 %s251_s30, 6 }
  0x23   : > { %s2753_s10 = scalar_lea.vmem %s5005_s0, %s2505_s7 }
  0x26 PF: > { %v2615_v1 = vld [vmem:[%s5008_s3 + $0x4] ss:$8 sps:$4 sm:$0xff]   ;;  %v2617_v2 = vld [vmem:[%s5008_s3] ss:$8 sps:$4 sm:$0xff]   ;;  %v2679_v3 = vmov 0   ;;  %vm1692_vm1 = vcmask 1041408  }
  0x27   : > { %1731 = vmatprep.mubr.bf16.mxu0 %v2679_v3  ;;  %1741 = vmatprep.mubr.bf16.mxu1 %v2679_v3  ;;  %v2618_v4 = vld [vmem:[%s5008_s3 + $0x14] ss:$8 sps:$4 sm:$0xff]   ;;  %v1559_v5 = vld [vmem:[%s5008_s3 + $0x20] sm:$0x33]  ;;  %v2620_v6 = vld [vmem:[%s5008_s3 + $0x10] ss:$8 sps:$4 sm:$0xff]  }
  0x28   : > { %1699 = vmatprep.subr.bf16.mxu0 %v2615_v1  ;;  %2571 = vmatprep.subr.bf16.mxu1 %v2615_v1  ;;  %v2475_v7 = vcombine.high %v1559_v5, %v1559_v5  ;;  %v2474_v8 = vcombine.low %v1559_v5, %v1559_v5  ;;  %s1457_s23 = sld [smem:[#allocation5]]  ;;  %v264_v10 = vld [vmem:[%s2753_s10] sm:$0xff]  ;;  %v265_v11 = vld [vmem:[%s2753_s10 + $0x8] sm:$0xff]  ;;  %v266_v12 = vld [vmem:[%s2753_s10 + $0x10] sm:$0xff]  ;;  %vm784_vm2 = vcmask 293888   ;;  %vm1624_vm3 = vcmask 1041409  }
  0x29   : > { %1700 = vmatpush1.bf16.msra.mxu0 %v2617_v2  ;;  %2574 = vmatpush1.bf16.msra.mxu1 %v2617_v2  ;;  %v267_v13 = vld [vmem:[%s2753_s10 + $0x18] sm:$0xff]  ;;  %v272_v14 = vld [vmem:[%s2753_s10 + $0x40] sm:$0xff]  ;;  %v273_v15 = vld [vmem:[%s2753_s10 + $0x48] sm:$0xff]  ;;  %vm1626_vm4 = vcmask 1042434   ;;  %vm1628_vm5 = vcmask 1043459   ;;  %vm1630_vm6 = vcmask 1044484  }
  0x2a   : > { %1701 = vmatprep.subr.bf16.mxu0 %v2618_v4  ;;  %2572 = vmatprep.subr.bf16.mxu1 %v2618_v4  ;;  %v1694_v9 = vsel %vm1692_vm1, %v2474_v8, 0  ;;  %v268_v16 = vld [vmem:[%s2753_s10 + $0x20] sm:$0xff]  ;;  %v269_v17 = vld [vmem:[%s2753_s10 + $0x28] sm:$0xff]  ;;  %v270_v18 = vld [vmem:[%s2753_s10 + $0x30] sm:$0xff]  ;;  %vm1632_vm7 = vcmask 1045509   ;;  %vm1634_vm8 = vcmask 1046534  }
  0x2b   : > { %v274_v19 = vld [vmem:[%s2753_s10 + $0x50] sm:$0xff]  ;;  %v280_v20 = vld [vmem:[%s2753_s10 + $0x80] sm:$0xff]  ;;  %v271_v22 = vld [vmem:[%s2753_s10 + $0x38] sm:$0xff]  ;;  %vm1636_vm9 = vcmask 1047559   ;;  %vm1853_vm10 = vcmask 0   ;;  %p2482_p2 = scmp.ne.s32.totalorder %s2722_s22, 3 }
  0x2c   : > { %v288_v21 = vld [vmem:[%s2753_s10 + $0xc0] sm:$0xff]  ;;  %v275_v23 = vld [vmem:[%s2753_s10 + $0x58] sm:$0xff]  ;;  %v277_v25 = vld [vmem:[%s2753_s10 + $0x68] sm:$0xff]  ;;  %s2483_s7 = sld [smem:[#allocation5 + $0x1]] (!%p2482_p2)  ;;  %s2484_s8 = sld [smem:[#allocation5 + $0x2]] (!%p2482_p2) }
  0x2d   : > { %1702 = vmatpush1.bf16.msra.mxu0 %v2620_v6  ;;  %2575 = vmatpush1.bf16.msra.mxu1 %v2620_v6  ;;  %v276_v24 = vld [vmem:[%s2753_s10 + $0x60] sm:$0xff]  ;;  %v278_v26 = vld [vmem:[%s2753_s10 + $0x70] sm:$0xff]  ;;  %v279_v27 = vld [vmem:[%s2753_s10 + $0x78] sm:$0xff] }
  0x2e   : > { %2476 = vmatprep.subr.msk.bf16.mxu0 %vm1692_vm1, %v2475_v7  ;;  %2573 = vmatprep.subr.msk.bf16.mxu1 %vm1692_vm1, %v2475_v7  ;;  %v281_v28 = vld [vmem:[%s2753_s10 + $0x88] sm:$0xff]  ;;  %v282_v29 = vld [vmem:[%s2753_s10 + $0x90] sm:$0xff]  ;;  %v2795_v30 = vld [vmem:[%s5006_s1] sm:$0xff]  ;;  %v2797_v31 = vstv %s1457_s23 }
  0x2f   : > { %5048 = vst [vmem:[#allocation8_spill] sm:$0xff] %v2797_v31  ;;  %v283_v32 = vld [vmem:[%s2753_s10 + $0x98] sm:$0xff]  ;;  %v284_v33 = vld [vmem:[%s2753_s10 + $0xa0] sm:$0xff]  ;;  %v285_v34 = vld [vmem:[%s2753_s10 + $0xa8] sm:$0xff]  ;;  %v2819_v39 = vmul.f32 %v2795_v30, %v264_v10  ;;  %v2822_v40 = vmul.f32 %v2795_v30, %v272_v14  ;;  %v2825_v41 = vmul.f32 %v2795_v30, %v280_v20  ;;  %v2828_v42 = vmul.f32 %v2795_v30, %v288_v21 }
  0x30   : > { %v286_v35 = vld [vmem:[%s2753_s10 + $0xb0] sm:$0xff]  ;;  %v2806_v36 = vld [vmem:[%s5006_s1 + $0x8] sm:$0xff]  ;;  %v2816_v38 = vld [vmem:[%s5006_s1 + $0x18] sm:$0xff] }
  0x31   : > { %1704 = vmatpush1.bf16.msra.mxu0 %v1694_v9  ;;  %2576 = vmatpush1.bf16.msra.mxu1 %v1694_v9  ;;  %v2811_v37 = vld [vmem:[%s5006_s1 + $0x10] sm:$0xff]  ;;  %5049 = vst [vmem:[#allocation9_spill] sm:$0xff] %v2828_v42  ;;  %v287_v43 = vld [vmem:[%s2753_s10 + $0xb8] sm:$0xff]  ;;  %v289_v44 = vld [vmem:[%s2753_s10 + $0xc8] sm:$0xff]  ;;  %v2850_v50 = vmul.f32 %v2806_v36, %v265_v11  ;;  %v2856_v52 = vmul.f32 %v2816_v38, %v267_v13 }
  0x32   : > { %v290_v45 = vld [vmem:[%s2753_s10 + $0xd0] sm:$0xff]  ;;  %v291_v46 = vld [vmem:[%s2753_s10 + $0xd8] sm:$0xff]  ;;  %v2837_v47 = vld [vmem:[%s5006_s1 + $0x20] sm:$0xff]  ;;  %v2853_v51 = vmul.f32 %v2811_v37, %v266_v12  ;;  %v2859_v53 = vmul.f32 %v2806_v36, %v273_v15  ;;  %v2880_v62 = vmul.f32 %v2811_v37, %v274_v19  ;;  %v2890_v4 = vmul.f32 %v2816_v38, %v275_v23 }
  0x33   : > { %v2842_v48 = vld [vmem:[%s5006_s1 + $0x28] sm:$0xff]  ;;  %v2847_v49 = vld [vmem:[%s5006_s1 + $0x30] sm:$0xff]  ;;  %v292_v54 = vld [vmem:[%s2753_s10 + $0xe0] sm:$0xff]  ;;  %v2871_v59 = vmul.f32 %v2837_v47, %v268_v16  ;;  %v2893_v5 = vmul.f32 %v2837_v47, %v276_v24  ;;  %v2909_v13 = vmul.f32 %v2806_v36, %v281_v28  ;;  %v2912_v14 = vmul.f32 %v2811_v37, %v282_v29 }
  0x34   : > { %v293_v55 = vld [vmem:[%s2753_s10 + $0xe8] sm:$0xff]  ;;  %v294_v56 = vld [vmem:[%s2753_s10 + $0xf0] sm:$0xff]  ;;  %v295_v57 = vld [vmem:[%s2753_s10 + $0xf8] sm:$0xff]  ;;  %v2874_v60 = vmul.f32 %v2842_v48, %v269_v17  ;;  %v2877_v61 = vmul.f32 %v2847_v49, %v270_v18  ;;  %v2896_v6 = vmul.f32 %v2842_v48, %v277_v25  ;;  %v2903_v11 = vmul.f32 %v2847_v49, %v278_v26 }
  0x35   : > { %v2868_v58 = vld [vmem:[%s5006_s1 + $0x38] sm:$0xff]  ;;  %v296_v63 = vld [vmem:[%s2753_s10 + $0x100] sm:$0xff]  ;;  %v297_v0 = vld [vmem:[%s2753_s10 + $0x108] sm:$0xff]  ;;  %v2919_v19 = vmul.f32 %v2816_v38, %v283_v32  ;;  %v2922_v20 = vmul.f32 %v2837_v47, %v284_v33  ;;  %v2925_v21 = vmul.f32 %v2842_v48, %v285_v34  ;;  %v2938_v28 = vmul.f32 %v2806_v36, %v289_v44 }
  0x36   : > { %v298_v1 = vld [vmem:[%s2753_s10 + $0x110] sm:$0xff]  ;;  %v299_v2 = vld [vmem:[%s2753_s10 + $0x118] sm:$0xff]  ;;  %v2887_v3 = vmul.f32 %v2868_v58, %v271_v22  ;;  %v300_v7 = vld [vmem:[%s2753_s10 + $0x120] sm:$0xff]  ;;  %v2906_v12 = vmul.f32 %v2868_v58, %v279_v27  ;;  %v2928_v22 = vmul.f32 %v2847_v49, %v286_v35  ;;  %v2935_v27 = vmul.f32 %v2868_v58, %v287_v43 }
  0x37   : > { %v301_v8 = vld [vmem:[%s2753_s10 + $0x128] sm:$0xff]  ;;  %v302_v9 = vld [vmem:[%s2753_s10 + $0x130] sm:$0xff]  ;;  %v303_v10 = vld [vmem:[%s2753_s10 + $0x138] sm:$0xff]  ;;  %5051 = vst [vmem:[#allocation11_spill] sm:$0xff] %v2938_v28  ;;  %v2941_v29 = vmul.f32 %v2811_v37, %v290_v45  ;;  %v2944_v32 = vmul.f32 %v2816_v38, %v291_v46  ;;  %v2951_v43 = vmul.f32 %v2837_v47, %v292_v54  ;;  %v2954_v44 = vmul.f32 %v2842_v48, %v293_v55 }
  0x38   : > { %v304_v15 = vld [vmem:[%s2753_s10 + $0x140] sm:$0xff]  ;;  %v305_v16 = vld [vmem:[%s2753_s10 + $0x148] sm:$0xff]  ;;  %v306_v17 = vld [vmem:[%s2753_s10 + $0x150] sm:$0xff]  ;;  %5050 = vst [vmem:[#allocation10_spill] sm:$0xff] %v2935_v27  ;;  %v2957_v45 = vmul.f32 %v2847_v49, %v294_v56  ;;  %v2960_v46 = vmul.f32 %v2868_v58, %v295_v57  ;;  %v2967_v54 = vmul.f32 %v2795_v30, %v296_v63  ;;  %v2970_v55 = vmul.f32 %v2806_v36, %v297_v0 }
  0x39   : > { %v307_v18 = vld [vmem:[%s2753_s10 + $0x158] sm:$0xff]  ;;  %v308_v23 = vld [vmem:[%s2753_s10 + $0x160] sm:$0xff]  ;;  %v309_v24 = vld [vmem:[%s2753_s10 + $0x168] sm:$0xff]  ;;  %5052 = vst [vmem:[#allocation12_spill] sm:$0xff] %v2941_v29  ;;  %v2973_v56 = vmul.f32 %v2811_v37, %v298_v1  ;;  %v2976_v57 = vmul.f32 %v2816_v38, %v299_v2  ;;  %v2983_v63 = vmul.f32 %v2837_v47, %v300_v7  ;;  %v2986_v0 = vmul.f32 %v2842_v48, %v301_v8 }
  0x3a   : > { %v310_v25 = vld [vmem:[%s2753_s10 + $0x170] sm:$0xff]  ;;  %v311_v26 = vld [vmem:[%s2753_s10 + $0x178] sm:$0xff]  ;;  %5053 = vst [vmem:[#allocation13_spill] sm:$0xff] %v2944_v32  ;;  %v312_v33 = vld [vmem:[%s2753_s10 + $0x180] sm:$0xff]  ;;  %v2989_v1 = vmul.f32 %v2847_v49, %v302_v9  ;;  %v2992_v2 = vmul.f32 %v2868_v58, %v303_v10  ;;  %v2999_v7 = vmul.f32 %v2795_v30, %v304_v15  ;;  %v3002_v8 = vmul.f32 %v2806_v36, %v305_v16 }
  0x3b   : > { %v313_v34 = vld [vmem:[%s2753_s10 + $0x188] sm:$0xff]  ;;  %v314_v35 = vld [vmem:[%s2753_s10 + $0x190] sm:$0xff]  ;;  %v315_v31 = vld [vmem:[%s2753_s10 + $0x198] sm:$0xff]  ;;  %5054 = vst [vmem:[#allocation14_spill] sm:$0xff] %v2951_v43  ;;  %v3005_v9 = vmul.f32 %v2811_v37, %v306_v17  ;;  %v3008_v10 = vmul.f32 %v2816_v38, %v307_v18  ;;  %v3015_v15 = vmul.f32 %v2837_v47, %v308_v23  ;;  %v3018_v16 = vmul.f32 %v2842_v48, %v309_v24 }
  0x3c   : > { %5055 = vst [vmem:[#allocation15_spill] sm:$0xff] %v2954_v44  ;;  %5056 = vst [vmem:[#allocation16_spill] sm:$0xff] %v2957_v45  ;;  %v316_v32 = vld [vmem:[%s2753_s10 + $0x1a0] sm:$0xff]  ;;  %v317_v29 = vld [vmem:[%s2753_s10 + $0x1a8] sm:$0xff]  ;;  %v3021_v17 = vmul.f32 %v2847_v49, %v310_v25  ;;  %v3024_v18 = vmul.f32 %v2868_v58, %v311_v26  ;;  %v3031_v23 = vmul.f32 %v2795_v30, %v312_v33 }
  0x3d   : > { %5057 = vst [vmem:[#allocation17_spill] sm:$0xff] %v2960_v46  ;;  %v318_v28 = vld [vmem:[%s2753_s10 + $0x1b0] sm:$0xff]  ;;  %v319_v42 = vld [vmem:[%s2753_s10 + $0x1b8] sm:$0xff]  ;;  %5058 = vst [vmem:[#allocation18_spill] sm:$0xff] %v2967_v54  ;;  %v3034_v24 = vmul.f32 %v2806_v36, %v313_v34  ;;  %v3037_v25 = vmul.f32 %v2811_v37, %v314_v35  ;;  %v3040_v26 = vmul.f32 %v2816_v38, %v315_v31 }
  0x3e   : > { %5059 = vst [vmem:[#allocation19_spill] sm:$0xff] %v2970_v55  ;;  %5060 = vst [vmem:[#allocation20_spill] sm:$0xff] %v2973_v56  ;;  %v320_v46 = vld [vmem:[%s2753_s10 + $0x1c0] sm:$0xff]  ;;  %v321_v45 = vld [vmem:[%s2753_s10 + $0x1c8] sm:$0xff]  ;;  %v3047_v33 = vmul.f32 %v2837_v47, %v316_v32  ;;  %v3050_v34 = vmul.f32 %v2842_v48, %v317_v29  ;;  %v3053_v35 = vmul.f32 %v2847_v49, %v318_v28 }
  0x3f   : > { %5061 = vst [vmem:[#allocation21_spill] sm:$0xff] %v2976_v57  ;;  %v322_v44 = vld [vmem:[%s2753_s10 + $0x1d0] sm:$0xff]  ;;  %v323_v43 = vld [vmem:[%s2753_s10 + $0x1d8] sm:$0xff]  ;;  %5062 = vst [vmem:[#allocation22_spill] sm:$0xff] %v2983_v63  ;;  %v3056_v31 = vmul.f32 %v2868_v58, %v319_v42  ;;  %v3063_v32 = vmul.f32 %v2795_v30, %v320_v46  ;;  %v3066_v29 = vmul.f32 %v2806_v36, %v321_v45 }
  0x40   : > { %5063 = vst [vmem:[#allocation23_spill] sm:$0xff] %v2986_v0  ;;  %5064 = vst [vmem:[#allocation24_spill] sm:$0xff] %v2989_v1  ;;  %v324_v57 = vld [vmem:[%s2753_s10 + $0x1e0] sm:$0xff]  ;;  %v325_v56 = vld [vmem:[%s2753_s10 + $0x1e8] sm:$0xff]  ;;  %v3069_v28 = vmul.f32 %v2811_v37, %v322_v44  ;;  %v3072_v42 = vmul.f32 %v2816_v38, %v323_v43 }
  0x41   : > { %5065 = vst [vmem:[#allocation25_spill] sm:$0xff] %v2992_v2  ;;  %v326_v55 = vld [vmem:[%s2753_s10 + $0x1f0] sm:$0xff]  ;;  %v327_v54 = vld [vmem:[%s2753_s10 + $0x1f8] sm:$0xff]  ;;  %5066 = vst [vmem:[#allocation26_spill] sm:$0xff] %v2999_v7  ;;  %v3079_v46 = vmul.f32 %v2837_v47, %v324_v57  ;;  %v3082_v45 = vmul.f32 %v2842_v48, %v325_v56 }
  0x42   : > { %5067 = vst [vmem:[#allocation27_spill] sm:$0xff] %v3002_v8  ;;  %5068 = vst [vmem:[#allocation28_spill] sm:$0xff] %v3005_v9  ;;  %v328_v2 = vld [vmem:[%s2753_s10 + $0x200] sm:$0xff]  ;;  %v329_v1 = vld [vmem:[%s2753_s10 + $0x208] sm:$0xff]  ;;  %v3085_v44 = vmul.f32 %v2847_v49, %v326_v55  ;;  %v3088_v43 = vmul.f32 %v2868_v58, %v327_v54 }
  0x43   : > { %5069 = vst [vmem:[#allocation29_spill] sm:$0xff] %v3008_v10  ;;  %v330_v0 = vld [vmem:[%s2753_s10 + $0x210] sm:$0xff]  ;;  %v331_v63 = vld [vmem:[%s2753_s10 + $0x218] sm:$0xff]  ;;  %5070 = vst [vmem:[#allocation30_spill] sm:$0xff] %v3015_v15  ;;  %v3095_v57 = vmul.f32 %v2795_v30, %v328_v2  ;;  %v3098_v56 = vmul.f32 %v2806_v36, %v329_v1 }
  0x44   : > { %5071 = vst [vmem:[#allocation31_spill] sm:$0xff] %v3018_v16  ;;  %5072 = vst [vmem:[#allocation32_spill] sm:$0xff] %v3021_v17  ;;  %v332_v10 = vld [vmem:[%s2753_s10 + $0x220] sm:$0xff]  ;;  %v333_v9 = vld [vmem:[%s2753_s10 + $0x228] sm:$0xff]  ;;  %v3101_v55 = vmul.f32 %v2811_v37, %v330_v0  ;;  %v3104_v54 = vmul.f32 %v2816_v38, %v331_v63 }
  0x45   : > { %5073 = vst [vmem:[#allocation33_spill] sm:$0xff] %v3024_v18  ;;  %v334_v8 = vld [vmem:[%s2753_s10 + $0x230] sm:$0xff]  ;;  %v335_v7 = vld [vmem:[%s2753_s10 + $0x238] sm:$0xff]  ;;  %5074 = vst [vmem:[#allocation34_spill] sm:$0xff] %v3031_v23  ;;  %v3111_v2 = vmul.f32 %v2837_v47, %v332_v10  ;;  %v3114_v1 = vmul.f32 %v2842_v48, %v333_v9 }
  0x46   : > { %5075 = vst [vmem:[#allocation35_spill] sm:$0xff] %v3034_v24  ;;  %5076 = vst [vmem:[#allocation36_spill] sm:$0xff] %v3037_v25  ;;  %v336_v18 = vld [vmem:[%s2753_s10 + $0x240] sm:$0xff]  ;;  %v337_v17 = vld [vmem:[%s2753_s10 + $0x248] sm:$0xff]  ;;  %v3117_v0 = vmul.f32 %v2847_v49, %v334_v8  ;;  %v3120_v63 = vmul.f32 %v2868_v58, %v335_v7 }
  0x47   : > { %5077 = vst [vmem:[#allocation37_spill] sm:$0xff] %v3040_v26  ;;  %v338_v16 = vld [vmem:[%s2753_s10 + $0x250] sm:$0xff]  ;;  %v339_v15 = vld [vmem:[%s2753_s10 + $0x258] sm:$0xff]  ;;  %5078 = vst [vmem:[#allocation38_spill] sm:$0xff] %v3047_v33  ;;  %v3127_v10 = vmul.f32 %v2795_v30, %v336_v18  ;;  %v3130_v9 = vmul.f32 %v2806_v36, %v337_v17 }
  0x48   : > { %5079 = vst [vmem:[#allocation39_spill] sm:$0xff] %v3050_v34  ;;  %5080 = vst [vmem:[#allocation40_spill] sm:$0xff] %v3053_v35  ;;  %v340_v26 = vld [vmem:[%s2753_s10 + $0x260] sm:$0xff]  ;;  %v341_v25 = vld [vmem:[%s2753_s10 + $0x268] sm:$0xff]  ;;  %v3133_v8 = vmul.f32 %v2811_v37, %v338_v16  ;;  %v3136_v7 = vmul.f32 %v2816_v38, %v339_v15 }
  0x49   : > { %5081 = vst [vmem:[#allocation41_spill] sm:$0xff] %v3056_v31  ;;  %v342_v24 = vld [vmem:[%s2753_s10 + $0x270] sm:$0xff]  ;;  %v343_v23 = vld [vmem:[%s2753_s10 + $0x278] sm:$0xff]  ;;  %5082 = vst [vmem:[#allocation42_spill] sm:$0xff] %v3063_v32  ;;  %v3143_v27 = vmul.f32 %v2837_v47, %v340_v26  ;;  %v3146_v18 = vmul.f32 %v2842_v48, %v341_v25 }
  0x4a   : > { %5083 = vst [vmem:[#allocation43_spill] sm:$0xff] %v3066_v29  ;;  %5084 = vst [vmem:[#allocation44_spill] sm:$0xff] %v3069_v28  ;;  %v344_v31 = vld [vmem:[%s2753_s10 + $0x280] sm:$0xff]  ;;  %v345_v35 = vld [vmem:[%s2753_s10 + $0x288] sm:$0xff]  ;;  %v3149_v17 = vmul.f32 %v2847_v49, %v342_v24  ;;  %v3152_v16 = vmul.f32 %v2868_v58, %v343_v23 }
  0x4b   : > { %5085 = vst [vmem:[#allocation45_spill] sm:$0xff] %v3072_v42  ;;  %v346_v34 = vld [vmem:[%s2753_s10 + $0x290] sm:$0xff]  ;;  %v347_v33 = vld [vmem:[%s2753_s10 + $0x298] sm:$0xff]  ;;  %5086 = vst [vmem:[#allocation46_spill] sm:$0xff] %v3079_v46  ;;  %v3162_v26 = vmul.f32 %v2806_v36, %v345_v35 }
  0x4c   : > { %5087 = vst [vmem:[#allocation47_spill] sm:$0xff] %v3082_v45  ;;  %5088 = vst [vmem:[#allocation48_spill] sm:$0xff] %v3085_v44  ;;  %v348_v42 = vld [vmem:[%s2753_s10 + $0x2a0] sm:$0xff]  ;;  %v349_v28 = vld [vmem:[%s2753_s10 + $0x2a8] sm:$0xff]  ;;  %v3165_v25 = vmul.f32 %v2811_v37, %v346_v34  ;;  %v3168_v24 = vmul.f32 %v2816_v38, %v347_v33 }
  0x4d   : > { %5089 = vst [vmem:[#allocation49_spill] sm:$0xff] %v3088_v43  ;;  %v350_v29 = vld [vmem:[%s2753_s10 + $0x2b0] sm:$0xff]  ;;  %v351_v32 = vld [vmem:[%s2753_s10 + $0x2b8] sm:$0xff]  ;;  %5090 = vst [vmem:[#allocation50_spill] sm:$0xff] %v3095_v57 }
  0x4e   : > { %5091 = vst [vmem:[#allocation51_spill] sm:$0xff] %v3098_v56  ;;  %5092 = vst [vmem:[#allocation52_spill] sm:$0xff] %v3101_v55  ;;  %v352_v43 = vld [vmem:[%s2753_s10 + $0x2c0] sm:$0xff]  ;;  %v353_v44 = vld [vmem:[%s2753_s10 + $0x2c8] sm:$0xff]  ;;  %v3180_v35 = vmul.f32 %v2847_v49, %v350_v29  ;;  %v3183_v34 = vmul.f32 %v2868_v58, %v351_v32 }
  0x4f   : > { %5093 = vst [vmem:[#allocation53_spill] sm:$0xff] %v3104_v54  ;;  %v354_v45 = vld [vmem:[%s2753_s10 + $0x2d0] sm:$0xff]  ;;  %v355_v46 = vld [vmem:[%s2753_s10 + $0x2d8] sm:$0xff]  ;;  %5094 = vst [vmem:[#allocation54_spill] sm:$0xff] %v3111_v2 }
  0x50   : > { %5095 = vst [vmem:[#allocation55_spill] sm:$0xff] %v3114_v1  ;;  %5096 = vst [vmem:[#allocation56_spill] sm:$0xff] %v3117_v0  ;;  %v356_v54 = vld [vmem:[%s2753_s10 + $0x2e0] sm:$0xff]  ;;  %v357_v55 = vld [vmem:[%s2753_s10 + $0x2e8] sm:$0xff]  ;;  %v3198_v32 = vmul.f32 %v2816_v38, %v355_v46 }
  0x51   : > { %5097 = vst [vmem:[#allocation57_spill] sm:$0xff] %v3120_v63  ;;  %v358_v56 = vld [vmem:[%s2753_s10 + $0x2f0] sm:$0xff]  ;;  %v359_v57 = vld [vmem:[%s2753_s10 + $0x2f8] sm:$0xff]  ;;  %5098 = vst [vmem:[#allocation58_spill] sm:$0xff] %v3127_v10  ;;  %v3159_v10 = vmul.f32 %v2795_v30, %v344_v31  ;;  %v3177_v31 = vmul.f32 %v2842_v48, %v349_v28  ;;  %v3195_v28 = vmul.f32 %v2811_v37, %v354_v45 }
  0x52   : > { %5099 = vst [vmem:[#allocation59_spill] sm:$0xff] %v3130_v9  ;;  %5100 = vst [vmem:[#allocation60_spill] sm:$0xff] %v3133_v8  ;;  %v360_v63 = vld [vmem:[%s2753_s10 + $0x300] sm:$0xff]  ;;  %v361_v0 = vld [vmem:[%s2753_s10 + $0x308] sm:$0xff]  ;;  %v3213_v45 = vmul.f32 %v2868_v58, %v359_v57 }
  0x53   : > { %5101 = vst [vmem:[#allocation61_spill] sm:$0xff] %v3136_v7  ;;  %v362_v1 = vld [vmem:[%s2753_s10 + $0x310] sm:$0xff]  ;;  %v363_v2 = vld [vmem:[%s2753_s10 + $0x318] sm:$0xff]  ;;  %5102 = vst [vmem:[#allocation62_spill] sm:$0xff] %v3146_v18  ;;  %v3174_v18 = vmul.f32 %v2837_v47, %v348_v42  ;;  %v3192_v42 = vmul.f32 %v2806_v36, %v353_v44  ;;  %v3210_v44 = vmul.f32 %v2847_v49, %v358_v56 }
  0x54   : > { %5103 = vst [vmem:[#allocation63_spill] sm:$0xff] %v3149_v17  ;;  %5104 = vst [vmem:[#allocation64_spill] sm:$0xff] %v3152_v16  ;;  %v364_v15 = vld [vmem:[%s2753_s10 + $0x320] sm:$0xff]  ;;  %v365_v7 = vld [vmem:[%s2753_s10 + $0x328] sm:$0xff]  ;;  %v3228_v56 = vmul.f32 %v2816_v38, %v363_v2 }
  0x55   : > { %v366_v8 = vld [vmem:[%s2753_s10 + $0x330] sm:$0xff]  ;;  %v367_v9 = vld [vmem:[%s2753_s10 + $0x338] sm:$0xff]  ;;  %5105 = vst [vmem:[#allocation65_spill] sm:$0xff] %v3162_v26  ;;  %5106 = vst [vmem:[#allocation66_spill] sm:$0xff] %v3165_v25  ;;  %v3189_v26 = vmul.f32 %v2795_v30, %v352_v43  ;;  %v3207_v43 = vmul.f32 %v2842_v48, %v357_v55  ;;  %v3225_v55 = vmul.f32 %v2811_v37, %v362_v1 }
  0x56   : > { %5107 = vst [vmem:[#allocation67_spill] sm:$0xff] %v3168_v24  ;;  %v368_v23 = vld [vmem:[%s2753_s10 + $0x340] sm:$0xff]  ;;  %v369_v16 = vld [vmem:[%s2753_s10 + $0x348] sm:$0xff]  ;;  %v370_v17 = vld [vmem:[%s2753_s10 + $0x350] sm:$0xff]  ;;  %v3243_v1 = vmul.f32 %v2868_v58, %v367_v9 }
  0x57   : > { %5108 = vst [vmem:[#allocation68_spill] sm:$0xff] %v3177_v31  ;;  %5109 = vst [vmem:[#allocation69_spill] sm:$0xff] %v3180_v35  ;;  %v371_v33 = vld [vmem:[%s2753_s10 + $0x358] sm:$0xff]  ;;  %v372_v24 = vld [vmem:[%s2753_s10 + $0x360] sm:$0xff]  ;;  %v3204_v31 = vmul.f32 %v2837_v47, %v356_v54  ;;  %v3222_v54 = vmul.f32 %v2806_v36, %v361_v0  ;;  %v3240_v0 = vmul.f32 %v2847_v49, %v366_v8 }
  0x58   : > { %5110 = vst [vmem:[#allocation70_spill] sm:$0xff] %v3183_v34  ;;  %v373_v25 = vld [vmem:[%s2753_s10 + $0x368] sm:$0xff]  ;;  %5111 = vst [vmem:[#allocation71_spill] sm:$0xff] %v3192_v42  ;;  %v374_v29 = vld [vmem:[%s2753_s10 + $0x370] sm:$0xff]  ;;  %v3219_v42 = vmul.f32 %v2795_v30, %v360_v63  ;;  %v3237_v63 = vmul.f32 %v2842_v48, %v365_v7  ;;  %v3255_v7 = vmul.f32 %v2811_v37, %v370_v17 }
  0x59   : > { %5112 = vst [vmem:[#allocation72_spill] sm:$0xff] %v3195_v28  ;;  %5113 = vst [vmem:[#allocation73_spill] sm:$0xff] %v3198_v32  ;;  %v375_v34 = vld [vmem:[%s2753_s10 + $0x378] sm:$0xff]  ;;  %v376_v35 = vld [vmem:[%s2753_s10 + $0x380] sm:$0xff]  ;;  %v3258_v8 = vmul.f32 %v2816_v38, %v371_v33 }
  0x5a   : > { %5114 = vst [vmem:[#allocation74_spill] sm:$0xff] %v3207_v43  ;;  %5115 = vst [vmem:[#allocation75_spill] sm:$0xff] %v3210_v44  ;;  %v377_v46 = vld [vmem:[%s2753_s10 + $0x388] sm:$0xff]  ;;  %v378_v32 = vld [vmem:[%s2753_s10 + $0x390] sm:$0xff]  ;;  %v3234_v43 = vmul.f32 %v2837_v47, %v364_v15  ;;  %v3252_v15 = vmul.f32 %v2806_v36, %v369_v16  ;;  %v3273_v16 = vmul.f32 %v2868_v58, %v375_v34 }
  0x5b   : > { %5116 = vst [vmem:[#allocation76_spill] sm:$0xff] %v3213_v45  ;;  %v379_v28 = vld [vmem:[%s2753_s10 + $0x398] sm:$0xff]  ;;  %5117 = vst [vmem:[#allocation77_spill] sm:$0xff] %v3222_v54  ;;  %v380_v57 = vld [vmem:[%s2753_s10 + $0x3a0] sm:$0xff]  ;;  %v3249_v54 = vmul.f32 %v2795_v30, %v368_v23  ;;  %v3270_v23 = vmul.f32 %v2847_v49, %v374_v29  ;;  %v3279_v33 = vmul.f32 %v2795_v30, %v376_v35 }
  0x5c   : > { %5118 = vst [vmem:[#allocation78_spill] sm:$0xff] %v3225_v55  ;;  %5119 = vst [vmem:[#allocation79_spill] sm:$0xff] %v3228_v56  ;;  %v381_v45 = vld [vmem:[%s2753_s10 + $0x3a8] sm:$0xff]  ;;  %v382_v44 = vld [vmem:[%s2753_s10 + $0x3b0] sm:$0xff]  ;;  %v3291_v29 = vmul.f32 %v2837_v47, %v380_v57 }
  0x5d   : > { %5120 = vst [vmem:[#allocation80_spill] sm:$0xff] %v3234_v43  ;;  %5121 = vst [vmem:[#allocation81_spill] sm:$0xff] %v3237_v63  ;;  %v383_v2 = vld [vmem:[%s2753_s10 + $0x3b8] sm:$0xff]  ;;  %v384_v56 = vld [vmem:[%s2753_s10 + $0x3c0] sm:$0xff]  ;;  %v3264_v63 = vmul.f32 %v2837_v47, %v372_v24  ;;  %v3267_v43 = vmul.f32 %v2842_v48, %v373_v25  ;;  %v3285_v24 = vmul.f32 %v2811_v37, %v378_v32 }
  0x5e   : > { %5122 = vst [vmem:[#allocation82_spill] sm:$0xff] %v3240_v0  ;;  %5123 = vst [vmem:[#allocation83_spill] sm:$0xff] %v3243_v1  ;;  %v385_v55 = vld [vmem:[%s2753_s10 + $0x3c8] sm:$0xff]  ;;  %v386_v0 = vld [vmem:[%s2753_s10 + $0x3d0] sm:$0xff]  ;;  %v3288_v25 = vmul.f32 %v2816_v38, %v379_v28  ;;  %v3294_v34 = vmul.f32 %v2842_v48, %v381_v45  ;;  %v3300_v35 = vmul.f32 %v2868_v58, %v383_v2 }
  0x5f   : > { %5124 = vst [vmem:[#allocation84_spill] sm:$0xff] %v3252_v15  ;;  %5125 = vst [vmem:[#allocation85_spill] sm:$0xff] %v3255_v7  ;;  %v387_v9 = vld [vmem:[%s2753_s10 + $0x3d8] sm:$0xff]  ;;  %v388_v1 = vld [vmem:[%s2753_s10 + $0x3e0] sm:$0xff]  ;;  %v3306_v32 = vmul.f32 %v2806_v36, %v385_v55  ;;  %v3309_v28 = vmul.f32 %v2811_v37, %v386_v0  ;;  %v786_v37 = vsel %vm784_vm2, %v2850_v50, 0.0  ;;  %v796_v55 = vsel %vm784_vm2, %v2877_v61, 0.0 }
  0x60   : > { %5126 = vst [vmem:[#allocation86_spill] sm:$0xff] %v3258_v8  ;;  %5127 = vst [vmem:[#allocation87_spill] sm:$0xff] %v3273_v16  ;;  %v389_v17 = vld [vmem:[%s2753_s10 + $0x3e8] sm:$0xff]  ;;  %v390_v7 = vld [vmem:[%s2753_s10 + $0x3f0] sm:$0xff]  ;;  %v3282_v8 = vmul.f32 %v2806_v36, %v377_v46  ;;  %v3297_v16 = vmul.f32 %v2847_v49, %v382_v44  ;;  %v3303_v46 = vmul.f32 %v2795_v30, %v384_v56  ;;  %v785_v36 = vsel %vm784_vm2, %v2819_v39, 0.0 }
  0x61   : > { %v391_v15 = vld [vmem:[%s2753_s10 + $0x3f8] sm:$0xff]  ;;  %v3312_v57 = vmul.f32 %v2816_v38, %v387_v9  ;;  %v3315_v45 = vmul.f32 %v2837_v47, %v388_v1  ;;  %v3318_v44 = vmul.f32 %v2842_v48, %v389_v17  ;;  %v3321_v2 = vmul.f32 %v2847_v49, %v390_v7 }
  0x62   : > { %v3324_v30 = vmul.f32 %v2868_v58, %v391_v15  ;;  %v788_v38 = vsel %vm784_vm2, %v2853_v51, 0.0  ;;  %v790_v47 = vsel %vm784_vm2, %v2856_v52, 0.0  ;;  %v787_v48 = vadd.f32 %v786_v37, %v785_v36  ;;  %v5128_v17 = vld [vmem:[#allocation10_spill] sm:$0xff] }
  0x63   : > { %v792_v49 = vsel %vm784_vm2, %v2871_v59, 0.0  ;;  %v794_v58 = vsel %vm784_vm2, %v2874_v60, 0.0  ;;  %v798_v39 = vsel %vm784_vm2, %v2887_v3, 0.0  ;;  %v806_v50 = vsel %vm784_vm2, %v2822_v40, 0.0 }
  0x64   : > { %v807_v51 = vsel %vm784_vm2, %v2859_v53, 0.0  ;;  %v809_v52 = vsel %vm784_vm2, %v2880_v62, 0.0  ;;  %v789_v56 = vadd.f32 %v788_v38, %v787_v48  ;;  %v811_v60 = vsel %vm784_vm2, %v2890_v4, 0.0  ;;  %v5130_v38 = vld [vmem:[#allocation11_spill] sm:$0xff] }
  0x65   : > { %v808_v59 = vadd.f32 %v807_v51, %v806_v50  ;;  %v813_v61 = vsel %vm784_vm2, %v2893_v5, 0.0  ;;  %v815_v3 = vsel %vm784_vm2, %v2896_v6, 0.0  ;;  %v817_v40 = vsel %vm784_vm2, %v2903_v11, 0.0  ;;  %v5132_v50 = vld [vmem:[#allocation13_spill] sm:$0xff] }
  0x66   : > { %v819_v53 = vsel %vm784_vm2, %v2906_v12, 0.0  ;;  %v827_v62 = vsel %vm784_vm2, %v2825_v41, 0.0  ;;  %v791_v0 = vadd.f32 %v790_v47, %v789_v56  ;;  %v828_v4 = vsel %vm784_vm2, %v2909_v13, 0.0  ;;  %v5131_v47 = vld [vmem:[#allocation12_spill] sm:$0xff] }
  0x67   : > { %v810_v1 = vadd.f32 %v809_v52, %v808_v59  ;;  %v830_v5 = vsel %vm784_vm2, %v2912_v14, 0.0  ;;  %v829_v15 = vadd.f32 %v828_v4, %v827_v62  ;;  %v832_v6 = vsel %vm784_vm2, %v2919_v19, 0.0  ;;  %v5129_v14 = vld [vmem:[#allocation9_spill] sm:$0xff]  ;;  %v5133_v52 = vld [vmem:[#allocation14_spill] sm:$0xff]  ;;  %v5134_v59 = vld [vmem:[#allocation15_spill] sm:$0xff] }
  0x68   : > { %v834_v11 = vsel %vm784_vm2, %v2922_v20, 0.0  ;;  %v836_v12 = vsel %vm784_vm2, %v2925_v21, 0.0  ;;  %v793_v7 = vadd.f32 %v792_v49, %v791_v0  ;;  %v838_v9 = vsel %vm784_vm2, %v2928_v22, 0.0  ;;  %v5135_v62 = vld [vmem:[#allocation16_spill] sm:$0xff] }
  0x69   : > { %v812_v41 = vadd.f32 %v811_v60, %v810_v1  ;;  %v840_v13 = vsel %vm784_vm2, %v5128_v17, 0.0  ;;  %v831_v36 = vadd.f32 %v830_v5, %v829_v15  ;;  %v848_v37 = vsel %vm784_vm2, %v5129_v14, 0.0  ;;  %v5136_v15 = vld [vmem:[#allocation17_spill] sm:$0xff] }
  0x6a   : > { %v849_v19 = vsel %vm784_vm2, %v5130_v38, 0.0  ;;  %v851_v20 = vsel %vm784_vm2, %v5131_v47, 0.0  ;;  %v795_v48 = vadd.f32 %v794_v58, %v793_v7  ;;  %v853_v51 = vsel %vm784_vm2, %v5132_v50, 0.0  ;;  %v5137_v7 = vld [vmem:[#allocation18_spill] sm:$0xff] }
  0x6b   : > { %v814_v21 = vadd.f32 %v813_v61, %v812_v41  ;;  %v850_v49 = vadd.f32 %v849_v19, %v848_v37  ;;  %v833_v22 = vadd.f32 %v832_v6, %v831_v36  ;;  %v855_v56 = vsel %vm784_vm2, %v5133_v52, 0.0  ;;  %v5138_v6 = vld [vmem:[#allocation19_spill] sm:$0xff]  ;;  %v5139_v36 = vld [vmem:[#allocation20_spill] sm:$0xff] }
  0x6c   : > { %v857_v60 = vsel %vm784_vm2, %v5134_v59, 0.0  ;;  %v859_v0 = vsel %vm784_vm2, %v5135_v62, 0.0  ;;  %v797_v1 = vadd.f32 %v796_v55, %v795_v48  ;;  %v861_v58 = vsel %vm784_vm2, %v5136_v15, 0.0  ;;  %v5141_v48 = vld [vmem:[#allocation22_spill] sm:$0xff]  ;;  %v5143_v15 = vld [vmem:[#allocation24_spill] sm:$0xff] }
  0x6d   : > { %v816_v4 = vadd.f32 %v815_v3, %v814_v21  ;;  %v852_v5 = vadd.f32 %v851_v20, %v850_v49  ;;  %v835_v61 = vadd.f32 %v834_v11, %v833_v22  ;;  %v869_v41 = vsel %vm784_vm2, %v5137_v7, 0.0  ;;  %v5140_v3 = vld [vmem:[#allocation21_spill] sm:$0xff]  ;;  %v5142_v21 = vld [vmem:[#allocation23_spill] sm:$0xff] }
  0x6e   : > { %v870_v17 = vsel %vm784_vm2, %v5138_v6, 0.0  ;;  %v872_v14 = vsel %vm784_vm2, %v5139_v36, 0.0  ;;  %v799_v37 = vadd.f32 %v798_v39, %v797_v1  ;;  %v874_v20 = vsel %vm784_vm2, %v5140_v3, 0.0  ;;  %v5146_v6 = vld [vmem:[#allocation27_spill] sm:$0xff] }
  0x6f   : > { %v818_v38 = vadd.f32 %v817_v40, %v816_v4  ;;  %v854_v19 = vadd.f32 %v853_v51, %v852_v5  ;;  %v871_v47 = vadd.f32 %v870_v17, %v869_v41  ;;  %v837_v55 = vadd.f32 %v836_v12, %v835_v61  ;;  %v5144_v40 = vld [vmem:[#allocation25_spill] sm:$0xff]  ;;  %v5145_v51 = vld [vmem:[#allocation26_spill] sm:$0xff] }
  0x70   : > { %v876_v11 = vsel %vm784_vm2, %v5141_v48, 0.0  ;;  %v878_v49 = vsel %vm784_vm2, %v5142_v21, 0.0  ;;  %v800_v50 = vrot.slane %v799_v37, 4  ;;  %v880_v39 = vsel %vm784_vm2, %v5143_v15, 0.0  ;;  %v5148_v17 = vld [vmem:[#allocation29_spill] sm:$0xff]  ;;  %v5151_v15 = vld [vmem:[#allocation32_spill] sm:$0xff] }
  0x71   : > { %v820_v22 = vadd.f32 %v819_v53, %v818_v38  ;;  %v856_v52 = vadd.f32 %v855_v56, %v854_v19  ;;  %v873_v59 = vadd.f32 %v872_v14, %v871_v47  ;;  %v839_v62 = vadd.f32 %v838_v9, %v837_v55  ;;  %v5147_v56 = vld [vmem:[#allocation28_spill] sm:$0xff] }
  0x72   : > { %v882_v12 = vsel %vm784_vm2, %v5144_v40, 0.0  ;;  %v890_v1 = vsel %vm784_vm2, %v5145_v51, 0.0  ;;  %v801_v4 = vadd.f32 %v800_v50, %v799_v37  ;;  %v891_v53 = vsel %vm784_vm2, %v5146_v6, 0.0  ;;  %v5149_v37 = vld [vmem:[#allocation30_spill] sm:$0xff] }
  0x73   : > { %v821_v5 = vrot.slane %v820_v22, 4  ;;  %v858_v61 = vadd.f32 %v857_v60, %v856_v52  ;;  %v875_v7 = vadd.f32 %v874_v20, %v873_v59  ;;  %v841_v41 = vadd.f32 %v840_v13, %v839_v62  ;;  %v5150_v20 = vld [vmem:[#allocation31_spill] sm:$0xff]  ;;  %v5153_v6 = vld [vmem:[#allocation34_spill] sm:$0xff] }
  0x74   : > { %v893_v9 = vsel %vm784_vm2, %v5147_v56, 0.0  ;;  %v895_v36 = vsel %vm784_vm2, %v5148_v17, 0.0  ;;  %v802_v14 = vrot.slane %v801_v4, 2  ;;  %v892_v3 = vadd.f32 %v891_v53, %v890_v1  ;;  %v5154_v53 = vld [vmem:[#allocation35_spill] sm:$0xff] }
  0x75   : > { %v822_v38 = vadd.f32 %v821_v5, %v820_v22  ;;  %v860_v19 = vadd.f32 %v859_v0, %v858_v61  ;;  %v877_v47 = vadd.f32 %v876_v11, %v875_v7  ;;  %v842_v55 = vrot.slane %v841_v41, 4  ;;  %v5152_v22 = vld [vmem:[#allocation33_spill] sm:$0xff] }
  0x76   : > { %v897_v60 = vsel %vm784_vm2, %v5149_v37, 0.0  ;;  %v899_v13 = vsel %vm784_vm2, %v5150_v20, 0.0  ;;  %v803_v48 = vadd.f32 %v802_v14, %v801_v4  ;;  %v894_v62 = vadd.f32 %v893_v9, %v892_v3  ;;  %v5156_v3 = vld [vmem:[#allocation37_spill] sm:$0xff] }
  0x77   : > { %v823_v21 = vrot.slane %v822_v38, 2  ;;  %v862_v50 = vadd.f32 %v861_v58, %v860_v19  ;;  %v879_v52 = vadd.f32 %v878_v49, %v877_v47  ;;  %v843_v59 = vadd.f32 %v842_v55, %v841_v41  ;;  %v5155_v47 = vld [vmem:[#allocation36_spill] sm:$0xff] }
  0x78   : > { %v901_v40 = vsel %vm784_vm2, %v5151_v15, 0.0  ;;  %v903_v0 = vsel %vm784_vm2, %v5152_v22, 0.0  ;;  %v804_v11 = vrot.slane %v803_v48, 1  ;;  %v896_v7 = vadd.f32 %v895_v36, %v894_v62  ;;  %v5159_v15 = vld [vmem:[#allocation40_spill] sm:$0xff] }
  0x79   : > { %v824_v51 = vadd.f32 %v823_v21, %v822_v38  ;;  %v863_v1 = vrot.slane %v862_v50, 4  ;;  %v881_v5 = vadd.f32 %v880_v39, %v879_v52  ;;  %v844_v61 = vrot.slane %v843_v59, 2  ;;  %v5157_v52 = vld [vmem:[#allocation38_spill] sm:$0xff] }
  0x7a   : > { %v911_v4 = vsel %vm784_vm2, %v5153_v6, 0.0  ;;  %v912_v58 = vsel %vm784_vm2, %v5154_v53, 0.0  ;;  %v3426_v49 = vadd.f32 %v804_v11, %v803_v48  ;;  %v898_v14 = vadd.f32 %v897_v60, %v896_v7  ;;  %v5158_v60 = vld [vmem:[#allocation39_spill] sm:$0xff]  ;;  %v5161_v6 = vld [vmem:[#allocation42_spill] sm:$0xff] }
  0x7b   : > { %v825_v41 = vrot.slane %v824_v51, 1  ;;  %v864_v56 = vadd.f32 %v863_v1, %v862_v50  ;;  %v883_v9 = vadd.f32 %v882_v12, %v881_v5  ;;  %v845_v17 = vadd.f32 %v844_v61, %v843_v59  ;;  %v5160_v5 = vld [vmem:[#allocation41_spill] sm:$0xff]  ;;  %v5162_v53 = vld [vmem:[#allocation43_spill] sm:$0xff] }
  0x7c   : > { %v913_v19 = vadd.f32 %v912_v58, %v911_v4  ;;  %v914_v38 = vsel %vm784_vm2, %v5155_v47, 0.0  ;;  %v916_v37 = vsel %vm784_vm2, %v5156_v3, 0.0  ;;  %v900_v21 = vadd.f32 %v899_v13, %v898_v14  ;;  %v5163_v14 = vld [vmem:[#allocation44_spill] sm:$0xff]  ;;  %v5164_v47 = vld [vmem:[#allocation45_spill] sm:$0xff] }
  0x7d   : > { %v3430_v39 = vadd.f32 %v825_v41, %v824_v51  ;;  %v865_v36 = vrot.slane %v864_v56, 2  ;;  %v884_v55 = vrot.slane %v883_v9, 4  ;;  %v846_v20 = vrot.slane %v845_v17, 1 }
  0x7e   : > { %v915_v48 = vadd.f32 %v914_v38, %v913_v19  ;;  %v918_v50 = vsel %vm784_vm2, %v5157_v52, 0.0  ;;  %v920_v62 = vsel %vm784_vm2, %v5158_v60, 0.0  ;;  %v922_v22 = vsel %vm784_vm2, %v5159_v15, 0.0  ;;  %v5167_v52 = vld [vmem:[#allocation48_spill] sm:$0xff]  ;;  %v5168_v60 = vld [vmem:[#allocation49_spill] sm:$0xff] }
  0x7f   : > { %v866_v12 = vadd.f32 %v865_v36, %v864_v56  ;;  %v885_v59 = vadd.f32 %v884_v55, %v883_v9  ;;  %v3440_v11 = vadd.f32 %v846_v20, %v845_v17  ;;  %v902_v51 = vadd.f32 %v901_v40, %v900_v21  ;;  %v5165_v36 = vld [vmem:[#allocation46_spill] sm:$0xff]  ;;  %v5166_v21 = vld [vmem:[#allocation47_spill] sm:$0xff] }
  0x80   : > { %v917_v1 = vadd.f32 %v916_v37, %v915_v48  ;;  %v924_v61 = vsel %vm784_vm2, %v5160_v5, 0.0  ;;  %v932_v4 = vsel %vm784_vm2, %v5161_v6, 0.0  ;;  %v933_v58 = vsel %vm784_vm2, %v5162_v53, 0.0 }
  0x81   : > { %v867_v13 = vrot.slane %v866_v12, 1  ;;  %v886_v7 = vrot.slane %v885_v59, 2  ;;  %v904_v41 = vadd.f32 %v903_v0, %v902_v51  ;;  %v934_v9 = vadd.f32 %v933_v58, %v932_v4  ;;  %v5171_v4 = vld [vmem:[#allocation52_spill] sm:$0xff]  ;;  %v5172_v58 = vld [vmem:[#allocation53_spill] sm:$0xff] }
  0x82   : > { %v919_v56 = vadd.f32 %v918_v50, %v917_v1  ;;  %v935_v17 = vsel %vm784_vm2, %v5163_v14, 0.0  ;;  %v937_v38 = vsel %vm784_vm2, %v5164_v47, 0.0  ;;  %v939_v55 = vsel %vm784_vm2, %v5165_v36, 0.0  ;;  %v5173_v47 = vld [vmem:[#allocation54_spill] sm:$0xff] }
  0x83   : > { %v3450_v19 = vadd.f32 %v867_v13, %v866_v12  ;;  %v887_v40 = vadd.f32 %v886_v7, %v885_v59  ;;  %v905_v3 = vrot.slane %v904_v41, 4  ;;  %v936_v20 = vadd.f32 %v935_v17, %v934_v9  ;;  %v5169_v59 = vld [vmem:[#allocation50_spill] sm:$0xff]  ;;  %v5170_v13 = vld [vmem:[#allocation51_spill] sm:$0xff] }
  0x84   : > { %v921_v37 = vadd.f32 %v920_v62, %v919_v56  ;;  %v941_v0 = vsel %vm784_vm2, %v5166_v21, 0.0  ;;  %v943_v50 = vsel %vm784_vm2, %v5167_v52, 0.0  ;;  %v945_v12 = vsel %vm784_vm2, %v5168_v60, 0.0  ;;  %v5177_v60 = vld [vmem:[#allocation58_spill] sm:$0xff] }
  0x85   : > { %v888_v48 = vrot.slane %v887_v40, 1  ;;  %v953_v15 = vsel %vm784_vm2, %v5169_v59, 0.0  ;;  %v906_v51 = vadd.f32 %v905_v3, %v904_v41  ;;  %v938_v5 = vadd.f32 %v937_v38, %v936_v20  ;;  %v5174_v38 = vld [vmem:[#allocation55_spill] sm:$0xff]  ;;  %v5175_v3 = vld [vmem:[#allocation56_spill] sm:$0xff] }
  0x86   : > { %v923_v1 = vadd.f32 %v922_v22, %v921_v37  ;;  %v954_v62 = vsel %vm784_vm2, %v5170_v13, 0.0  ;;  %v956_v53 = vsel %vm784_vm2, %v5171_v4, 0.0  ;;  %v958_v56 = vsel %vm784_vm2, %v5172_v58, 0.0  ;;  %v5176_v37 = vld [vmem:[#allocation57_spill] sm:$0xff]  ;;  %v5178_v59 = vld [vmem:[#allocation59_spill] sm:$0xff] }
  0x87   : > { %v3466_v7 = vadd.f32 %v888_v48, %v887_v40  ;;  %v955_v6 = vadd.f32 %v954_v62, %v953_v15  ;;  %v907_v9 = vrot.slane %v906_v51, 2  ;;  %v940_v17 = vadd.f32 %v939_v55, %v938_v5  ;;  %v5180_v13 = vld [vmem:[#allocation61_spill] sm:$0xff] }
  0x88   : > { %v925_v14 = vadd.f32 %v924_v61, %v923_v1  ;;  %v960_v41 = vsel %vm784_vm2, %v5173_v47, 0.0  ;;  %v962_v36 = vsel %vm784_vm2, %v5174_v38, 0.0  ;;  %v964_v40 = vsel %vm784_vm2, %v5175_v3, 0.0  ;;  %v5179_v1 = vld [vmem:[#allocation60_spill] sm:$0xff] }
  0x89   : > { %v957_v22 = vadd.f32 %v956_v53, %v955_v6  ;;  %v966_v20 = vsel %vm784_vm2, %v5176_v37, 0.0  ;;  %v908_v21 = vadd.f32 %v907_v9, %v906_v51  ;;  %v942_v52 = vadd.f32 %v941_v0, %v940_v17  ;;  %v5181_v9 = vld [vmem:[#allocation62_spill] sm:$0xff]  ;;  %v5182_v17 = vld [vmem:[#allocation63_spill] sm:$0xff] }
  0x8a   : > { %v926_v48 = vrot.slane %v925_v14, 4  ;;  %v974_v61 = vsel %vm784_vm2, %v5177_v60, 0.0  ;;  %v975_v15 = vsel %vm784_vm2, %v5178_v59, 0.0  ;;  %v977_v5 = vsel %vm784_vm2, %v5179_v1, 0.0  ;;  %v5183_v59 = vld [vmem:[#allocation64_spill] sm:$0xff] }
  0x8b   : > { %v959_v55 = vadd.f32 %v958_v56, %v957_v22  ;;  %v979_v62 = vsel %vm784_vm2, %v5180_v13, 0.0  ;;  %v909_v6 = vrot.slane %v908_v21, 1  ;;  %v944_v53 = vadd.f32 %v943_v50, %v942_v52 }
  0x8c   : > { %v927_v4 = vadd.f32 %v926_v48, %v925_v14  ;;  %v976_v58 = vadd.f32 %v975_v15, %v974_v61  ;;  %v981_v0 = vsel %vm784_vm2, %v3143_v27, 0.0  ;;  %v983_v56 = vsel %vm784_vm2, %v5181_v9, 0.0  ;;  %v5189_v9 = vld [vmem:[#allocation70_spill] sm:$0xff] }
  0x8d   : > { %v961_v51 = vadd.f32 %v960_v41, %v959_v55  ;;  %v985_v47 = vsel %vm784_vm2, %v5182_v17, 0.0  ;;  %v3494_v22 = vadd.f32 %v909_v6, %v908_v21  ;;  %v946_v3 = vadd.f32 %v945_v12, %v944_v53  ;;  %v5184_v41 = vld [vmem:[#allocation65_spill] sm:$0xff]  ;;  %v5185_v21 = vld [vmem:[#allocation66_spill] sm:$0xff]  ;;  %v5186_v12 = vld [vmem:[#allocation67_spill] sm:$0xff] }
  0x8e   : > { %v928_v38 = vrot.slane %v927_v4, 2  ;;  %v978_v37 = vadd.f32 %v977_v5, %v976_v58  ;;  %v987_v50 = vsel %vm784_vm2, %v5183_v59, 0.0  ;;  %v995_v14 = vsel %vm784_vm2, %v3159_v10, 0.0 }
  0x8f   : > { %v963_v60 = vadd.f32 %v962_v36, %v961_v51  ;;  %v996_v27 = vsel %vm784_vm2, %v5184_v41, 0.0  ;;  %v947_v52 = vrot.slane %v946_v3, 4  ;;  %v998_v1 = vsel %vm784_vm2, %v5185_v21, 0.0  ;;  %v5187_v51 = vld [vmem:[#allocation68_spill] sm:$0xff] }
  0x90   : > { %v929_v48 = vadd.f32 %v928_v38, %v927_v4  ;;  %v980_v61 = vadd.f32 %v979_v62, %v978_v37  ;;  %v997_v55 = vadd.f32 %v996_v27, %v995_v14  ;;  %v1000_v36 = vsel %vm784_vm2, %v5186_v12, 0.0  ;;  %v5188_v62 = vld [vmem:[#allocation69_spill] sm:$0xff]  ;;  %v5191_v14 = vld [vmem:[#allocation72_spill] sm:$0xff] }
  0x91   : > { %v965_v15 = vadd.f32 %v964_v40, %v963_v60  ;;  %v1002_v5 = vsel %vm784_vm2, %v3174_v18, 0.0  ;;  %v948_v6 = vadd.f32 %v947_v52, %v946_v3  ;;  %v1004_v4 = vsel %vm784_vm2, %v5187_v51, 0.0  ;;  %v5190_v3 = vld [vmem:[#allocation71_spill] sm:$0xff] }
  0x92   : > { %v930_v13 = vrot.slane %v929_v48, 1  ;;  %v982_v10 = vadd.f32 %v981_v0, %v980_v61  ;;  %v999_v53 = vadd.f32 %v998_v1, %v997_v55  ;;  %v1006_v40 = vsel %vm784_vm2, %v5188_v62, 0.0  ;;  %v5193_v1 = vld [vmem:[#allocation74_spill] sm:$0xff]  ;;  %v5194_v51 = vld [vmem:[#allocation75_spill] sm:$0xff] }
  0x93   : > { %v967_v58 = vadd.f32 %v966_v20, %v965_v15  ;;  %v1008_v17 = vsel %vm784_vm2, %v5189_v9, 0.0  ;;  %v949_v37 = vrot.slane %v948_v6, 2  ;;  %v1016_v0 = vsel %vm784_vm2, %v3189_v26, 0.0 }
  0x94   : > { %v3514_v38 = vadd.f32 %v930_v13, %v929_v48  ;;  %v984_v60 = vadd.f32 %v983_v56, %v982_v10  ;;  %v1001_v59 = vadd.f32 %v1000_v36, %v999_v53  ;;  %v1017_v20 = vsel %vm784_vm2, %v5190_v3, 0.0  ;;  %v5192_v48 = vld [vmem:[#allocation73_spill] sm:$0xff] }
  0x95   : > { %v968_v18 = vrot.slane %v967_v58, 4  ;;  %v1019_v41 = vsel %vm784_vm2, %v5191_v14, 0.0  ;;  %v950_v27 = vadd.f32 %v949_v37, %v948_v6  ;;  %v1018_v55 = vadd.f32 %v1017_v20, %v1016_v0  ;;  %v5198_v0 = vld [vmem:[#allocation79_spill] sm:$0xff] }
  0x96   : > { %v986_v52 = vadd.f32 %v985_v47, %v984_v60  ;;  %v1003_v61 = vadd.f32 %v1002_v5, %v1001_v59  ;;  %v1021_v21 = vsel %vm784_vm2, %v5192_v48, 0.0  ;;  %v1023_v56 = vsel %vm784_vm2, %v3204_v31, 0.0  ;;  %v5195_v5 = vld [vmem:[#allocation76_spill] sm:$0xff]  ;;  %v5196_v59 = vld [vmem:[#allocation77_spill] sm:$0xff] }
  0x97   : > { %v969_v15 = vadd.f32 %v968_v18, %v967_v58  ;;  %v1025_v26 = vsel %vm784_vm2, %v5193_v1, 0.0  ;;  %v951_v12 = vrot.slane %v950_v27, 1  ;;  %v1020_v10 = vadd.f32 %v1019_v41, %v1018_v55 }
  0x98   : > { %v988_v36 = vadd.f32 %v987_v50, %v986_v52  ;;  %v1005_v13 = vadd.f32 %v1004_v4, %v1003_v61  ;;  %v1027_v47 = vsel %vm784_vm2, %v5194_v51, 0.0  ;;  %v1029_v6 = vsel %vm784_vm2, %v5195_v5, 0.0  ;;  %v5197_v4 = vld [vmem:[#allocation78_spill] sm:$0xff] }
  0x99   : > { %v970_v53 = vrot.slane %v969_v15, 2  ;;  %v1037_v58 = vsel %vm784_vm2, %v3219_v42, 0.0  ;;  %v3534_v62 = vadd.f32 %v951_v12, %v950_v27  ;;  %v1022_v37 = vadd.f32 %v1021_v21, %v1020_v10  ;;  %v5199_v27 = vld [vmem:[#allocation80_spill] sm:$0xff] }
  0x9a   : > { %v989_v31 = vrot.slane %v988_v36, 4  ;;  %v1007_v9 = vadd.f32 %v1006_v40, %v1005_v13  ;;  %v1038_v50 = vsel %vm784_vm2, %v5196_v59, 0.0  ;;  %v1040_v18 = vsel %vm784_vm2, %v5197_v4, 0.0  ;;  %v5200_v40 = vld [vmem:[#allocation81_spill] sm:$0xff] }
  0x9b   : > { %v971_v60 = vadd.f32 %v970_v53, %v969_v15  ;;  %v1042_v3 = vsel %vm784_vm2, %v5198_v0, 0.0  ;;  %v1024_v41 = vadd.f32 %v1023_v56, %v1022_v37  ;;  %v1039_v52 = vadd.f32 %v1038_v50, %v1037_v58  ;;  %v5201_v15 = vld [vmem:[#allocation82_spill] sm:$0xff]  ;;  %v5203_v53 = vld [vmem:[#allocation84_spill] sm:$0xff]  ;;  %v5204_v59 = vld [vmem:[#allocation85_spill] sm:$0xff] }
  0x9c   : > { %v990_v20 = vadd.f32 %v989_v31, %v988_v36  ;;  %v1009_v14 = vadd.f32 %v1008_v17, %v1007_v9  ;;  %v1044_v61 = vsel %vm784_vm2, %v5199_v27, 0.0  ;;  %v1046_v55 = vsel %vm784_vm2, %v5200_v40, 0.0  ;;  %v5202_v36 = vld [vmem:[#allocation83_spill] sm:$0xff]  ;;  %v5205_v50 = vld [vmem:[#allocation86_spill] sm:$0xff] }
  0x9d   : > { %v972_v42 = vrot.slane %v971_v60, 1  ;;  %v1048_v48 = vsel %vm784_vm2, %v5201_v15, 0.0  ;;  %v1026_v12 = vadd.f32 %v1025_v26, %v1024_v41  ;;  %v1041_v13 = vadd.f32 %v1040_v18, %v1039_v52 }
  0x9e   : > { %v991_v21 = vrot.slane %v990_v20, 2  ;;  %v1010_v1 = vrot.slane %v1009_v14, 4  ;;  %v1050_v17 = vsel %vm784_vm2, %v5202_v36, 0.0  ;;  %v1058_v56 = vsel %vm784_vm2, %v3249_v54, 0.0 }
  0x9f   : > { %v3548_v10 = vadd.f32 %v972_v42, %v971_v60  ;;  %v1059_v51 = vsel %vm784_vm2, %v5203_v53, 0.0  ;;  %v1028_v31 = vadd.f32 %v1027_v47, %v1026_v12  ;;  %v1043_v9 = vadd.f32 %v1042_v3, %v1041_v13  ;;  %v5206_v3 = vld [vmem:[#allocation87_spill] sm:$0xff] }
  0xa0   : > { %v992_v5 = vadd.f32 %v991_v21, %v990_v20  ;;  %v1011_v58 = vadd.f32 %v1010_v1, %v1009_v14  ;;  %v1060_v37 = vadd.f32 %v1059_v51, %v1058_v56  ;;  %v1061_v26 = vsel %vm784_vm2, %v5204_v59, 0.0 }
  0xa1   : > { %v1063_v60 = vsel %vm784_vm2, %v5205_v50, 0.0  ;;  %v1065_v4 = vsel %vm784_vm2, %v3264_v63, 0.0  ;;  %v1030_v54 = vadd.f32 %v1029_v6, %v1028_v31  ;;  %v1045_v41 = vadd.f32 %v1044_v61, %v1043_v9 }
  0xa2   : > { %v993_v18 = vrot.slane %v992_v5, 1  ;;  %v1012_v0 = vrot.slane %v1011_v58, 2  ;;  %v1062_v52 = vadd.f32 %v1061_v26, %v1060_v37  ;;  %v1067_v20 = vsel %vm784_vm2, %v3267_v43, 0.0 }
  0xa3   : > { %v1069_v47 = vsel %vm784_vm2, %v3270_v23, 0.0  ;;  %v1071_v14 = vsel %vm784_vm2, %v5206_v3, 0.0  ;;  %v1031_v40 = vrot.slane %v1030_v54, 4  ;;  %v1047_v15 = vadd.f32 %v1046_v55, %v1045_v41 }
  0xa4   : > { %v3568_v42 = vadd.f32 %v993_v18, %v992_v5  ;;  %v1013_v27 = vadd.f32 %v1012_v0, %v1011_v58  ;;  %v1064_v63 = vadd.f32 %v1063_v60, %v1062_v52  ;;  %v1079_v6 = vsel %vm784_vm2, %v3279_v33, 0.0  ;;  %v5207_v52 = vld [vmem:[#allocation8_spill] sm:$0xff] }
  0xa5   : > { %v1080_v61 = vsel %vm784_vm2, %v3282_v8, 0.0  ;;  %v1082_v43 = vsel %vm784_vm2, %v3285_v24, 0.0  ;;  %v1032_v23 = vadd.f32 %v1031_v40, %v1030_v54  ;;  %v1049_v1 = vadd.f32 %v1048_v48, %v1047_v15 }
  0xa6   : > { %v1014_v21 = vrot.slane %v1013_v27, 1  ;;  %v1081_v12 = vadd.f32 %v1080_v61, %v1079_v6  ;;  %v1066_v13 = vadd.f32 %v1065_v4, %v1064_v63  ;;  %v1084_v36 = vsel %vm784_vm2, %v3288_v25, 0.0 }
  0xa7   : > { %v1086_v55 = vsel %vm784_vm2, %v3291_v29, 0.0  ;;  %v1088_v33 = vsel %vm784_vm2, %v3294_v34, 0.0  ;;  %v1033_v53 = vrot.slane %v1032_v23, 2  ;;  %v1051_v8 = vadd.f32 %v1050_v17, %v1049_v1 }
  0xa8   : > { %v1015_v56 = vadd.f32 %v1014_v21, %v1013_v27  ;;  %v1083_v51 = vadd.f32 %v1082_v43, %v1081_v12  ;;  %v1068_v5 = vadd.f32 %v1067_v20, %v1066_v13  ;;  %v1090_v24 = vsel %vm784_vm2, %v3297_v16, 0.0 }
  0xa9   : > { %v1092_v48 = vsel %vm784_vm2, %v3300_v35, 0.0  ;;  %v1100_v25 = vsel %vm784_vm2, %v3303_v46, 0.0  ;;  %v1034_v58 = vadd.f32 %v1033_v53, %v1032_v23  ;;  %v1052_v31 = vrot.slane %v1051_v8, 4 }
  0xaa   : > { %v1085_v29 = vadd.f32 %v1084_v36, %v1083_v51  ;;  %v1101_v34 = vsel %vm784_vm2, %v3306_v32, 0.0  ;;  %v1070_v9 = vadd.f32 %v1069_v47, %v1068_v5  ;;  %v1103_v17 = vsel %vm784_vm2, %v3309_v28, 0.0 }
  0xab   : > { %v1102_v37 = vadd.f32 %v1101_v34, %v1100_v25  ;;  %v1105_v16 = vsel %vm784_vm2, %v3312_v57, 0.0  ;;  %v1035_v59 = vrot.slane %v1034_v58, 1  ;;  %v1053_v26 = vadd.f32 %v1052_v31, %v1051_v8 }
  0xac   : > { %v1087_v35 = vadd.f32 %v1086_v55, %v1085_v29  ;;  %v1107_v46 = vsel %vm784_vm2, %v3315_v45, 0.0  ;;  %v1072_v50 = vadd.f32 %v1071_v14, %v1070_v9  ;;  %v1109_v4 = vsel %vm784_vm2, %v3318_v44, 0.0 }
  0xad   : > { %v1104_v60 = vadd.f32 %v1103_v17, %v1102_v37  ;;  %v1111_v32 = vsel %vm784_vm2, %v3321_v2, 0.0  ;;  %v1036_v18 = vadd.f32 %v1035_v59, %v1034_v58  ;;  %v1054_v0 = vrot.slane %v1053_v26, 2 }
  0xae   : > { %v1089_v28 = vadd.f32 %v1088_v33, %v1087_v35  ;;  %v1113_v57 = vsel %vm784_vm2, %v3324_v30, 0.0  ;;  %v1073_v54 = vrot.slane %v1072_v50, 4  ;;  %v1459_v20 = vadd.f32 %v5207_v52, %v3426_v49 }
  0xaf   : > { %v1106_v41 = vadd.f32 %v1105_v16, %v1104_v60  ;;  %v1460_v45 = vadd.f32 %v5207_v52, %v3430_v39  ;;  %v1055_v47 = vadd.f32 %v1054_v0, %v1053_v26  ;;  %v1461_v44 = vadd.f32 %v5207_v52, %v3440_v11 }
  0xb0   : > { %v1091_v3 = vadd.f32 %v1090_v24, %v1089_v28  ;;  %v1462_v2 = vadd.f32 %v5207_v52, %v3450_v19  ;;  %v1074_v14 = vadd.f32 %v1073_v54, %v1072_v50  ;;  %v1463_v30 = vadd.f32 %v5207_v52, %v3466_v7 }
  0xb1   : > { %v1108_v27 = vadd.f32 %v1107_v46, %v1106_v41  ;;  %v1464_v40 = vadd.f32 %v5207_v52, %v3494_v22  ;;  %v1056_v49 = vrot.slane %v1055_v47, 1  ;;  %v1465_v39 = vadd.f32 %v5207_v52, %v3514_v38 }
  0xb2   : > { %v1093_v15 = vadd.f32 %v1092_v48, %v1091_v3  ;;  %v1466_v63 = vadd.f32 %v5207_v52, %v3534_v62  ;;  %v1075_v11 = vrot.slane %v1074_v14, 2  ;;  %v1467_v19 = vadd.f32 %v5207_v52, %v3548_v10 }
  0xb3   : > { %v1110_v6 = vadd.f32 %v1109_v4, %v1108_v27  ;;  %v1468_v61 = vadd.f32 %v5207_v52, %v3568_v42  ;;  %v1057_v7 = vadd.f32 %v1056_v49, %v1055_v47  ;;  %v1469_v22 = vadd.f32 %v5207_v52, %v1015_v56 }
  0xb4   : > { %v1094_v43 = vrot.slane %v1093_v15, 4  ;;  %v1470_v21 = vadd.f32 %v5207_v52, %v1036_v18  ;;  %v1076_v23 = vadd.f32 %v1075_v11, %v1074_v14  ;;  %v3624_v38 = vmax.f32 %v1459_v20, 0.0 }
  0xb5   : > { %v1112_v1 = vadd.f32 %v1111_v32, %v1110_v6  ;;  %v3626_v12 = vmax.f32 %v1460_v45, 0.0  ;;  %v1471_v13 = vadd.f32 %v5207_v52, %v1057_v7  ;;  %v3629_v36 = vmax.f32 %v1461_v44, 0.0 }
  0xb6   : > { %5208 = vst [vmem:[#allocation10_spill] sm:$0xff] %v3624_v38  ;;  %v1095_v62 = vadd.f32 %v1094_v43, %v1093_v15  ;;  %v3631_v10 = vmax.f32 %v1462_v2, 0.0  ;;  %v1077_v42 = vrot.slane %v1076_v23, 1  ;;  %v3633_v33 = vmax.f32 %v1463_v30, 0.0 }
  0xb7   : > { %5209 = vst [vmem:[#allocation9_spill] sm:$0xff] %v3626_v12  ;;  %5210 = vst [vmem:[#allocation11_spill] sm:$0xff] %v3629_v36  ;;  %v1114_v55 = vadd.f32 %v1113_v57, %v1112_v1  ;;  %v3635_v56 = vmax.f32 %v1464_v40, 0.0  ;;  %v3637_v8 = vmax.f32 %v1465_v39, 0.0  ;;  %v3639_v51 = vmax.f32 %v1466_v63, 0.0 }
  0xb8   : > { %5211 = vst [vmem:[#allocation12_spill] sm:$0xff] %v3631_v10  ;;  %5212 = vst [vmem:[#allocation13_spill] sm:$0xff] %v3633_v33  ;;  %v1096_v53 = vrot.slane %v1095_v62, 2  ;;  %v3641_v5 = vmax.f32 %v1467_v19, 0.0  ;;  %v1078_v24 = vadd.f32 %v1077_v42, %v1076_v23  ;;  %v3643_v25 = vmax.f32 %v1468_v61, 0.0  ;;  %v394_v42 = vld [vmem:[%s2753_s10 + $0x410] sm:$0xff] }
  0xb9   : > { %5213 = vst [vmem:[#allocation14_spill] sm:$0xff] %v3635_v56  ;;  %5214 = vst [vmem:[#allocation15_spill] sm:$0xff] %v3637_v8  ;;  %v1115_v48 = vrot.slane %v1114_v55, 4  ;;  %v3645_v58 = vmax.f32 %v1469_v22, 0.0  ;;  %v3647_v29 = vmax.f32 %v1470_v21, 0.0  ;;  %v3649_v34 = vmax.f32 %v1471_v13, 0.0 }
  0xba   : > { %5215 = vst [vmem:[#allocation16_spill] sm:$0xff] %v3639_v51  ;;  %5216 = vst [vmem:[#allocation17_spill] sm:$0xff] %v3641_v5  ;;  %v1097_v31 = vadd.f32 %v1096_v53, %v1095_v62  ;;  %v1523_v9 = vpack.c.bf16 %v3624_v38, %v3624_v38  ;;  %v1472_v17 = vadd.f32 %v5207_v52, %v1078_v24  ;;  %v392_v62 = vld [vmem:[%s2753_s10 + $0x400] sm:$0xff]  ;;  %v393_v13 = vld [vmem:[%s2753_s10 + $0x408] sm:$0xff] }
  0xbb   : > { %5217 = vst [vmem:[#allocation18_spill] sm:$0xff] %v3643_v25  ;;  %5218 = vst [vmem:[#allocation19_spill] sm:$0xff] %v3645_v58  ;;  %v1116_v37 = vadd.f32 %v1115_v48, %v1114_v55  ;;  %v1524_v16 = vpack.c.bf16 %v3626_v12, %v3626_v12  ;;  %v1525_v59 = vpack.c.bf16 %v3629_v36, %v3629_v36  ;;  %v395_v24 = vld [vmem:[%s2753_s10 + $0x418] sm:$0xff]  ;;  %v396_v48 = vld [vmem:[%s2753_s10 + $0x420] sm:$0xff] }
  0xbc   : > { %5219 = vst [vmem:[#allocation20_spill] sm:$0xff] %v3647_v29  ;;  %5220 = vst [vmem:[#allocation21_spill] sm:$0xff] %v3649_v34  ;;  %v1098_v26 = vrot.slane %v1097_v31, 1  ;;  %v1526_v35 = vpack.c.bf16 %v3631_v10, %v3631_v10  ;;  %v1527_v46 = vpack.c.bf16 %v3633_v33, %v3633_v33  ;;  %v1528_v50 = vpack.c.bf16 %v3635_v56, %v3635_v56  ;;  %v436_v56 = vld [vmem:[%s2753_s10 + $0x560] sm:$0xff]  ;;  %v439_v10 = vld [vmem:[%s2753_s10 + $0x578] sm:$0xff] }
  0xbd   : > { %v1117_v60 = vrot.slane %v1116_v37, 2  ;;  %v3664_v4 = vmax.f32 %v1472_v17, 0.0  ;;  %v1529_v32 = vpack.c.bf16 %v3637_v8, %v3637_v8  ;;  %v1530_v18 = vpack.c.bf16 %v3639_v51, %v3639_v51  ;;  %v398_v17 = vld [vmem:[%s2753_s10 + $0x430] sm:$0xff]  ;;  %v435_v8 = vld [vmem:[%s2753_s10 + $0x558] sm:$0xff]  ;;  %v440_v36 = vld [vmem:[%s2753_s10 + $0x580] sm:$0xff] }
  0xbe   : > { %v1099_v0 = vadd.f32 %v1098_v26, %v1097_v31  ;;  %v1531_v28 = vpack.c.bf16 %v3641_v5, %v3641_v5  ;;  %v1532_v57 = vpack.c.bf16 %v3643_v25, %v3643_v25  ;;  %v1533_v54 = vpack.c.bf16 %v3645_v58, %v3645_v58  ;;  %v397_v31 = vld [vmem:[%s2753_s10 + $0x428] sm:$0xff]  ;;  %v431_v25 = vld [vmem:[%s2753_s10 + $0x538] sm:$0xff]  ;;  %v434_v51 = vld [vmem:[%s2753_s10 + $0x550] sm:$0xff] }
  0xbf   : > { %5221 = vst [vmem:[#allocation22_spill] sm:$0xff] %v3664_v4  ;;  %v1118_v41 = vadd.f32 %v1117_v60, %v1116_v37  ;;  %v1534_v20 = vpack.c.bf16 %v3647_v29, %v3647_v29  ;;  %v1535_v45 = vpack.c.bf16 %v3649_v34, %v3649_v34  ;;  %v1536_v47 = vpack.c.bf16 %v3664_v4, %v3664_v4  ;;  %v403_v60 = vld [vmem:[%s2753_s10 + $0x458] sm:$0xff]  ;;  %v426_v34 = vld [vmem:[%s2753_s10 + $0x510] sm:$0xff]  ;;  %v429_v29 = vld [vmem:[%s2753_s10 + $0x528] sm:$0xff] }
  0xc0   : > { %v1473_v3 = vadd.f32 %v5207_v52, %v1099_v0  ;;  %v1592_v44 = vunpack.c.l.b16 %v1523_v9  ;;  %v1593_v2 = vunpack.c.l.b16 %v1524_v16  ;;  %v1594_v14 = vunpack.c.l.b16 %v1525_v59  ;;  %v399_v16 = vld [vmem:[%s2753_s10 + $0x438] sm:$0xff]  ;;  %v400_v59 = vld [vmem:[%s2753_s10 + $0x440] sm:$0xff]  ;;  %v3718_v0 = vld [vmem:[%s5006_s1 + $0x8] sm:$0xff] }
  0xc1   : > { %v1119_v27 = vrot.slane %v1118_v41, 1  ;;  %v1595_v30 = vunpack.c.l.b16 %v1526_v35  ;;  %v1596_v40 = vunpack.c.l.b16 %v1527_v46  ;;  %v1597_v49 = vunpack.c.l.b16 %v1528_v50  ;;  %v401_v46 = vld [vmem:[%s2753_s10 + $0x448] sm:$0xff]  ;;  %v402_v50 = vld [vmem:[%s2753_s10 + $0x450] sm:$0xff] }
  0xc2   : > { %v3683_v15 = vmax.f32 %v1473_v3, 0.0  ;;  %v1598_v39 = vunpack.c.l.b16 %v1529_v32  ;;  %v1599_v63 = vunpack.c.l.b16 %v1530_v18  ;;  %v1600_v11 = vunpack.c.l.b16 %v1531_v28  ;;  %v3710_v32 = vld [vmem:[%s5006_s1] sm:$0xff]  ;;  %v3733_v3 = vld [vmem:[%s5006_s1 + $0x10] sm:$0xff]  ;;  %v441_v12 = vld [vmem:[%s2753_s10 + $0x588] sm:$0xff] }
  0xc3   : > { %v1120_v6 = vadd.f32 %v1119_v27, %v1118_v41  ;;  %v1601_v19 = vunpack.c.l.b16 %v1532_v57  ;;  %v1602_v61 = vunpack.c.l.b16 %v1533_v54  ;;  %v1603_v7 = vunpack.c.l.b16 %v1534_v20  ;;  %v404_v20 = vld [vmem:[%s2753_s10 + $0x460] sm:$0xff]  ;;  %v407_v27 = vld [vmem:[%s2753_s10 + $0x478] sm:$0xff]  ;;  %v442_v38 = vld [vmem:[%s2753_s10 + $0x590] sm:$0xff] }
  0xc4   : > { %5222 = vst [vmem:[#allocation23_spill] sm:$0xff] %v3683_v15  ;;  %v1537_v43 = vpack.c.bf16 %v3683_v15, %v3683_v15  ;;  %v1604_v22 = vunpack.c.l.b16 %v1535_v45  ;;  %v1605_v21 = vunpack.c.l.b16 %v1536_v47  ;;  %v1625_v1 = vsel %vm1624_vm3, %v1593_v2, %v1592_v44  ;;  %v405_v45 = vld [vmem:[%s2753_s10 + $0x468] sm:$0xff]  ;;  %v406_v47 = vld [vmem:[%s2753_s10 + $0x470] sm:$0xff] }
  0xc5   : > { %v1474_v23 = vadd.f32 %v5207_v52, %v1120_v6  ;;  %v1627_v53 = vsel %vm1626_vm4, %v1594_v14, %v1625_v1  ;;  %v1638_v35 = vsel %vm1624_vm3, %v1601_v19, %v1600_v11  ;;  %v3713_v18 = vmul.f32 %v3710_v32, %v392_v62  ;;  %v412_v1 = vld [vmem:[%s2753_s10 + $0x4a0] sm:$0xff]  ;;  %v413_v62 = vld [vmem:[%s2753_s10 + $0x4a8] sm:$0xff]  ;;  %v443_v52 = vld [vmem:[%s2753_s10 + $0x598] sm:$0xff] }
  0xc6   : > { %v1606_v55 = vunpack.c.l.b16 %v1537_v43  ;;  %v1629_v37 = vsel %vm1628_vm5, %v1595_v30, %v1627_v53  ;;  %v3721_v28 = vmul.f32 %v3718_v0, %v393_v13  ;;  %v1639_v41 = vsel %vm1626_vm4, %v1602_v61, %v1638_v35  ;;  %v408_v30 = vld [vmem:[%s2753_s10 + $0x480] sm:$0xff]  ;;  %v410_v43 = vld [vmem:[%s2753_s10 + $0x490] sm:$0xff]  ;;  %v3768_v13 = vld [vmem:[%s5006_s1 + $0x28] sm:$0xff] }
  0xc7   : > { %v3696_v9 = vmax.f32 %v1474_v23, 0.0  ;;  %v1631_v26 = vsel %vm1630_vm6, %v1596_v40, %v1629_v37  ;;  %v3736_v44 = vmul.f32 %v3733_v3, %v394_v42  ;;  %v1640_v14 = vsel %vm1628_vm5, %v1603_v7, %v1639_v41  ;;  %v409_v40 = vld [vmem:[%s2753_s10 + $0x488] sm:$0xff]  ;;  %v411_v23 = vld [vmem:[%s2753_s10 + $0x498] sm:$0xff]  ;;  %v414_v53 = vld [vmem:[%s2753_s10 + $0x4b0] sm:$0xff] }
  0xc8   : > { %v1633_v54 = vsel %vm1632_vm7, %v1597_v49, %v1631_v26  ;;  %v3746_v49 = vld [vmem:[%s5006_s1 + $0x18] sm:$0xff]  ;;  %v1641_v7 = vsel %vm1630_vm6, %v1604_v22, %v1640_v14  ;;  %v3771_v42 = vmul.f32 %v3768_v13, %v397_v31  ;;  %v3781_v37 = vld [vmem:[%s5006_s1 + $0x30] sm:$0xff]  ;;  %v3795_v35 = vmul.f32 %v3710_v32, %v400_v59  ;;  %v425_v15 = vld [vmem:[%s2753_s10 + $0x508] sm:$0xff] }
  0xc9   : > { %5223 = vst [vmem:[#allocation24_spill] sm:$0xff] %v3696_v9  ;;  %v1538_v57 = vpack.c.bf16 %v3696_v9, %v3696_v9  ;;  %v1635_v2 = vsel %vm1634_vm8, %v1598_v39, %v1633_v54  ;;  %v3749_v11 = vmul.f32 %v3746_v49, %v395_v24  ;;  %v3754_v39 = vld [vmem:[%s5006_s1 + $0x20] sm:$0xff]  ;;  %v415_v22 = vld [vmem:[%s2753_s10 + $0x4b8] sm:$0xff]  ;;  %v3784_v26 = vmul.f32 %v3781_v37, %v398_v17  ;;  %v418_v54 = vld [vmem:[%s2753_s10 + $0x4d0] sm:$0xff] }
  0xca   : > { %v3757_v6 = vmul.f32 %v3754_v39, %v396_v48  ;;  %v1637_v61 = vsel %vm1636_vm9, %v1599_v63, %v1635_v2  ;;  %v1642_v63 = vsel %vm1632_vm7, %v1605_v21, %v1641_v7  ;;  %v416_v24 = vld [vmem:[%s2753_s10 + $0x4c0] sm:$0xff]  ;;  %v417_v48 = vld [vmem:[%s2753_s10 + $0x4c8] sm:$0xff]  ;;  %v3789_v21 = vld [vmem:[%s5006_s1 + $0x38] sm:$0xff]  ;;  %v3803_v14 = vmul.f32 %v3718_v0, %v401_v46 }
  0xcb   : > { %v1607_v19 = vunpack.c.l.b16 %v1538_v57  ;;  %v3792_v31 = vmul.f32 %v3789_v21, %v399_v16  ;;  %v1643_v57 = vsel %vm1634_vm8, %v1606_v55, %v1642_v63  ;;  %v419_v41 = vld [vmem:[%s2753_s10 + $0x4d8] sm:$0xff]  ;;  %v420_v17 = vld [vmem:[%s2753_s10 + $0x4e0] sm:$0xff]  ;;  %v421_v2 = vld [vmem:[%s2753_s10 + $0x4e8] sm:$0xff]  ;;  %v3806_v7 = vmul.f32 %v3733_v3, %v402_v50 }
  0xcc   : > { %v3809_v16 = vmul.f32 %v3746_v49, %v403_v60  ;;  %v422_v55 = vld [vmem:[%s2753_s10 + $0x4f0] sm:$0xff]  ;;  %v423_v63 = vld [vmem:[%s2753_s10 + $0x4f8] sm:$0xff]  ;;  %v424_v9 = vld [vmem:[%s2753_s10 + $0x500] sm:$0xff]  ;;  %v3817_v4 = vmul.f32 %v3754_v39, %v404_v20  ;;  %v3820_v46 = vmul.f32 %v3768_v13, %v405_v45  ;;  %v3823_v50 = vmul.f32 %v3781_v37, %v406_v47 }
  0xcd   : > { %v1644_v59 = vsel %vm1636_vm9, %v1607_v19, %v1643_v57  ;;  %v427_v19 = vld [vmem:[%s2753_s10 + $0x518] sm:$0xff]  ;;  %v428_v57 = vld [vmem:[%s2753_s10 + $0x520] sm:$0xff]  ;;  %v3830_v58 = vmul.f32 %v3789_v21, %v407_v27  ;;  %v3833_v20 = vmul.f32 %v3710_v32, %v408_v30  ;;  %v3836_v45 = vmul.f32 %v3718_v0, %v409_v40  ;;  %v430_v47 = vld [vmem:[%s2753_s10 + $0x530] sm:$0xff] }
  0xce   : > { %v1659_v60 = vpack.c.b16 %v1644_v59, %v1637_v61  ;;  %v432_v61 = vld [vmem:[%s2753_s10 + $0x540] sm:$0xff]  ;;  %v433_v59 = vld [vmem:[%s2753_s10 + $0x548] sm:$0xff]  ;;  %v3843_v5 = vmul.f32 %v3733_v3, %v410_v43  ;;  %v3846_v27 = vmul.f32 %v3746_v49, %v411_v23  ;;  %v3849_v30 = vmul.f32 %v3754_v39, %v412_v1 }
  0xcf   : > { %v3852_v40 = vmul.f32 %v3768_v13, %v413_v62  ;;  %v437_v43 = vld [vmem:[%s2753_s10 + $0x568] sm:$0xff]  ;;  %v3860_v33 = vmul.f32 %v3781_v37, %v414_v53  ;;  %v3863_v23 = vmul.f32 %v3789_v21, %v415_v22  ;;  %v3866_v1 = vmul.f32 %v3710_v32, %v416_v24 }
  0xd0   : > { %2477 = vmatmul.mubr.msk.bf16.vlgmr.msra.gmra.mrb[0].mxu0 %vm784_vm2, %v1659_v60  ;;  %v3869_v62 = vmul.f32 %v3718_v0, %v417_v48  ;;  %v438_v60 = vld [vmem:[%s2753_s10 + $0x570] sm:$0xff]  ;;  %v3876_v53 = vmul.f32 %v3733_v3, %v418_v54  ;;  %v3879_v22 = vmul.f32 %v3746_v49, %v419_v41  ;;  %v3882_v24 = vmul.f32 %v3754_v39, %v420_v17 }
  0xd1   : > { %5224 = vst [vmem:[#allocation25_spill] sm:$0xff] %v3863_v23  ;;  %5225 = vst [vmem:[#allocation26_spill] sm:$0xff] %v3866_v1  ;;  %v3885_v48 = vmul.f32 %v3768_v13, %v421_v2  ;;  %v445_v1 = vld [vmem:[%s2753_s10 + $0x5a8] sm:$0xff]  ;;  %v3892_v54 = vmul.f32 %v3781_v37, %v422_v55  ;;  %v3895_v41 = vmul.f32 %v3789_v21, %v423_v63 }
  0xd2   : > { %5226 = vst [vmem:[#allocation27_spill] sm:$0xff] %v3869_v62  ;;  %5227 = vst [vmem:[#allocation28_spill] sm:$0xff] %v3876_v53  ;;  %v444_v62 = vld [vmem:[%s2753_s10 + $0x5a0] sm:$0xff]  ;;  %v3898_v17 = vmul.f32 %v3710_v32, %v424_v9  ;;  %v3901_v2 = vmul.f32 %v3718_v0, %v425_v15  ;;  %v449_v53 = vld [vmem:[%s2753_s10 + $0x5c8] sm:$0xff]  ;;  %v3908_v55 = vmul.f32 %v3733_v3, %v426_v34 }
  0xd3   : > { %5228 = vst [vmem:[#allocation29_spill] sm:$0xff] %v3879_v22  ;;  %5229 = vst [vmem:[#allocation30_spill] sm:$0xff] %v3882_v24  ;;  %v447_v24 = vld [vmem:[%s2753_s10 + $0x5b8] sm:$0xff]  ;;  %v448_v22 = vld [vmem:[%s2753_s10 + $0x5c0] sm:$0xff]  ;;  %v3911_v63 = vmul.f32 %v3746_v49, %v427_v19  ;;  %v3914_v9 = vmul.f32 %v3754_v39, %v428_v57  ;;  %v3917_v15 = vmul.f32 %v3768_v13, %v429_v29 }
  0xd4   : > { %5230 = vst [vmem:[#allocation31_spill] sm:$0xff] %v3885_v48  ;;  %5231 = vst [vmem:[#allocation32_spill] sm:$0xff] %v3892_v54  ;;  %v446_v48 = vld [vmem:[%s2753_s10 + $0x5b0] sm:$0xff]  ;;  %v453_v54 = vld [vmem:[%s2753_s10 + $0x5e8] sm:$0xff]  ;;  %v3924_v34 = vmul.f32 %v3781_v37, %v430_v47  ;;  %v3927_v19 = vmul.f32 %v3789_v21, %v431_v25  ;;  %v3930_v57 = vmul.f32 %v3710_v32, %v432_v61 }
  0xd5   : > { %5232 = vst [vmem:[#allocation33_spill] sm:$0xff] %v3895_v41  ;;  %5233 = vst [vmem:[#allocation34_spill] sm:$0xff] %v3898_v17  ;;  %v451_v17 = vld [vmem:[%s2753_s10 + $0x5d8] sm:$0xff]  ;;  %v452_v41 = vld [vmem:[%s2753_s10 + $0x5e0] sm:$0xff]  ;;  %v3933_v29 = vmul.f32 %v3718_v0, %v433_v59  ;;  %v3940_v47 = vmul.f32 %v3733_v3, %v434_v51  ;;  %v3943_v25 = vmul.f32 %v3746_v49, %v435_v8 }
  0xd6   : > { %5234 = vst [vmem:[#allocation35_spill] sm:$0xff] %v3901_v2  ;;  %5235 = vst [vmem:[#allocation36_spill] sm:$0xff] %v3908_v55  ;;  %v450_v2 = vld [vmem:[%s2753_s10 + $0x5d0] sm:$0xff]  ;;  %v457_v55 = vld [vmem:[%s2753_s10 + $0x608] sm:$0xff]  ;;  %v3946_v61 = vmul.f32 %v3754_v39, %v436_v56  ;;  %v3949_v59 = vmul.f32 %v3768_v13, %v437_v43  ;;  %v3956_v51 = vmul.f32 %v3781_v37, %v438_v60 }
  0xd7   : > { %5236 = vst [vmem:[#allocation37_spill] sm:$0xff] %v3911_v63  ;;  %5237 = vst [vmem:[#allocation38_spill] sm:$0xff] %v3914_v9  ;;  %v455_v9 = vld [vmem:[%s2753_s10 + $0x5f8] sm:$0xff]  ;;  %v456_v63 = vld [vmem:[%s2753_s10 + $0x600] sm:$0xff]  ;;  %v3959_v8 = vmul.f32 %v3789_v21, %v439_v10  ;;  %v3962_v56 = vmul.f32 %v3710_v32, %v440_v36  ;;  %v3965_v43 = vmul.f32 %v3718_v0, %v441_v12 }
  0xd8   : > { %5238 = vst [vmem:[#allocation39_spill] sm:$0xff] %v3917_v15  ;;  %5239 = vst [vmem:[#allocation40_spill] sm:$0xff] %v3924_v34  ;;  %v454_v15 = vld [vmem:[%s2753_s10 + $0x5f0] sm:$0xff]  ;;  %v461_v34 = vld [vmem:[%s2753_s10 + $0x628] sm:$0xff]  ;;  %v3972_v60 = vmul.f32 %v3733_v3, %v442_v38  ;;  %v3975_v10 = vmul.f32 %v3746_v49, %v443_v52  ;;  %v3978_v36 = vmul.f32 %v3754_v39, %v444_v62 }
  0xd9   : > { %5240 = vst [vmem:[#allocation41_spill] sm:$0xff] %v3927_v19  ;;  %5241 = vst [vmem:[#allocation42_spill] sm:$0xff] %v3930_v57  ;;  %v459_v57 = vld [vmem:[%s2753_s10 + $0x618] sm:$0xff]  ;;  %v460_v19 = vld [vmem:[%s2753_s10 + $0x620] sm:$0xff]  ;;  %v3981_v12 = vmul.f32 %v3768_v13, %v445_v1  ;;  %v3988_v38 = vmul.f32 %v3781_v37, %v446_v48  ;;  %v3991_v52 = vmul.f32 %v3789_v21, %v447_v24 }
  0xda   : > { %5242 = vst [vmem:[#allocation43_spill] sm:$0xff] %v3933_v29  ;;  %5243 = vst [vmem:[#allocation44_spill] sm:$0xff] %v3940_v47  ;;  %v458_v29 = vld [vmem:[%s2753_s10 + $0x610] sm:$0xff]  ;;  %v465_v47 = vld [vmem:[%s2753_s10 + $0x648] sm:$0xff]  ;;  %v3994_v62 = vmul.f32 %v3710_v32, %v448_v22  ;;  %v3997_v1 = vmul.f32 %v3718_v0, %v449_v53  ;;  %v4004_v48 = vmul.f32 %v3733_v3, %v450_v2 }
  0xdb   : > { %5244 = vst [vmem:[#allocation45_spill] sm:$0xff] %v3943_v25  ;;  %5245 = vst [vmem:[#allocation46_spill] sm:$0xff] %v3946_v61  ;;  %v463_v61 = vld [vmem:[%s2753_s10 + $0x638] sm:$0xff]  ;;  %v464_v25 = vld [vmem:[%s2753_s10 + $0x640] sm:$0xff]  ;;  %v4007_v24 = vmul.f32 %v3746_v49, %v451_v17  ;;  %v4010_v22 = vmul.f32 %v3754_v39, %v452_v41  ;;  %v4013_v53 = vmul.f32 %v3768_v13, %v453_v54 }
  0xdc   : > { %5246 = vst [vmem:[#allocation47_spill] sm:$0xff] %v3949_v59  ;;  %5247 = vst [vmem:[#allocation48_spill] sm:$0xff] %v3956_v51  ;;  %v462_v59 = vld [vmem:[%s2753_s10 + $0x630] sm:$0xff]  ;;  %v469_v51 = vld [vmem:[%s2753_s10 + $0x668] sm:$0xff]  ;;  %v4020_v2 = vmul.f32 %v3781_v37, %v454_v15  ;;  %v4023_v17 = vmul.f32 %v3789_v21, %v455_v9  ;;  %v4026_v41 = vmul.f32 %v3710_v32, %v456_v63 }
  0xdd   : > { %5248 = vst [vmem:[#allocation49_spill] sm:$0xff] %v3959_v8  ;;  %5249 = vst [vmem:[#allocation50_spill] sm:$0xff] %v3962_v56  ;;  %v467_v56 = vld [vmem:[%s2753_s10 + $0x658] sm:$0xff]  ;;  %v468_v8 = vld [vmem:[%s2753_s10 + $0x660] sm:$0xff]  ;;  %v4029_v54 = vmul.f32 %v3718_v0, %v457_v55  ;;  %v4036_v15 = vmul.f32 %v3733_v3, %v458_v29  ;;  %v4039_v9 = vmul.f32 %v3746_v49, %v459_v57 }
  0xde   : > { %5250 = vst [vmem:[#allocation51_spill] sm:$0xff] %v3965_v43  ;;  %5251 = vst [vmem:[#allocation52_spill] sm:$0xff] %v3972_v60  ;;  %v466_v43 = vld [vmem:[%s2753_s10 + $0x650] sm:$0xff]  ;;  %v473_v60 = vld [vmem:[%s2753_s10 + $0x688] sm:$0xff]  ;;  %v4042_v63 = vmul.f32 %v3754_v39, %v460_v19  ;;  %v4045_v55 = vmul.f32 %v3768_v13, %v461_v34  ;;  %v4052_v29 = vmul.f32 %v3781_v37, %v462_v59 }
  0xdf   : > { %5252 = vst [vmem:[#allocation53_spill] sm:$0xff] %v3975_v10  ;;  %5253 = vst [vmem:[#allocation54_spill] sm:$0xff] %v3978_v36  ;;  %v471_v36 = vld [vmem:[%s2753_s10 + $0x678] sm:$0xff]  ;;  %v472_v10 = vld [vmem:[%s2753_s10 + $0x680] sm:$0xff]  ;;  %v4055_v57 = vmul.f32 %v3789_v21, %v463_v61  ;;  %v4058_v19 = vmul.f32 %v3710_v32, %v464_v25  ;;  %v4061_v34 = vmul.f32 %v3718_v0, %v465_v47 }
  0xe0   : > { %5254 = vst [vmem:[#allocation55_spill] sm:$0xff] %v3981_v12  ;;  %5255 = vst [vmem:[#allocation56_spill] sm:$0xff] %v3988_v38  ;;  %v470_v12 = vld [vmem:[%s2753_s10 + $0x670] sm:$0xff]  ;;  %v477_v38 = vld [vmem:[%s2753_s10 + $0x6a8] sm:$0xff]  ;;  %v4068_v23 = vmul.f32 %v3733_v3, %v466_v43  ;;  %v4071_v59 = vmul.f32 %v3746_v49, %v467_v56  ;;  %v4074_v61 = vmul.f32 %v3754_v39, %v468_v8 }
  0xe1   : > { %5256 = vst [vmem:[#allocation57_spill] sm:$0xff] %v3991_v52  ;;  %5257 = vst [vmem:[#allocation58_spill] sm:$0xff] %v3994_v62  ;;  %v475_v62 = vld [vmem:[%s2753_s10 + $0x698] sm:$0xff]  ;;  %v476_v52 = vld [vmem:[%s2753_s10 + $0x6a0] sm:$0xff]  ;;  %v4077_v25 = vmul.f32 %v3768_v13, %v469_v51  ;;  %v4087_v43 = vmul.f32 %v3789_v21, %v471_v36  ;;  %v4090_v56 = vmul.f32 %v3710_v32, %v472_v10 }
  0xe2   : > { %5258 = vst [vmem:[#allocation59_spill] sm:$0xff] %v3997_v1  ;;  %5259 = vst [vmem:[#allocation60_spill] sm:$0xff] %v4004_v48  ;;  %v474_v1 = vld [vmem:[%s2753_s10 + $0x690] sm:$0xff]  ;;  %v481_v48 = vld [vmem:[%s2753_s10 + $0x6c8] sm:$0xff]  ;;  %v4093_v51 = vmul.f32 %v3718_v0, %v473_v60  ;;  %v4105_v36 = vmul.f32 %v3754_v39, %v476_v52  ;;  %v4108_v10 = vmul.f32 %v3768_v13, %v477_v38 }
  0xe3   : > { %5260 = vst [vmem:[#allocation61_spill] sm:$0xff] %v4007_v24  ;;  %5261 = vst [vmem:[#allocation62_spill] sm:$0xff] %v4010_v22  ;;  %v479_v22 = vld [vmem:[%s2753_s10 + $0x6b8] sm:$0xff]  ;;  %v480_v24 = vld [vmem:[%s2753_s10 + $0x6c0] sm:$0xff]  ;;  %v4123_v52 = vmul.f32 %v3718_v0, %v481_v48 }
  0xe4   : > { %5262 = vst [vmem:[#allocation63_spill] sm:$0xff] %v4013_v53  ;;  %5263 = vst [vmem:[#allocation64_spill] sm:$0xff] %v4020_v2  ;;  %v478_v53 = vld [vmem:[%s2753_s10 + $0x6b0] sm:$0xff]  ;;  %v485_v2 = vld [vmem:[%s2753_s10 + $0x6e8] sm:$0xff] }
  0xe5   : > { %5264 = vst [vmem:[#allocation65_spill] sm:$0xff] %v4023_v17  ;;  %5265 = vst [vmem:[#allocation66_spill] sm:$0xff] %v4026_v41  ;;  %v483_v41 = vld [vmem:[%s2753_s10 + $0x6d8] sm:$0xff]  ;;  %v484_v17 = vld [vmem:[%s2753_s10 + $0x6e0] sm:$0xff] }
  0xe6   : > { %5266 = vst [vmem:[#allocation67_spill] sm:$0xff] %v4029_v54  ;;  %5267 = vst [vmem:[#allocation68_spill] sm:$0xff] %v4036_v15  ;;  %v482_v54 = vld [vmem:[%s2753_s10 + $0x6d0] sm:$0xff]  ;;  %v489_v15 = vld [vmem:[%s2753_s10 + $0x708] sm:$0xff] }
  0xe7   : > { %5268 = vst [vmem:[#allocation69_spill] sm:$0xff] %v4039_v9  ;;  %5269 = vst [vmem:[#allocation70_spill] sm:$0xff] %v4042_v63  ;;  %v487_v63 = vld [vmem:[%s2753_s10 + $0x6f8] sm:$0xff]  ;;  %v488_v9 = vld [vmem:[%s2753_s10 + $0x700] sm:$0xff] }
  0xe8   : > { %5270 = vst [vmem:[#allocation71_spill] sm:$0xff] %v4045_v55  ;;  %5271 = vst [vmem:[#allocation72_spill] sm:$0xff] %v4052_v29  ;;  %v486_v55 = vld [vmem:[%s2753_s10 + $0x6f0] sm:$0xff]  ;;  %v4084_v29 = vmul.f32 %v3781_v37, %v470_v12  ;;  %v4102_v12 = vmul.f32 %v3746_v49, %v475_v62  ;;  %v497_v60 = vld [vmem:[%s2753_s10 + $0x748] sm:$0xff]  ;;  %v4120_v62 = vmul.f32 %v3710_v32, %v480_v24 }
  0xe9   : > { %5272 = vst [vmem:[#allocation73_spill] sm:$0xff] %v4055_v57  ;;  %5273 = vst [vmem:[#allocation74_spill] sm:$0xff] %v4058_v19  ;;  %v490_v47 = vld [vmem:[%s2753_s10 + $0x710] sm:$0xff]  ;;  %v492_v19 = vld [vmem:[%s2753_s10 + $0x720] sm:$0xff]  ;;  %v4138_v24 = vmul.f32 %v3768_v13, %v485_v2 }
  0xea   : > { %5274 = vst [vmem:[#allocation75_spill] sm:$0xff] %v4061_v34  ;;  %5275 = vst [vmem:[#allocation76_spill] sm:$0xff] %v4071_v59  ;;  %v491_v34 = vld [vmem:[%s2753_s10 + $0x718] sm:$0xff]  ;;  %v493_v57 = vld [vmem:[%s2753_s10 + $0x728] sm:$0xff]  ;;  %v4099_v59 = vmul.f32 %v3733_v3, %v474_v1  ;;  %v4117_v1 = vmul.f32 %v3789_v21, %v479_v22  ;;  %v4135_v22 = vmul.f32 %v3754_v39, %v484_v17 }
  0xeb   : > { %5276 = vst [vmem:[#allocation77_spill] sm:$0xff] %v4074_v61  ;;  %5277 = vst [vmem:[#allocation78_spill] sm:$0xff] %v4077_v25  ;;  %v494_v8 = vld [vmem:[%s2753_s10 + $0x730] sm:$0xff]  ;;  %v495_v25 = vld [vmem:[%s2753_s10 + $0x738] sm:$0xff]  ;;  %v4153_v17 = vmul.f32 %v3718_v0, %v489_v15 }
  0xec   : > { %5278 = vst [vmem:[#allocation79_spill] sm:$0xff] %v4087_v43  ;;  %5279 = vst [vmem:[#allocation80_spill] sm:$0xff] %v4090_v56  ;;  %v496_v61 = vld [vmem:[%s2753_s10 + $0x740] sm:$0xff]  ;;  %v499_v56 = vld [vmem:[%s2753_s10 + $0x758] sm:$0xff]  ;;  %v4114_v43 = vmul.f32 %v3781_v37, %v478_v53  ;;  %v4132_v53 = vmul.f32 %v3746_v49, %v483_v41  ;;  %v4150_v41 = vmul.f32 %v3710_v32, %v488_v9 }
  0xed   : > { %5280 = vst [vmem:[#allocation81_spill] sm:$0xff] %v4093_v51  ;;  %5281 = vst [vmem:[#allocation82_spill] sm:$0xff] %v4102_v12  ;;  %v498_v51 = vld [vmem:[%s2753_s10 + $0x750] sm:$0xff]  ;;  %v500_v38 = vld [vmem:[%s2753_s10 + $0x760] sm:$0xff]  ;;  %v4129_v12 = vmul.f32 %v3733_v3, %v482_v54  ;;  %v4147_v54 = vmul.f32 %v3789_v21, %v487_v63  ;;  %v4165_v63 = vmul.f32 %v3754_v39, %v492_v19 }
  0xee   : > { %5282 = vst [vmem:[#allocation83_spill] sm:$0xff] %v4105_v36  ;;  %5283 = vst [vmem:[#allocation84_spill] sm:$0xff] %v4108_v10  ;;  %v501_v10 = vld [vmem:[%s2753_s10 + $0x768] sm:$0xff]  ;;  %v502_v36 = vld [vmem:[%s2753_s10 + $0x770] sm:$0xff]  ;;  %v4168_v9 = vmul.f32 %v3768_v13, %v493_v57  ;;  %v4183_v19 = vmul.f32 %v3718_v0, %v497_v60 }
  0xef   : > { %5284 = vst [vmem:[#allocation85_spill] sm:$0xff] %v4117_v1  ;;  %5285 = vst [vmem:[#allocation86_spill] sm:$0xff] %v4120_v62  ;;  %v503_v48 = vld [vmem:[%s2753_s10 + $0x778] sm:$0xff]  ;;  %v505_v62 = vld [vmem:[%s2753_s10 + $0x788] sm:$0xff]  ;;  %v4144_v1 = vmul.f32 %v3781_v37, %v486_v55  ;;  %v4162_v55 = vmul.f32 %v3746_v49, %v491_v34  ;;  %v4180_v34 = vmul.f32 %v3710_v32, %v496_v61 }
  0xf0   : > { %5286 = vst [vmem:[#allocation87_spill] sm:$0xff] %v4123_v52  ;;  %5287 = vst [vmem:[#allocation88_spill] sm:$0xff] %v4132_v53  ;;  %v504_v52 = vld [vmem:[%s2753_s10 + $0x780] sm:$0xff]  ;;  %v506_v2 = vld [vmem:[%s2753_s10 + $0x790] sm:$0xff]  ;;  %v4159_v53 = vmul.f32 %v3733_v3, %v490_v47  ;;  %v4177_v47 = vmul.f32 %v3789_v21, %v495_v25  ;;  %v4195_v25 = vmul.f32 %v3754_v39, %v500_v38 }
  0xf1   : > { %5288 = vst [vmem:[#allocation89_spill] sm:$0xff] %v4135_v22  ;;  %5289 = vst [vmem:[#allocation90_spill] sm:$0xff] %v4138_v24  ;;  %v507_v24 = vld [vmem:[%s2753_s10 + $0x798] sm:$0xff]  ;;  %v508_v22 = vld [vmem:[%s2753_s10 + $0x7a0] sm:$0xff]  ;;  %v4198_v61 = vmul.f32 %v3768_v13, %v501_v10  ;;  %v4218_v10 = vmul.f32 %v3733_v3, %v506_v2 }
  0xf2   : > { %5290 = vst [vmem:[#allocation91_spill] sm:$0xff] %v4147_v54  ;;  %5291 = vst [vmem:[#allocation92_spill] sm:$0xff] %v4150_v41  ;;  %v509_v15 = vld [vmem:[%s2753_s10 + $0x7a8] sm:$0xff]  ;;  %v511_v41 = vld [vmem:[%s2753_s10 + $0x7b8] sm:$0xff]  ;;  %v4174_v54 = vmul.f32 %v3781_v37, %v494_v8  ;;  %v4192_v8 = vmul.f32 %v3746_v49, %v499_v56  ;;  %v4213_v56 = vmul.f32 %v3718_v0, %v505_v62 }
  0xf3   : > { %5292 = vst [vmem:[#allocation93_spill] sm:$0xff] %v4153_v17  ;;  %5293 = vst [vmem:[#allocation94_spill] sm:$0xff] %v4162_v55  ;;  %v510_v17 = vld [vmem:[%s2753_s10 + $0x7b0] sm:$0xff]  ;;  %v512_v57 = vld [vmem:[%s2753_s10 + $0x7c0] sm:$0xff]  ;;  %v4189_v55 = vmul.f32 %v3733_v3, %v498_v51  ;;  %v4210_v51 = vmul.f32 %v3710_v32, %v504_v52  ;;  %v4233_v62 = vmul.f32 %v3789_v21, %v511_v41 }
  0xf4   : > { %5294 = vst [vmem:[#allocation95_spill] sm:$0xff] %v4165_v63  ;;  %5295 = vst [vmem:[#allocation96_spill] sm:$0xff] %v4168_v9  ;;  %v513_v9 = vld [vmem:[%s2753_s10 + $0x7c8] sm:$0xff]  ;;  %v514_v63 = vld [vmem:[%s2753_s10 + $0x7d0] sm:$0xff]  ;;  %v4230_v52 = vmul.f32 %v3781_v37, %v510_v17 }
  0xf5   : > { %5296 = vst [vmem:[#allocation97_spill] sm:$0xff] %v4174_v54  ;;  %5297 = vst [vmem:[#allocation98_spill] sm:$0xff] %v4177_v47  ;;  %v516_v47 = vld [vmem:[%s2753_s10 + $0x7e0] sm:$0xff]  ;;  %v517_v60 = vld [vmem:[%s2753_s10 + $0x7e8] sm:$0xff]  ;;  %v4207_v54 = vmul.f32 %v3789_v21, %v503_v48  ;;  %v4227_v48 = vmul.f32 %v3768_v13, %v509_v15  ;;  %v4239_v2 = vmul.f32 %v3718_v0, %v513_v9  ;;  %v1121_v0 = vsel %vm784_vm2, %v3713_v18, 0.0 }
  0xf6   : > { %5298 = vst [vmem:[#allocation99_spill] sm:$0xff] %v4180_v34  ;;  %5299 = vst [vmem:[#allocation100_spill] sm:$0xff] %v4183_v19  ;;  %v515_v34 = vld [vmem:[%s2753_s10 + $0x7d8] sm:$0xff]  ;;  %v4204_v19 = vmul.f32 %v3781_v37, %v502_v36  ;;  %v518_v38 = vld [vmem:[%s2753_s10 + $0x7f0] sm:$0xff]  ;;  %v4224_v36 = vmul.f32 %v3754_v39, %v508_v22  ;;  %v4248_v15 = vmul.f32 %v3754_v39, %v516_v47  ;;  %v1124_v39 = vsel %vm784_vm2, %v3736_v44, 0.0 }
  0xf7   : > { %5300 = vst [vmem:[#allocation101_spill] sm:$0xff] %v4195_v25  ;;  %5301 = vst [vmem:[#allocation102_spill] sm:$0xff] %v4198_v61  ;;  %v519_v25 = vld [vmem:[%s2753_s10 + $0x7f8] sm:$0xff]  ;;  %v4221_v61 = vmul.f32 %v3746_v49, %v507_v24  ;;  %v4242_v24 = vmul.f32 %v3733_v3, %v514_v63  ;;  %v4245_v22 = vmul.f32 %v3746_v49, %v515_v34  ;;  %v1122_v3 = vsel %vm784_vm2, %v3721_v28, 0.0  ;;  %s1753_s10 = sshra.s32 %s2746_s29, 3 }
  0xf8   : > { %5302 = vst [vmem:[#allocation103_spill] sm:$0xff] %v4213_v56  ;;  %v4236_v56 = vmul.f32 %v3710_v32, %v512_v57  ;;  %v4251_v17 = vmul.f32 %v3768_v13, %v517_v60  ;;  %v4254_v41 = vmul.f32 %v3781_v37, %v518_v38  ;;  %v4257_v32 = vmul.f32 %v3789_v21, %v519_v25  ;;  %v5303_v38 = vld [vmem:[#allocation25_spill] sm:$0xff]  ;;  %s2506_s14 = sshll.u32 %s1753_s10, 4 }
  0xf9   : > { %v1123_v49 = vadd.f32 %v1122_v3, %v1121_v0  ;;  %v1126_v13 = vsel %vm784_vm2, %v3749_v11, 0.0  ;;  %v1128_v37 = vsel %vm784_vm2, %v3757_v6, 0.0  ;;  %v1130_v21 = vsel %vm784_vm2, %v3771_v42, 0.0  ;;  %v5304_v3 = vld [vmem:[#allocation26_spill] sm:$0xff]  ;;  %s4798_s15 = scalar_lea.vmem [#allocation2], %s2506_s14 }
  0xfa   : > { %v1132_v63 = vsel %vm784_vm2, %v3784_v26, 0.0  ;;  %v1134_v18 = vsel %vm784_vm2, %v3792_v31, 0.0  ;;  %v1142_v28 = vsel %vm784_vm2, %v3795_v35, 0.0  ;;  %v1143_v44 = vsel %vm784_vm2, %v3803_v14, 0.0 }
  0xfb   : > { %v1125_v9 = vadd.f32 %v1124_v39, %v1123_v49  ;;  %v1145_v11 = vsel %vm784_vm2, %v3806_v7, 0.0  ;;  %v1147_v6 = vsel %vm784_vm2, %v3809_v16, 0.0  ;;  %v1144_v42 = vadd.f32 %v1143_v44, %v1142_v28  ;;  %v5308_v44 = vld [vmem:[#allocation30_spill] sm:$0xff] }
  0xfc   : > { %v1149_v26 = vsel %vm784_vm2, %v3817_v4, 0.0  ;;  %v1151_v31 = vsel %vm784_vm2, %v3820_v46, 0.0  ;;  %v1153_v35 = vsel %vm784_vm2, %v3823_v50, 0.0  ;;  %v1155_v14 = vsel %vm784_vm2, %v3830_v58, 0.0 }
  0xfd   : > { %v1127_v47 = vadd.f32 %v1126_v13, %v1125_v9  ;;  %v1163_v7 = vsel %vm784_vm2, %v3833_v20, 0.0  ;;  %v1164_v16 = vsel %vm784_vm2, %v3836_v45, 0.0  ;;  %v1146_v34 = vadd.f32 %v1145_v11, %v1144_v42  ;;  %v5306_v13 = vld [vmem:[#allocation28_spill] sm:$0xff]  ;;  %v5309_v42 = vld [vmem:[#allocation31_spill] sm:$0xff] }
  0xfe   : > { %v1165_v57 = vadd.f32 %v1164_v16, %v1163_v7  ;;  %v1166_v4 = vsel %vm784_vm2, %v3843_v5, 0.0  ;;  %v1168_v46 = vsel %vm784_vm2, %v3846_v27, 0.0  ;;  %v1170_v50 = vsel %vm784_vm2, %v3849_v30, 0.0  ;;  %v5305_v27 = vld [vmem:[#allocation27_spill] sm:$0xff]  ;;  %v5311_v16 = vld [vmem:[#allocation33_spill] sm:$0xff] }
  0xff   : > { %v1129_v25 = vadd.f32 %v1128_v37, %v1127_v47  ;;  %v1172_v58 = vsel %vm784_vm2, %v3852_v40, 0.0  ;;  %v1174_v20 = vsel %vm784_vm2, %v3860_v33, 0.0  ;;  %v1148_v60 = vadd.f32 %v1147_v6, %v1146_v34  ;;  %v5307_v37 = vld [vmem:[#allocation29_spill] sm:$0xff] }
 0x100   : > { %v1167_v45 = vadd.f32 %v1166_v4, %v1165_v57  ;;  %v1176_v0 = vsel %vm784_vm2, %v5303_v38, 0.0  ;;  %v1184_v5 = vsel %vm784_vm2, %v5304_v3, 0.0  ;;  %v1185_v39 = vsel %vm784_vm2, %v5305_v27, 0.0  ;;  %v5312_v38 = vld [vmem:[#allocation34_spill] sm:$0xff] }
 0x101   : > { %v1131_v49 = vadd.f32 %v1130_v21, %v1129_v25  ;;  %v1187_v30 = vsel %vm784_vm2, %v5306_v13, 0.0  ;;  %v1189_v40 = vsel %vm784_vm2, %v5307_v37, 0.0  ;;  %v1150_v28 = vadd.f32 %v1149_v26, %v1148_v60  ;;  %v5310_v21 = vld [vmem:[#allocation32_spill] sm:$0xff]  ;;  %v5313_v60 = vld [vmem:[#allocation35_spill] sm:$0xff] }
 0x102   : > { %v1169_v33 = vadd.f32 %v1168_v46, %v1167_v45  ;;  %v1186_v9 = vadd.f32 %v1185_v39, %v1184_v5  ;;  %v1191_v11 = vsel %vm784_vm2, %v5308_v44, 0.0  ;;  %v1193_v47 = vsel %vm784_vm2, %v5309_v42, 0.0  ;;  %v5315_v5 = vld [vmem:[#allocation37_spill] sm:$0xff] }
 0x103   : > { %v1133_v6 = vadd.f32 %v1132_v63, %v1131_v49  ;;  %v1195_v7 = vsel %vm784_vm2, %v5310_v21, 0.0  ;;  %v1197_v34 = vsel %vm784_vm2, %v5311_v16, 0.0  ;;  %v1152_v57 = vadd.f32 %v1151_v31, %v1150_v28  ;;  %v5314_v63 = vld [vmem:[#allocation36_spill] sm:$0xff]  ;;  %v5317_v28 = vld [vmem:[#allocation39_spill] sm:$0xff] }
 0x104   : > { %v1171_v4 = vadd.f32 %v1170_v50, %v1169_v33  ;;  %v1188_v25 = vadd.f32 %v1187_v30, %v1186_v9  ;;  %v1205_v26 = vsel %vm784_vm2, %v5312_v38, 0.0  ;;  %v1206_v45 = vsel %vm784_vm2, %v5313_v60, 0.0  ;;  %v5316_v50 = vld [vmem:[#allocation38_spill] sm:$0xff]  ;;  %v5318_v33 = vld [vmem:[#allocation40_spill] sm:$0xff]  ;;  %v5319_v38 = vld [vmem:[#allocation41_spill] sm:$0xff] }
 0x105   : > { %v1135_v46 = vadd.f32 %v1134_v18, %v1133_v6  ;;  %v1208_v3 = vsel %vm784_vm2, %v5314_v63, 0.0  ;;  %v1210_v49 = vsel %vm784_vm2, %v5315_v5, 0.0  ;;  %v1154_v27 = vadd.f32 %v1153_v35, %v1152_v57  ;;  %v5321_v57 = vld [vmem:[#allocation43_spill] sm:$0xff] }
 0x106   : > { %v1173_v39 = vadd.f32 %v1172_v58, %v1171_v4  ;;  %v1190_v13 = vadd.f32 %v1189_v40, %v1188_v25  ;;  %v1207_v37 = vadd.f32 %v1206_v45, %v1205_v26  ;;  %v1212_v30 = vsel %vm784_vm2, %v5316_v50, 0.0  ;;  %v5320_v58 = vld [vmem:[#allocation42_spill] sm:$0xff] }
 0x107   : > { %v1136_v31 = vrot.slane %v1135_v46, 4  ;;  %v1214_v18 = vsel %vm784_vm2, %v5317_v28, 0.0  ;;  %v1216_v9 = vsel %vm784_vm2, %v5318_v33, 0.0  ;;  %v1156_v44 = vadd.f32 %v1155_v14, %v1154_v27  ;;  %v5322_v14 = vld [vmem:[#allocation44_spill] sm:$0xff]  ;;  %v5324_v50 = vld [vmem:[#allocation46_spill] sm:$0xff] }
 0x108   : > { %v1175_v6 = vadd.f32 %v1174_v20, %v1173_v39  ;;  %v1192_v42 = vadd.f32 %v1191_v11, %v1190_v13  ;;  %v1209_v21 = vadd.f32 %v1208_v3, %v1207_v37  ;;  %v1218_v35 = vsel %vm784_vm2, %v5319_v38, 0.0  ;;  %v5323_v11 = vld [vmem:[#allocation45_spill] sm:$0xff] }
 0x109   : > { %v1137_v16 = vadd.f32 %v1136_v31, %v1135_v46  ;;  %v1226_v40 = vsel %vm784_vm2, %v5320_v58, 0.0  ;;  %v1227_v4 = vsel %vm784_vm2, %v5321_v57, 0.0  ;;  %v1157_v25 = vrot.slane %v1156_v44, 4  ;;  %v5326_v58 = vld [vmem:[#allocation48_spill] sm:$0xff] }
 0x10a   : > { %v1177_v26 = vadd.f32 %v1176_v0, %v1175_v6  ;;  %v1194_v60 = vadd.f32 %v1193_v47, %v1192_v42  ;;  %v1211_v45 = vadd.f32 %v1210_v49, %v1209_v21  ;;  %v1228_v5 = vadd.f32 %v1227_v4, %v1226_v40  ;;  %v5325_v0 = vld [vmem:[#allocation47_spill] sm:$0xff]  ;;  %v5327_v40 = vld [vmem:[#allocation49_spill] sm:$0xff] }
 0x10b   : > { %v1138_v63 = vrot.slane %v1137_v16, 2  ;;  %v1229_v20 = vsel %vm784_vm2, %v5322_v14, 0.0  ;;  %v1231_v46 = vsel %vm784_vm2, %v5323_v11, 0.0  ;;  %v1158_v3 = vadd.f32 %v1157_v25, %v1156_v44 }
 0x10c   : > { %v1178_v27 = vrot.slane %v1177_v26, 4  ;;  %v1196_v39 = vadd.f32 %v1195_v7, %v1194_v60  ;;  %v1213_v13 = vadd.f32 %v1212_v30, %v1211_v45  ;;  %v1230_v31 = vadd.f32 %v1229_v20, %v1228_v5  ;;  %v5328_v45 = vld [vmem:[#allocation50_spill] sm:$0xff] }
 0x10d   : > { %v1139_v37 = vadd.f32 %v1138_v63, %v1137_v16  ;;  %v1233_v28 = vsel %vm784_vm2, %v5324_v50, 0.0  ;;  %v1235_v47 = vsel %vm784_vm2, %v5325_v0, 0.0  ;;  %v1159_v49 = vrot.slane %v1158_v3, 2 }
 0x10e   : > { %v1179_v33 = vadd.f32 %v1178_v27, %v1177_v26  ;;  %v1198_v6 = vadd.f32 %v1197_v34, %v1196_v39  ;;  %v1215_v42 = vadd.f32 %v1214_v18, %v1213_v13  ;;  %v1232_v38 = vadd.f32 %v1231_v46, %v1230_v31  ;;  %v5329_v34 = vld [vmem:[#allocation51_spill] sm:$0xff]  ;;  %v5330_v27 = vld [vmem:[#allocation52_spill] sm:$0xff]  ;;  %v5331_v39 = vld [vmem:[#allocation53_spill] sm:$0xff] }
 0x10f   : > { %v1140_v21 = vrot.slane %v1139_v37, 1  ;;  %v1237_v44 = vsel %vm784_vm2, %v5326_v58, 0.0  ;;  %v1239_v7 = vsel %vm784_vm2, %v5327_v40, 0.0  ;;  %v1160_v30 = vadd.f32 %v1159_v49, %v1158_v3  ;;  %v5332_v49 = vld [vmem:[#allocation54_spill] sm:$0xff] }
 0x110   : > { %v1180_v16 = vrot.slane %v1179_v33, 2  ;;  %v1199_v57 = vrot.slane %v1198_v6, 4  ;;  %v1217_v4 = vadd.f32 %v1216_v9, %v1215_v42  ;;  %v1234_v60 = vadd.f32 %v1233_v28, %v1232_v38  ;;  %v5334_v38 = vld [vmem:[#allocation56_spill] sm:$0xff] }
 0x111   : > { %v4355_v25 = vadd.f32 %v1140_v21, %v1139_v37  ;;  %v1247_v26 = vsel %vm784_vm2, %v5328_v45, 0.0  ;;  %v1248_v18 = vsel %vm784_vm2, %v5329_v34, 0.0  ;;  %v1161_v63 = vrot.slane %v1160_v30, 1 }
 0x112   : > { %v1181_v5 = vadd.f32 %v1180_v16, %v1179_v33  ;;  %v1200_v14 = vadd.f32 %v1199_v57, %v1198_v6  ;;  %v1219_v20 = vadd.f32 %v1218_v35, %v1217_v4  ;;  %v1236_v11 = vadd.f32 %v1235_v47, %v1234_v60  ;;  %v5333_v6 = vld [vmem:[#allocation55_spill] sm:$0xff]  ;;  %v5335_v16 = vld [vmem:[#allocation57_spill] sm:$0xff] }
 0x113   : > { %v1249_v46 = vadd.f32 %v1248_v18, %v1247_v26  ;;  %v1250_v3 = vsel %vm784_vm2, %v5330_v27, 0.0  ;;  %v1252_v9 = vsel %vm784_vm2, %v5331_v39, 0.0  ;;  %v4365_v13 = vadd.f32 %v1161_v63, %v1160_v30  ;;  %v5337_v26 = vld [vmem:[#allocation59_spill] sm:$0xff]  ;;  %v5338_v18 = vld [vmem:[#allocation60_spill] sm:$0xff] }
 0x114   : > { %v1182_v37 = vrot.slane %v1181_v5, 1  ;;  %v1201_v31 = vrot.slane %v1200_v14, 2  ;;  %v1220_v50 = vrot.slane %v1219_v20, 4  ;;  %v1238_v28 = vadd.f32 %v1237_v44, %v1236_v11  ;;  %v5336_v44 = vld [vmem:[#allocation58_spill] sm:$0xff]  ;;  %v5339_v11 = vld [vmem:[#allocation61_spill] sm:$0xff] }
 0x115   : > { %v1251_v0 = vadd.f32 %v1250_v3, %v1249_v46  ;;  %v1254_v33 = vsel %vm784_vm2, %v5332_v49, 0.0  ;;  %v1256_v35 = vsel %vm784_vm2, %v5333_v6, 0.0  ;;  %v1258_v58 = vsel %vm784_vm2, %v5334_v38, 0.0  ;;  %v5340_v3 = vld [vmem:[#allocation62_spill] sm:$0xff]  ;;  %v5343_v6 = vld [vmem:[#allocation65_spill] sm:$0xff] }
 0x116   : > { %v4371_v47 = vadd.f32 %v1182_v37, %v1181_v5  ;;  %v1202_v42 = vadd.f32 %v1201_v31, %v1200_v14  ;;  %v1221_v21 = vadd.f32 %v1220_v50, %v1219_v20  ;;  %v1240_v40 = vadd.f32 %v1239_v7, %v1238_v28 }
 0x117   : > { %v1253_v30 = vadd.f32 %v1252_v9, %v1251_v0  ;;  %v1260_v57 = vsel %vm784_vm2, %v5335_v16, 0.0  ;;  %v1268_v4 = vsel %vm784_vm2, %v5336_v44, 0.0  ;;  %v1269_v34 = vsel %vm784_vm2, %v5337_v26, 0.0  ;;  %v5341_v9 = vld [vmem:[#allocation63_spill] sm:$0xff]  ;;  %v5342_v0 = vld [vmem:[#allocation64_spill] sm:$0xff] }
 0x118   : > { %v1203_v60 = vrot.slane %v1202_v42, 1  ;;  %v1222_v45 = vrot.slane %v1221_v21, 2  ;;  %v1271_v63 = vsel %vm784_vm2, %v5338_v18, 0.0  ;;  %v1241_v5 = vrot.slane %v1240_v40, 4 }
 0x119   : > { %v1255_v14 = vadd.f32 %v1254_v33, %v1253_v30  ;;  %v1270_v20 = vadd.f32 %v1269_v34, %v1268_v4  ;;  %v1273_v7 = vsel %vm784_vm2, %v5339_v11, 0.0  ;;  %v1275_v39 = vsel %vm784_vm2, %v5340_v3, 0.0  ;;  %v5344_v30 = vld [vmem:[#allocation66_spill] sm:$0xff]  ;;  %v5347_v34 = vld [vmem:[#allocation69_spill] sm:$0xff] }
 0x11a   : > { %v4385_v46 = vadd.f32 %v1203_v60, %v1202_v42  ;;  %v1223_v27 = vadd.f32 %v1222_v45, %v1221_v21  ;;  %v1277_v37 = vsel %vm784_vm2, %v5341_v9, 0.0  ;;  %v1242_v31 = vadd.f32 %v1241_v5, %v1240_v40  ;;  %v5345_v21 = vld [vmem:[#allocation67_spill] sm:$0xff] }
 0x11b   : > { %v1257_v50 = vadd.f32 %v1256_v35, %v1255_v14  ;;  %v1272_v28 = vadd.f32 %v1271_v63, %v1270_v20  ;;  %v1279_v49 = vsel %vm784_vm2, %v5342_v0, 0.0  ;;  %v1281_v38 = vsel %vm784_vm2, %v5343_v6, 0.0  ;;  %v5346_v35 = vld [vmem:[#allocation68_spill] sm:$0xff]  ;;  %v5348_v63 = vld [vmem:[#allocation70_spill] sm:$0xff]  ;;  %v5349_v9 = vld [vmem:[#allocation71_spill] sm:$0xff] }
 0x11c   : > { %v1224_v33 = vrot.slane %v1223_v27, 1  ;;  %v1289_v42 = vsel %vm784_vm2, %v5344_v30, 0.0  ;;  %v1290_v16 = vsel %vm784_vm2, %v5345_v21, 0.0  ;;  %v1243_v44 = vrot.slane %v1242_v31, 2  ;;  %v5352_v0 = vld [vmem:[#allocation74_spill] sm:$0xff] }
 0x11d   : > { %v1259_v4 = vadd.f32 %v1258_v58, %v1257_v50  ;;  %v1274_v60 = vadd.f32 %v1273_v7, %v1272_v28  ;;  %v1291_v45 = vadd.f32 %v1290_v16, %v1289_v42  ;;  %v1292_v26 = vsel %vm784_vm2, %v5346_v35, 0.0  ;;  %v5350_v7 = vld [vmem:[#allocation72_spill] sm:$0xff]  ;;  %v5351_v50 = vld [vmem:[#allocation73_spill] sm:$0xff] }
 0x11e   : > { %v4399_v40 = vadd.f32 %v1224_v33, %v1223_v27  ;;  %v1294_v18 = vsel %vm784_vm2, %v5347_v34, 0.0  ;;  %v1296_v5 = vsel %vm784_vm2, %v5348_v63, 0.0  ;;  %v1244_v14 = vadd.f32 %v1243_v44, %v1242_v31  ;;  %v5353_v31 = vld [vmem:[#allocation75_spill] sm:$0xff]  ;;  %v5354_v16 = vld [vmem:[#allocation76_spill] sm:$0xff] }
 0x11f   : > { %v1261_v20 = vadd.f32 %v1260_v57, %v1259_v4  ;;  %v1276_v11 = vadd.f32 %v1275_v39, %v1274_v60  ;;  %v1293_v3 = vadd.f32 %v1292_v26, %v1291_v45  ;;  %v1298_v58 = vsel %vm784_vm2, %v5349_v9, 0.0  ;;  %v5355_v4 = vld [vmem:[#allocation77_spill] sm:$0xff] }
 0x120   : > { %v1300_v27 = vsel %vm784_vm2, %v5350_v7, 0.0  ;;  %v1302_v28 = vsel %vm784_vm2, %v5351_v50, 0.0  ;;  %v1310_v33 = vsel %vm784_vm2, %v5352_v0, 0.0  ;;  %v1245_v6 = vrot.slane %v1244_v14, 1  ;;  %v5358_v0 = vld [vmem:[#allocation80_spill] sm:$0xff] }
 0x121   : > { %v1262_v30 = vrot.slane %v1261_v20, 4  ;;  %v1278_v42 = vadd.f32 %v1277_v37, %v1276_v11  ;;  %v1295_v21 = vadd.f32 %v1294_v18, %v1293_v3  ;;  %v1311_v57 = vsel %vm784_vm2, %v5353_v31, 0.0  ;;  %v5356_v37 = vld [vmem:[#allocation78_spill] sm:$0xff]  ;;  %v5357_v3 = vld [vmem:[#allocation79_spill] sm:$0xff] }
 0x122   : > { %v1313_v39 = vsel %vm784_vm2, %v4068_v23, 0.0  ;;  %v1315_v44 = vsel %vm784_vm2, %v5354_v16, 0.0  ;;  %v1317_v60 = vsel %vm784_vm2, %v5355_v4, 0.0  ;;  %v4423_v45 = vadd.f32 %v1245_v6, %v1244_v14  ;;  %v5362_v16 = vld [vmem:[#allocation84_spill] sm:$0xff] }
 0x123   : > { %v1263_v35 = vadd.f32 %v1262_v30, %v1261_v20  ;;  %v1280_v26 = vadd.f32 %v1279_v49, %v1278_v42  ;;  %v1297_v34 = vadd.f32 %v1296_v5, %v1295_v21  ;;  %v1312_v63 = vadd.f32 %v1311_v57, %v1310_v33  ;;  %v5359_v20 = vld [vmem:[#allocation81_spill] sm:$0xff]  ;;  %v5360_v33 = vld [vmem:[#allocation82_spill] sm:$0xff] }
 0x124   : > { %v1319_v18 = vsel %vm784_vm2, %v5356_v37, 0.0  ;;  %v1321_v11 = vsel %vm784_vm2, %v4084_v29, 0.0  ;;  %v1323_v23 = vsel %vm784_vm2, %v5357_v3, 0.0  ;;  %v1331_v14 = vsel %vm784_vm2, %v5358_v0, 0.0  ;;  %v5363_v3 = vld [vmem:[#allocation85_spill] sm:$0xff] }
 0x125   : > { %v1264_v9 = vrot.slane %v1263_v35, 2  ;;  %v1282_v7 = vadd.f32 %v1281_v38, %v1280_v26  ;;  %v1299_v50 = vadd.f32 %v1298_v58, %v1297_v34  ;;  %v1314_v6 = vadd.f32 %v1313_v39, %v1312_v63  ;;  %v5361_v38 = vld [vmem:[#allocation83_spill] sm:$0xff] }
 0x126   : > { %v1332_v49 = vsel %vm784_vm2, %v5359_v20, 0.0  ;;  %v1334_v5 = vsel %vm784_vm2, %v4099_v59, 0.0  ;;  %v1336_v30 = vsel %vm784_vm2, %v5360_v33, 0.0  ;;  %v1338_v58 = vsel %vm784_vm2, %v5361_v38, 0.0  ;;  %v5368_v38 = vld [vmem:[#allocation90_spill] sm:$0xff] }
 0x127   : > { %v1265_v29 = vadd.f32 %v1264_v9, %v1263_v35  ;;  %v1283_v42 = vrot.slane %v1282_v7, 4  ;;  %v1301_v21 = vadd.f32 %v1300_v27, %v1299_v50  ;;  %v1333_v31 = vadd.f32 %v1332_v49, %v1331_v14  ;;  %v5364_v27 = vld [vmem:[#allocation86_spill] sm:$0xff]  ;;  %v5365_v9 = vld [vmem:[#allocation87_spill] sm:$0xff] }
 0x128   : > { %v1316_v57 = vadd.f32 %v1315_v44, %v1314_v6  ;;  %v1340_v39 = vsel %vm784_vm2, %v5362_v16, 0.0  ;;  %v1342_v4 = vsel %vm784_vm2, %v4114_v43, 0.0  ;;  %v1344_v35 = vsel %vm784_vm2, %v5363_v3, 0.0 }
 0x129   : > { %v1266_v26 = vrot.slane %v1265_v29, 1  ;;  %v1284_v34 = vadd.f32 %v1283_v42, %v1282_v7  ;;  %v1303_v59 = vadd.f32 %v1302_v28, %v1301_v21  ;;  %v1335_v63 = vadd.f32 %v1334_v5, %v1333_v31  ;;  %v5367_v21 = vld [vmem:[#allocation89_spill] sm:$0xff] }
 0x12a   : > { %v1318_v37 = vadd.f32 %v1317_v60, %v1316_v57  ;;  %v1352_v44 = vsel %vm784_vm2, %v5364_v27, 0.0  ;;  %v1353_v50 = vsel %vm784_vm2, %v5365_v9, 0.0  ;;  %v1355_v28 = vsel %vm784_vm2, %v4129_v12, 0.0  ;;  %v5366_v60 = vld [vmem:[#allocation88_spill] sm:$0xff]  ;;  %v5371_v27 = vld [vmem:[#allocation93_spill] sm:$0xff] }
 0x12b   : > { %v4451_v0 = vadd.f32 %v1266_v26, %v1265_v29  ;;  %v1285_v14 = vrot.slane %v1284_v34, 2  ;;  %v1304_v6 = vrot.slane %v1303_v59, 4  ;;  %v1337_v20 = vadd.f32 %v1336_v30, %v1335_v63  ;;  %v5369_v63 = vld [vmem:[#allocation91_spill] sm:$0xff] }
 0x12c   : > { %v1320_v43 = vadd.f32 %v1319_v18, %v1318_v37  ;;  %v1354_v49 = vadd.f32 %v1353_v50, %v1352_v44  ;;  %v1357_v7 = vsel %vm784_vm2, %v5366_v60, 0.0  ;;  %v1359_v31 = vsel %vm784_vm2, %v5367_v21, 0.0  ;;  %v5373_v60 = vld [vmem:[#allocation95_spill] sm:$0xff]  ;;  %v5374_v21 = vld [vmem:[#allocation96_spill] sm:$0xff] }
 0x12d   : > { %v1286_v5 = vadd.f32 %v1285_v14, %v1284_v34  ;;  %v1305_v33 = vadd.f32 %v1304_v6, %v1303_v59  ;;  %v1339_v42 = vadd.f32 %v1338_v58, %v1337_v20  ;;  %v1361_v16 = vsel %vm784_vm2, %v5368_v38, 0.0  ;;  %v5370_v58 = vld [vmem:[#allocation92_spill] sm:$0xff]  ;;  %v5372_v20 = vld [vmem:[#allocation94_spill] sm:$0xff] }
 0x12e   : > { %v1322_v57 = vadd.f32 %v1321_v11, %v1320_v43  ;;  %v1356_v29 = vadd.f32 %v1355_v28, %v1354_v49  ;;  %v1363_v18 = vsel %vm784_vm2, %v4144_v1, 0.0  ;;  %v1365_v37 = vsel %vm784_vm2, %v5369_v63, 0.0  ;;  %v5376_v38 = vld [vmem:[#allocation98_spill] sm:$0xff] }
 0x12f   : > { %v1287_v30 = vrot.slane %v1286_v5, 1  ;;  %v1306_v26 = vrot.slane %v1305_v33, 2  ;;  %v1341_v12 = vadd.f32 %v1340_v39, %v1339_v42  ;;  %v1373_v3 = vsel %vm784_vm2, %v5370_v58, 0.0 }
 0x130   : > { %v1324_v34 = vadd.f32 %v1323_v23, %v1322_v57  ;;  %v1358_v59 = vadd.f32 %v1357_v7, %v1356_v29  ;;  %v1374_v11 = vsel %vm784_vm2, %v5371_v27, 0.0  ;;  %v1376_v39 = vsel %vm784_vm2, %v4159_v53, 0.0 }
 0x131   : > { %v4469_v44 = vadd.f32 %v1287_v30, %v1286_v5  ;;  %v1307_v9 = vadd.f32 %v1306_v26, %v1305_v33  ;;  %v1343_v50 = vadd.f32 %v1342_v4, %v1341_v12  ;;  %v1375_v14 = vadd.f32 %v1374_v11, %v1373_v3  ;;  %v5375_v33 = vld [vmem:[#allocation97_spill] sm:$0xff]  ;;  %v5377_v12 = vld [vmem:[#allocation99_spill] sm:$0xff] }
 0x132   : > { %v1325_v1 = vrot.slane %v1324_v34, 4  ;;  %v1360_v6 = vadd.f32 %v1359_v31, %v1358_v59  ;;  %v1378_v23 = vsel %vm784_vm2, %v5372_v20, 0.0  ;;  %v1380_v7 = vsel %vm784_vm2, %v5373_v60, 0.0  ;;  %v5380_v20 = vld [vmem:[#allocation102_spill] sm:$0xff] }
 0x133   : > { %v1308_v43 = vrot.slane %v1307_v9, 1  ;;  %v1345_v49 = vadd.f32 %v1344_v35, %v1343_v50  ;;  %v1377_v28 = vadd.f32 %v1376_v39, %v1375_v14  ;;  %v1382_v4 = vsel %vm784_vm2, %v5374_v21, 0.0  ;;  %v5379_v14 = vld [vmem:[#allocation101_spill] sm:$0xff]  ;;  %v5381_v21 = vld [vmem:[#allocation103_spill] sm:$0xff] }
 0x134   : > { %v1326_v42 = vadd.f32 %v1325_v1, %v1324_v34  ;;  %v1362_v5 = vadd.f32 %v1361_v16, %v1360_v6  ;;  %v1384_v31 = vsel %vm784_vm2, %v5375_v33, 0.0  ;;  %v1386_v30 = vsel %vm784_vm2, %v5376_v38, 0.0  ;;  %v5378_v34 = vld [vmem:[#allocation100_spill] sm:$0xff] }
 0x135   : > { %v4481_v57 = vadd.f32 %v1308_v43, %v1307_v9  ;;  %v1346_v53 = vrot.slane %v1345_v49, 4  ;;  %v1379_v29 = vadd.f32 %v1378_v23, %v1377_v28  ;;  %v1394_v63 = vsel %vm784_vm2, %v5377_v12, 0.0 }
 0x136   : > { %v1327_v35 = vrot.slane %v1326_v42, 2  ;;  %v1364_v26 = vadd.f32 %v1363_v18, %v1362_v5  ;;  %v1395_v16 = vsel %vm784_vm2, %v5378_v34, 0.0  ;;  %v1397_v27 = vsel %vm784_vm2, %v4189_v55, 0.0 }
 0x137   : > { %v1347_v59 = vadd.f32 %v1346_v53, %v1345_v49  ;;  %v1381_v58 = vadd.f32 %v1380_v7, %v1379_v29  ;;  %v1396_v3 = vadd.f32 %v1395_v16, %v1394_v63  ;;  %v1399_v50 = vsel %vm784_vm2, %v4192_v8, 0.0 }
 0x138   : > { %v1328_v11 = vadd.f32 %v1327_v35, %v1326_v42  ;;  %v1366_v9 = vadd.f32 %v1365_v37, %v1364_v26  ;;  %v1401_v18 = vsel %vm784_vm2, %v5379_v14, 0.0  ;;  %v1403_v23 = vsel %vm784_vm2, %v5380_v20, 0.0 }
 0x139   : > { %v1348_v1 = vrot.slane %v1347_v59, 2  ;;  %v1383_v6 = vadd.f32 %v1382_v4, %v1381_v58  ;;  %v1398_v39 = vadd.f32 %v1397_v27, %v1396_v3  ;;  %v1405_v28 = vsel %vm784_vm2, %v4204_v19, 0.0 }
 0x13a   : > { %v1329_v43 = vrot.slane %v1328_v11, 1  ;;  %v1367_v49 = vrot.slane %v1366_v9, 4  ;;  %v1407_v55 = vsel %vm784_vm2, %v4207_v54, 0.0  ;;  %v1415_v7 = vsel %vm784_vm2, %v4210_v51, 0.0 }
 0x13b   : > { %v1349_v37 = vadd.f32 %v1348_v1, %v1347_v59  ;;  %v1385_v60 = vadd.f32 %v1384_v31, %v1383_v6  ;;  %v1400_v8 = vadd.f32 %v1399_v50, %v1398_v39  ;;  %v1416_v4 = vsel %vm784_vm2, %v5381_v21, 0.0 }
 0x13c   : > { %v1330_v42 = vadd.f32 %v1329_v43, %v1328_v11  ;;  %v1368_v5 = vadd.f32 %v1367_v49, %v1366_v9  ;;  %v1418_v33 = vsel %vm784_vm2, %v4218_v10, 0.0  ;;  %v1417_v38 = vadd.f32 %v1416_v4, %v1415_v7 }
 0x13d   : > { %v1350_v53 = vrot.slane %v1349_v37, 1  ;;  %v1387_v29 = vadd.f32 %v1386_v30, %v1385_v60  ;;  %v1402_v19 = vadd.f32 %v1401_v18, %v1400_v8  ;;  %v1420_v54 = vsel %vm784_vm2, %v4221_v61, 0.0 }
 0x13e   : > { %v1369_v35 = vrot.slane %v1368_v5, 2  ;;  %v1422_v31 = vsel %vm784_vm2, %v4224_v36, 0.0  ;;  %v1424_v51 = vsel %vm784_vm2, %v4227_v48, 0.0  ;;  %v1419_v34 = vadd.f32 %v1418_v33, %v1417_v38 }
 0x13f   : > { %v1351_v26 = vadd.f32 %v1350_v53, %v1349_v37  ;;  %v1388_v12 = vrot.slane %v1387_v29, 4  ;;  %v1404_v63 = vadd.f32 %v1403_v23, %v1402_v19  ;;  %v1426_v10 = vsel %vm784_vm2, %v4230_v52, 0.0  ;;  %v5382_v23 = vld [vmem:[#allocation8_spill] sm:$0xff] }
 0x140   : > { %v1370_v16 = vadd.f32 %v1369_v35, %v1368_v5  ;;  %v1428_v30 = vsel %vm784_vm2, %v4233_v62, 0.0  ;;  %v1436_v61 = vsel %vm784_vm2, %v4236_v56, 0.0  ;;  %v1421_v36 = vadd.f32 %v1420_v54, %v1419_v34 }
 0x141   : > { %v1389_v59 = vadd.f32 %v1388_v12, %v1387_v29  ;;  %v1406_v58 = vadd.f32 %v1405_v28, %v1404_v63  ;;  %v1437_v48 = vsel %vm784_vm2, %v4239_v2, 0.0  ;;  %v1439_v11 = vsel %vm784_vm2, %v4242_v24, 0.0 }
 0x142   : > { %v1371_v3 = vrot.slane %v1370_v16, 1  ;;  %v1438_v27 = vadd.f32 %v1437_v48, %v1436_v61  ;;  %v1441_v52 = vsel %vm784_vm2, %v4245_v22, 0.0  ;;  %v1423_v62 = vadd.f32 %v1422_v31, %v1421_v36 }
 0x143   : > { %v1390_v9 = vrot.slane %v1389_v59, 2  ;;  %v1408_v50 = vadd.f32 %v1407_v55, %v1406_v58  ;;  %v1443_v56 = vsel %vm784_vm2, %v4248_v15, 0.0  ;;  %v1445_v1 = vsel %vm784_vm2, %v4251_v17, 0.0 }
 0x144   : > { %v1372_v14 = vadd.f32 %v1371_v3, %v1370_v16  ;;  %v1440_v18 = vadd.f32 %v1439_v11, %v1438_v27  ;;  %v1447_v2 = vsel %vm784_vm2, %v4254_v41, 0.0  ;;  %v1425_v24 = vadd.f32 %v1424_v51, %v1423_v62 }
 0x145   : > { %v1391_v6 = vadd.f32 %v1390_v9, %v1389_v59  ;;  %v1409_v39 = vrot.slane %v1408_v50, 4  ;;  %v1449_v22 = vsel %vm784_vm2, %v4257_v32, 0.0  ;;  %v1475_v43 = vadd.f32 %v5382_v23, %v4355_v25 }
 0x146   : > { %v1442_v20 = vadd.f32 %v1441_v52, %v1440_v18  ;;  %v1476_v15 = vadd.f32 %v5382_v23, %v4365_v13  ;;  %v1477_v49 = vadd.f32 %v5382_v23, %v4371_v47  ;;  %v1427_v55 = vadd.f32 %v1426_v10, %v1425_v24 }
 0x147   : > { %v1392_v17 = vrot.slane %v1391_v6, 1  ;;  %v1410_v28 = vadd.f32 %v1409_v39, %v1408_v50  ;;  %v1478_v41 = vadd.f32 %v5382_v23, %v4385_v46  ;;  %v1479_v32 = vadd.f32 %v5382_v23, %v4399_v40 }
 0x148   : > { %v1444_v37 = vadd.f32 %v1443_v56, %v1442_v20  ;;  %v1480_v60 = vadd.f32 %v5382_v23, %v4423_v45  ;;  %v1481_v25 = vadd.f32 %v5382_v23, %v4451_v0  ;;  %v1429_v7 = vadd.f32 %v1428_v30, %v1427_v55 }
 0x149   : > { %v1393_v13 = vadd.f32 %v1392_v17, %v1391_v6  ;;  %v1411_v8 = vrot.slane %v1410_v28, 2  ;;  %v1482_v47 = vadd.f32 %v5382_v23, %v4469_v44  ;;  %v1483_v46 = vadd.f32 %v5382_v23, %v4481_v57 }
 0x14a   : > { %v1446_v5 = vadd.f32 %v1445_v1, %v1444_v37  ;;  %v1484_v21 = vadd.f32 %v5382_v23, %v1330_v42  ;;  %v1485_v40 = vadd.f32 %v5382_v23, %v1351_v26  ;;  %v1430_v33 = vrot.slane %v1429_v7, 4 }
 0x14b   : > { %v1412_v4 = vadd.f32 %v1411_v8, %v1410_v28  ;;  %v1486_v45 = vadd.f32 %v5382_v23, %v1372_v14  ;;  %v1487_v0 = vadd.f32 %v5382_v23, %v1393_v13  ;;  %v4555_v29 = vmax.f32 %v1475_v43, 0.0 }
 0x14c   : > { %v1448_v53 = vadd.f32 %v1447_v2, %v1446_v5  ;;  %v4557_v19 = vmax.f32 %v1476_v15, 0.0  ;;  %v4559_v44 = vmax.f32 %v1477_v49, 0.0  ;;  %v1431_v35 = vadd.f32 %v1430_v33, %v1429_v7 }
 0x14d   : > { %v1413_v38 = vrot.slane %v1412_v4, 1  ;;  %v4561_v57 = vmax.f32 %v1478_v41, 0.0  ;;  %v4563_v42 = vmax.f32 %v1479_v32, 0.0  ;;  %v4565_v31 = vmax.f32 %v1480_v60, 0.0 }
 0x14e   : > { %v1450_v54 = vadd.f32 %v1449_v22, %v1448_v53  ;;  %v4567_v51 = vmax.f32 %v1481_v25, 0.0  ;;  %v4569_v26 = vmax.f32 %v1482_v47, 0.0  ;;  %v1432_v63 = vrot.slane %v1431_v35, 2  ;;  %v5383_v53 = vld [vmem:[#allocation10_spill] sm:$0xff] }
 0x14f   : > { %v1414_v12 = vadd.f32 %v1413_v38, %v1412_v4  ;;  %v4571_v34 = vmax.f32 %v1483_v46, 0.0  ;;  %v4573_v16 = vmax.f32 %v1484_v21, 0.0  ;;  %v4575_v30 = vmax.f32 %v1485_v40, 0.0 }
 0x150   : > { %v1451_v10 = vrot.slane %v1450_v54, 4  ;;  %v4577_v61 = vmax.f32 %v1486_v45, 0.0  ;;  %v4579_v59 = vmax.f32 %v1487_v0, 0.0  ;;  %v1433_v58 = vadd.f32 %v1432_v63, %v1431_v35  ;;  %v5384_v63 = vld [vmem:[#allocation9_spill] sm:$0xff] }
 0x151   : > { %v1488_v36 = vadd.f32 %v5382_v23, %v1414_v12  ;;  %v1539_v48 = vpack.c.bf16 %v4555_v29, %v4555_v29  ;;  %v1540_v3 = vpack.c.bf16 %v4557_v19, %v4557_v19  ;;  %v1541_v11 = vpack.c.bf16 %v4559_v44, %v4559_v44 }
 0x152   : > { %v1452_v27 = vadd.f32 %v1451_v10, %v1450_v54  ;;  %v1542_v52 = vpack.c.bf16 %v4561_v57, %v4561_v57  ;;  %v1543_v9 = vpack.c.bf16 %v4563_v42, %v4563_v42  ;;  %v1434_v50 = vrot.slane %v1433_v58, 1 }
 0x153   : > { %v4592_v62 = vmax.f32 %v1488_v36, 0.0  ;;  %v1544_v56 = vpack.c.bf16 %v4565_v31, %v4565_v31  ;;  %v1545_v14 = vpack.c.bf16 %v4567_v51, %v4567_v51  ;;  %v1546_v1 = vpack.c.bf16 %v4569_v26, %v4569_v26 }
 0x154   : > { %v1453_v18 = vrot.slane %v1452_v27, 2  ;;  %v1547_v2 = vpack.c.bf16 %v4571_v34, %v4571_v34  ;;  %v1548_v6 = vpack.c.bf16 %v4573_v16, %v4573_v16  ;;  %v1435_v39 = vadd.f32 %v1434_v50, %v1433_v58 }
 0x155   : > { %v1549_v24 = vpack.c.bf16 %v4575_v30, %v4575_v30  ;;  %v1550_v22 = vpack.c.bf16 %v4577_v61, %v4577_v61  ;;  %v1551_v20 = vpack.c.bf16 %v4579_v59, %v4579_v59  ;;  %v1552_v15 = vpack.c.bf16 %v4592_v62, %v4592_v62 }
 0x156   : > { %v1454_v43 = vadd.f32 %v1453_v18, %v1452_v27  ;;  %v1608_v49 = vunpack.c.l.b16 %v1539_v48  ;;  %v1609_v17 = vunpack.c.l.b16 %v1540_v3  ;;  %v1489_v28 = vadd.f32 %v5382_v23, %v1435_v39  ;;  %v5385_v3 = vld [vmem:[#allocation11_spill] sm:$0xff]  ;;  %v5387_v18 = vld [vmem:[#allocation13_spill] sm:$0xff] }
 0x157   : > { %v1610_v55 = vunpack.c.l.b16 %v1541_v11  ;;  %v1611_v41 = vunpack.c.l.b16 %v1542_v52  ;;  %v1612_v37 = vunpack.c.l.b16 %v1543_v9  ;;  %v1613_v60 = vunpack.c.l.b16 %v1544_v56  ;;  %v5386_v9 = vld [vmem:[#allocation12_spill] sm:$0xff] }
 0x158   : > { %v1455_v32 = vrot.slane %v1454_v43, 1  ;;  %v1614_v25 = vunpack.c.l.b16 %v1545_v14  ;;  %v1615_v13 = vunpack.c.l.b16 %v1546_v1  ;;  %v4613_v8 = vmax.f32 %v1489_v28, 0.0 }
 0x159   : > { %v1616_v7 = vunpack.c.l.b16 %v1547_v2  ;;  %v1617_v47 = vunpack.c.l.b16 %v1548_v6  ;;  %v1618_v5 = vunpack.c.l.b16 %v1549_v24  ;;  %v1619_v21 = vunpack.c.l.b16 %v1550_v22  ;;  %v5388_v2 = vld [vmem:[#allocation14_spill] sm:$0xff] }
 0x15a   : > { %v1456_v46 = vadd.f32 %v1455_v32, %v1454_v43  ;;  %v1620_v40 = vunpack.c.l.b16 %v1551_v20  ;;  %v1621_v4 = vunpack.c.l.b16 %v1552_v15  ;;  %v1553_v33 = vpack.c.bf16 %v4613_v8, %v4613_v8  ;;  %v5389_v20 = vld [vmem:[#allocation15_spill] sm:$0xff] }
 0x15b   : > { %v1645_v45 = vsel %vm1624_vm3, %v1609_v17, %v1608_v49  ;;  %v1652_v0 = vsel %vm1624_vm3, %v1617_v47, %v1616_v7  ;;  %v1856_v38 = vmul.f32 %v5383_v53, %v5383_v53  ;;  %v1857_v10 = vmul.f32 %v5384_v63, %v5384_v63  ;;  %v5390_v49 = vld [vmem:[#allocation16_spill] sm:$0xff]  ;;  %v5392_v47 = vld [vmem:[#allocation18_spill] sm:$0xff] }
 0x15c   : > { %v1490_v35 = vadd.f32 %v5382_v23, %v1456_v46  ;;  %v1646_v54 = vsel %vm1626_vm4, %v1610_v55, %v1645_v45  ;;  %v1653_v12 = vsel %vm1626_vm4, %v1618_v5, %v1652_v0  ;;  %v1622_v58 = vunpack.c.l.b16 %v1553_v33  ;;  %v5393_v46 = vld [vmem:[#allocation19_spill] sm:$0xff]  ;;  %v5394_v45 = vld [vmem:[#allocation20_spill] sm:$0xff] }
 0x15d   : > { %v1647_v36 = vsel %vm1628_vm5, %v1611_v41, %v1646_v54  ;;  %v1654_v48 = vsel %vm1628_vm5, %v1619_v21, %v1653_v12  ;;  %v1858_v27 = vmul.f32 %v5385_v3, %v5385_v3  ;;  %v1859_v50 = vmul.f32 %v5386_v9, %v5386_v9  ;;  %v5395_v54 = vld [vmem:[#allocation21_spill] sm:$0xff] }
 0x15e   : > { %v4630_v11 = vmax.f32 %v1490_v35, 0.0  ;;  %v1648_v52 = vsel %vm1630_vm6, %v1612_v37, %v1647_v36  ;;  %v1655_v23 = vsel %vm1630_vm6, %v1620_v40, %v1654_v48  ;;  %v1860_v1 = vmul.f32 %v5387_v18, %v5387_v18  ;;  %v5397_v48 = vld [vmem:[#allocation23_spill] sm:$0xff] }
 0x15f   : > { %v1649_v56 = vsel %vm1632_vm7, %v1613_v60, %v1648_v52  ;;  %v1656_v14 = vsel %vm1632_vm7, %v1621_v4, %v1655_v23  ;;  %v1861_v6 = vmul.f32 %v5388_v2, %v5388_v2  ;;  %v1862_v43 = vmul.f32 %v5389_v20, %v5389_v20  ;;  %v5391_v60 = vld [vmem:[#allocation17_spill] sm:$0xff]  ;;  %v5398_v23 = vld [vmem:[#allocation24_spill] sm:$0xff] }
 0x160   : > { %v1554_v39 = vpack.c.bf16 %v4630_v11, %v4630_v11  ;;  %v1650_v24 = vsel %vm1634_vm8, %v1614_v25, %v1649_v56  ;;  %v1657_v22 = vsel %vm1634_vm8, %v1622_v58, %v1656_v14  ;;  %v1863_v17 = vmul.f32 %v5390_v49, %v5390_v49  ;;  %v5396_v58 = vld [vmem:[#allocation22_spill] sm:$0xff] }
 0x161   : > { %v1651_v15 = vsel %vm1636_vm9, %v1615_v13, %v1650_v24  ;;  %v1920_v28 = vsel %vm1624_vm3, %v1857_v10, %v1856_v38  ;;  %v1799_v55 = vsel %vm1624_vm3, %v5384_v63, %v5383_v53  ;;  %v1864_v25 = vmul.f32 %v5391_v60, %v5391_v60 }
 0x162   : > { %v1623_v41 = vunpack.c.l.b16 %v1554_v39  ;;  %v1921_v37 = vsel %vm1626_vm4, %v1858_v27, %v1920_v28  ;;  %v1800_v32 = vsel %vm1626_vm4, %v5385_v3, %v1799_v55  ;;  %v1865_v5 = vmul.f32 %v5392_v47, %v5392_v47 }
 0x163   : > { %v1922_v13 = vsel %vm1628_vm5, %v1859_v50, %v1921_v37  ;;  %v1801_v7 = vsel %vm1628_vm5, %v5386_v9, %v1800_v32  ;;  %v1866_v21 = vmul.f32 %v5393_v46, %v5393_v46  ;;  %v1867_v0 = vmul.f32 %v5394_v45, %v5394_v45 }
 0x164   : > { %v1658_v40 = vsel %vm1636_vm9, %v1623_v41, %v1657_v22  ;;  %v1923_v4 = vsel %vm1630_vm6, %v1860_v1, %v1922_v13  ;;  %v1802_v33 = vsel %vm1630_vm6, %v5387_v18, %v1801_v7  ;;  %v1868_v12 = vmul.f32 %v5395_v54, %v5395_v54 }
 0x165   : > { %v1660_v53 = vpack.c.b16 %v1658_v40, %v1651_v15  ;;  %v1924_v38 = vsel %vm1632_vm7, %v1861_v6, %v1923_v4  ;;  %v1803_v35 = vsel %vm1632_vm7, %v5388_v2, %v1802_v33  ;;  %v1869_v36 = vmul.f32 %v5396_v58, %v5396_v58 }
 0x166   : > { %v1925_v63 = vsel %vm1634_vm8, %v1862_v43, %v1924_v38  ;;  %v1804_v10 = vsel %vm1634_vm8, %v5389_v20, %v1803_v35  ;;  %v1870_v3 = vmul.f32 %v5397_v48, %v5397_v48  ;;  %v1871_v9 = vmul.f32 %v5398_v23, %v5398_v23 }
 0x167   : > { %2478 = vmatmul.mubr.msk.bf16.vlgmr.msra.gmra.mrb[0].mxu1 %vm784_vm2, %v1660_v53  ;;  %v1926_v27 = vsel %vm1636_vm9, %v1863_v17, %v1925_v63  ;;  %v1805_v52 = vsel %vm1636_vm9, %v5390_v49, %v1804_v10  ;;  %v1927_v50 = vsel %vm1624_vm3, %v1865_v5, %v1864_v25  ;;  %v1806_v1 = vsel %vm1624_vm3, %v5392_v47, %v5391_v60 }
 0x168   : > { %v1952_v56 = vsel %vm784_vm2, %v1926_v27, 0.0  ;;  %v1831_v14 = vsel %vm784_vm2, %v1805_v52, 0.0  ;;  %v1928_v18 = vsel %vm1626_vm4, %v1866_v21, %v1927_v50  ;;  %v1807_v6 = vsel %vm1626_vm4, %v5393_v46, %v1806_v1 }
 0x169   : > { %1953 = vadd.xlane.f32.xlu1 %v1952_v56  ;;  %1832 = vadd.xlane.f32.xlu0 %v1831_v14  ;;  %v1929_v2 = vsel %vm1628_vm5, %v1867_v0, %v1928_v18  ;;  %v1872_v39 = vmul.f32 %v4555_v29, %v4555_v29  ;;  %v1808_v22 = vsel %vm1628_vm5, %v5394_v45, %v1807_v6 }
 0x16a   : > { %v1930_v24 = vsel %vm1630_vm6, %v1868_v12, %v1929_v2  ;;  %v1873_v20 = vmul.f32 %v4557_v19, %v4557_v19  ;;  %v1874_v43 = vmul.f32 %v4559_v44, %v4559_v44  ;;  %v1809_v49 = vsel %vm1630_vm6, %v5395_v54, %v1808_v22 }
 0x16b   : > { %v1931_v15 = vsel %vm1632_vm7, %v1869_v36, %v1930_v24  ;;  %v1875_v17 = vmul.f32 %v4561_v57, %v4561_v57  ;;  %v1876_v28 = vmul.f32 %v4563_v42, %v4563_v42  ;;  %v1810_v41 = vsel %vm1632_vm7, %v5396_v58, %v1809_v49 }
 0x16c   : > { %v1932_v55 = vsel %vm1634_vm8, %v1870_v3, %v1931_v15  ;;  %v1877_v37 = vmul.f32 %v4565_v31, %v4565_v31  ;;  %v1878_v32 = vmul.f32 %v4567_v51, %v4567_v51  ;;  %v1811_v25 = vsel %vm1634_vm8, %v5397_v48, %v1810_v41 }
 0x16d   : > { %v1933_v60 = vsel %vm1636_vm9, %v1871_v9, %v1932_v55  ;;  %v1879_v13 = vmul.f32 %v4569_v26, %v4569_v26  ;;  %v1934_v7 = vsel %vm1624_vm3, %v1873_v20, %v1872_v39  ;;  %v1812_v5 = vsel %vm1636_vm9, %v5398_v23, %v1811_v25 }
 0x16e   : > { %v1955_v47 = vsel %vm784_vm2, %v1933_v60, 0.0  ;;  %v1935_v46 = vsel %vm1626_vm4, %v1874_v43, %v1934_v7  ;;  %v1813_v21 = vsel %vm1624_vm3, %v4557_v19, %v4555_v29  ;;  %v1834_v40 = vsel %vm784_vm2, %v1812_v5, 0.0 }
 0x16f   : > { %1956 = vadd.xlane.f32.xlu1 %v1955_v47  ;;  %v1936_v4 = vsel %vm1628_vm5, %v1875_v17, %v1935_v46  ;;  %v1814_v33 = vsel %vm1626_vm4, %v4559_v44, %v1813_v21  ;;  %v1880_v45 = vmul.f32 %v4571_v34, %v4571_v34  ;;  %1835 = vadd.xlane.f32.xlu0 %v1834_v40 }
 0x170   : > { %v1937_v0 = vsel %vm1630_vm6, %v1876_v28, %v1936_v4  ;;  %v1815_v53 = vsel %vm1628_vm5, %v4561_v57, %v1814_v33  ;;  %v1881_v29 = vmul.f32 %v4573_v16, %v4573_v16  ;;  %v1882_v19 = vmul.f32 %v4575_v30, %v4575_v30  ;;  %v1855_v4 = vld [vmem:[#allocation4] sm:$0x1] }
 0x171   : > { %v1938_v38 = vsel %vm1632_vm7, %v1877_v37, %v1937_v0  ;;  %v1816_v44 = vsel %vm1630_vm6, %v4563_v42, %v1815_v53  ;;  %v1883_v35 = vmul.f32 %v4577_v61, %v4577_v61  ;;  %v1884_v57 = vmul.f32 %v4579_v59, %v4579_v59  ;;  %v1766_v0 = vld [vmem:[#allocation3] sm:$0x1] }
 0x172   : > { %v1939_v54 = vsel %vm1634_vm8, %v1878_v32, %v1938_v38  ;;  %v1817_v12 = vsel %vm1632_vm7, %v4565_v31, %v1816_v44  ;;  %v1885_v63 = vmul.f32 %v4592_v62, %v4592_v62  ;;  %v1886_v42 = vmul.f32 %v4613_v8, %v4613_v8 }
 0x173   : > { %v1940_v10 = vsel %vm1636_vm9, %v1879_v13, %v1939_v54  ;;  %v1818_v58 = vsel %vm1634_vm8, %v4567_v51, %v1817_v12  ;;  %v1941_v36 = vsel %vm1624_vm3, %v1881_v29, %v1880_v45  ;;  %v1820_v27 = vsel %vm1624_vm3, %v4573_v16, %v4571_v34  ;;  %v2632_v12 = vld [vmem:[%s5009_s4 + $0x40] sm:$0xff] (!%p2482_p2)  }
 0x174   : > { %v1958_v48 = vsel %vm784_vm2, %v1940_v10, 0.0  ;;  %v1819_v31 = vsel %vm1636_vm9, %v4569_v26, %v1818_v58  ;;  %v1942_v3 = vsel %vm1626_vm4, %v1882_v19, %v1941_v36  ;;  %v1887_v51 = vmul.f32 %v4630_v11, %v4630_v11  ;;  %2507 = vmatprep.subr.bf16.mxu0 (!%p2482_p2), %v2632_v12  ;;  %2577 = vmatprep.subr.bf16.mxu1 (!%p2482_p2), %v2632_v12  ;;  %v2633_v36 = vld [vmem:[%s5009_s4] sm:$0xff] (!%p2482_p2)  }
 0x175   : > { %1959 = vadd.xlane.f32.xlu1 %v1958_v48  ;;  %v1837_v52 = vsel %vm784_vm2, %v1819_v31, 0.0  ;;  %v1943_v23 = vsel %vm1628_vm5, %v1883_v35, %v1942_v3  ;;  %v1821_v9 = vsel %vm1626_vm4, %v4575_v30, %v1820_v27  ;;  %2508 = vmatpush3.bf16.msra.mxu0 (!%p2482_p2), %v2633_v36  ;;  %v2634_v31 = vld [vmem:[%s5009_s4 + $0x48] sm:$0xff] (!%p2482_p2)  }
 0x176   : > { %1838 = vadd.xlane.f32.xlu0 %v1837_v52  ;;  %v1944_v26 = vsel %vm1630_vm6, %v1884_v57, %v1943_v23  ;;  %v1822_v50 = vsel %vm1628_vm5, %v4577_v61, %v1821_v9  ;;  %v2680_v57 = vmov (!%p2482_p2), 0   ;;  %2585 = vmatpush3.bf16.msra.mxu1 (!%p2482_p2), %v2633_v36  ;;  %v2635_v3 = vld [vmem:[%s5009_s4 + $0x8] sm:$0xff] (!%p2482_p2)   ;;  %v2636_v52 = vld [vmem:[%s5009_s4 + $0x50] sm:$0xff] (!%p2482_p2)   ;;  %v2638_v9 = vld [vmem:[%s5009_s4 + $0x58] sm:$0xff] (!%p2482_p2)  }
 0x177   : > { %v1945_v34 = vsel %vm1632_vm7, %v1885_v63, %v1944_v26  ;;  %v1823_v16 = vsel %vm1630_vm6, %v4579_v59, %v1822_v50  ;;  %2631 = vset.pattern.permute.xlu0 (!%p2482_p2), %v2680_v57  ;;  %2509 = vmatprep.subr.bf16.mxu0 (!%p2482_p2), %v2634_v31  ;;  %v2637_v23 = vld [vmem:[%s5009_s4 + $0x10] sm:$0xff] (!%p2482_p2)   ;;  %v2639_v26 = vld [vmem:[%s5009_s4 + $0x18] sm:$0xff] (!%p2482_p2)   ;;  %v2640_v50 = vld [vmem:[%s5009_s4 + $0x60] sm:$0xff] (!%p2482_p2)  }
 0x178   : > { %v1946_v56 = vsel %vm1634_vm8, %v1886_v42, %v1945_v34  ;;  %v1824_v14 = vsel %vm1632_vm7, %v4592_v62, %v1823_v16  ;;  %2578 = vmatprep.subr.bf16.mxu1 (!%p2482_p2), %v2634_v31  ;;  %v2030_v34 = vlaneseq (!%p2482_p2)  ;;  %v1989_v16 = vstv (!%p2482_p2), %s2483_s7 }
 0x179   : > { %v1947_v18 = vsel %vm1636_vm9, %v1887_v51, %v1946_v56  ;;  %v1825_v30 = vsel %vm1634_vm8, %v4613_v8, %v1824_v14  ;;  %2510 = vmatpush3.bf16.msra.mxu0 (!%p2482_p2), %v2635_v3 }
 0x17a   : > { %v1961_v1 = vsel %vm784_vm2, %v1947_v18, 0.0  ;;  %v1826_v61 = vsel %vm1636_vm9, %v4630_v11, %v1825_v30  ;;  %2586 = vmatpush3.bf16.msra.mxu1 (!%p2482_p2), %v2635_v3  ;;  %2511 = vmatprep.subr.bf16.mxu0 (!%p2482_p2), %v2636_v52  ;;  %v2031_v56 = vshrl.u32 (!%p2482_p2), %v2030_v34, 7  ;;  %v1992_v30 = vstv (!%p2482_p2), %s2484_s8 }
 0x17b   : > { %1962 = vadd.xlane.f32.xlu1 %v1961_v1  ;;  %v1840_v2 = vsel %vm784_vm2, %v1826_v61, 0.0  ;;  %2579 = vmatprep.subr.bf16.mxu1 (!%p2482_p2), %v2636_v52 }
 0x17c   : > { %1841 = vadd.xlane.f32.xlu0 %v1840_v2  ;;  %v2032_v61 = vsub.s32 (!%p2482_p2), 0, %v2031_v56 }
 0x17d   : > { %2512 = vmatpush3.bf16.msra.mxu0 (!%p2482_p2), %v2637_v23 }
 0x17e   : > { %2587 = vmatpush3.bf16.msra.mxu1 (!%p2482_p2), %v2637_v23  ;;  %2513 = vmatprep.subr.bf16.mxu0 (!%p2482_p2), %v2638_v9 }
 0x17f   : > { %2580 = vmatprep.subr.bf16.mxu1 (!%p2482_p2), %v2638_v9 }
 0x181   : > { %2514 = vmatpush3.bf16.msra.mxu0 (!%p2482_p2), %v2639_v26 }
 0x182   : > { %2588 = vmatpush3.bf16.msra.mxu1 (!%p2482_p2), %v2639_v26  ;;  %2515 = vmatprep.subr.bf16.mxu0 (!%p2482_p2), %v2640_v50 }
 0x183   : > { %2581 = vmatprep.subr.bf16.mxu1 (!%p2482_p2), %v2640_v50 }
 0x1a3   : > { %v1733_v59 = vpop.f32.mrb[0].mxu0 }
 0x1a4   : > { %1758 = vst [vmem:[%s4798_s15] sm:$0xff] %v1733_v59  ;;  %v1735_v62 = vpop.f32.mrb[1].mxu0  ;;  %v2641_v59 = vld [vmem:[%s5009_s4 + $0x20] sm:$0xff] (!%p2482_p2)  }
 0x1a5   : > { %1759 = vst [vmem:[%s4798_s15 + $0x8] sm:$0xff] %v1735_v62  ;;  %v1737_v8 = vpop.f32.mrb[2].mxu0  ;;  %2516 = vmatpush3.bf16.msra.mxu0 (!%p2482_p2), %v2641_v59  ;;  %2589 = vmatpush3.bf16.msra.mxu1 (!%p2482_p2), %v2641_v59 }
 0x1a6   : > { %1760 = vst [vmem:[%s4798_s15 + $0x10] sm:$0xff] %v1737_v8  ;;  %v1739_v6 = vpop.f32.mrb[3].mxu0  ;;  %v2642_v8 = vld [vmem:[%s5009_s4 + $0x68] sm:$0xff] (!%p2482_p2)  }
 0x1a7   : > { %1761 = vst [vmem:[%s4798_s15 + $0x18] sm:$0xff] %v1739_v6  ;;  %v2643_v6 = vld [vmem:[%s5009_s4 + $0x28] sm:$0xff] (!%p2482_p2)   ;;  %2517 = vmatprep.subr.bf16.mxu0 (!%p2482_p2), %v2642_v8  ;;  %2582 = vmatprep.subr.bf16.mxu1 (!%p2482_p2), %v2642_v8 }
 0x1a9   : > { %2518 = vmatpush3.bf16.msra.mxu0 (!%p2482_p2), %v2643_v6  ;;  %2590 = vmatpush3.bf16.msra.mxu1 (!%p2482_p2), %v2643_v6 }
 0x1f6   : > { %v1954_v11 = vpop.xlane.xlu1 %1953  ;;  %v1833_v39 = vpop.xlane.xlu0 %1832 }
 0x1fc   : > { %v1957_v24 = vpop.xlane.xlu1 %1956  ;;  %v1836_v22 = vpop.xlane.xlu0 %1835 }
 0x1fd   : > { %v1964_v20 = vadd.f32 %v1957_v24, %v1954_v11  ;;  %v1843_v43 = vadd.f32 %v1836_v22, %v1833_v39  ;;  %v2644_v11 = vld [vmem:[%s5009_s4 + $0x70] sm:$0xff] (!%p2482_p2)   ;;  %v2646_v24 = vld [vmem:[%s5009_s4 + $0x78] sm:$0xff] (!%p2482_p2)  }
 0x1fe   : > { %v2645_v39 = vld [vmem:[%s5009_s4 + $0x30] sm:$0xff] (!%p2482_p2)   ;;  %2519 = vmatprep.subr.bf16.mxu0 (!%p2482_p2), %v2644_v11  ;;  %2583 = vmatprep.subr.bf16.mxu1 (!%p2482_p2), %v2644_v11  ;;  %v2647_v22 = vld [vmem:[%s5009_s4 + $0x38] sm:$0xff] (!%p2482_p2)  }
 0x1ff   : > { %2520 = vmatpush3.bf16.msra.mxu0 (!%p2482_p2), %v2645_v39  ;;  %2591 = vmatpush3.bf16.msra.mxu1 (!%p2482_p2), %v2645_v39 }
 0x200   : > { %2521 = vmatprep.subr.bf16.mxu0 (!%p2482_p2), %v2646_v24  ;;  %2584 = vmatprep.subr.bf16.mxu1 (!%p2482_p2), %v2646_v24 }
 0x202   : > { %v1960_v15 = vpop.xlane.xlu1 %1959 }
 0x203   : > { %v1839_v49 = vpop.xlane.xlu0 %1838  ;;  %v1965_v17 = vadd.f32 %v1964_v20, %v1960_v15  ;;  %2522 = vmatpush3.bf16.msra.mxu0 (!%p2482_p2), %v2647_v22  ;;  %2592 = vmatpush3.bf16.msra.mxu1 (!%p2482_p2), %v2647_v22  ;;  %v2485_v20 = vld [vmem:[%s5010_s5 + $0x1] ss:$4 sm:$0x3] (!%p2482_p2)  ;;  %v1994_v15 = vld [vmem:[%s5010_s5] ss:$4 sm:$0x3] (!%p2482_p2) }
 0x204   : > { %v1844_v28 = vadd.f32 %v1843_v43, %v1839_v49 }
 0x208   : > { %v1963_v55 = vpop.xlane.xlu1 %1962 }
 0x209   : > { %v1966_v41 = vadd.f32 %v1965_v17, %v1963_v55  ;;  %v1842_v37 = vpop.xlane.xlu0 %1841 }
 0x20a   : > { %v1845_v32 = vadd.f32 %v1844_v28, %v1842_v37  ;;  %v2088_v37 = vsub.s32 (!%p2482_p2), 1, %v2031_v56 }
 0x20b   : > { %v1967_v60 = vrot.slane %v1966_v41, 4 }
 0x20c   : > { %v1846_v25 = vrot.slane %v1845_v32, 4 }
 0x20d   : > { %v1968_v13 = vadd.f32 %v1967_v60, %v1966_v41 }
 0x20e   : > { %v1847_v7 = vadd.f32 %v1846_v25, %v1845_v32 }
 0x20f   : > { %v1969_v47 = vrot.slane %v1968_v13, 2 }
 0x210   : > { %v1848_v5 = vrot.slane %v1847_v7, 2 }
 0x211   : > { %v1970_v46 = vadd.f32 %v1969_v47, %v1968_v13 }
 0x212   : > { %v1849_v21 = vadd.f32 %v1848_v5, %v1847_v7 }
 0x213   : > { %v1971_v40 = vrot.slane %v1970_v46, 1 }
 0x214   : > { %v1850_v33 = vrot.slane %v1849_v21, 1 }
 0x215   : > { %v1972_v45 = vadd.f32 %v1971_v40, %v1970_v46 }
 0x216   : > { %v1851_v53 = vadd.f32 %v1850_v33, %v1849_v21 }
 0x217   : > { %v1973_v29 = vadd.f32 %v1972_v45, %v1855_v4 }
 0x218   : > { %v1852_v19 = vadd.f32 %v1851_v53, %v1766_v0 }
 0x219   : > { %1974 = vst.msk [vmem:[#allocation4] sm:$0x1] %vm1853_vm10, %v1973_v29 }
 0x21a   : > { %1854 = vst.msk [vmem:[#allocation3] sm:$0x1] %vm1853_vm10, %v1852_v19 }
 0x220   : > { %v1983_v10 = vld [vmem:[#allocation4] sm:$0x1] (!%p2482_p2) }
 0x221   : > { %v1981_v63 = vld [vmem:[#allocation3] sm:$0x1] (!%p2482_p2)  ;;  %v1984_v42 = vmul.f32 (!%p2482_p2), 0.00021701389, %v1983_v10 }
 0x222   : > { %v1982_v58 = vmul.f32 (!%p2482_p2), 0.00021701389, %v1981_v63 }
 0x224   : > { %v1985_v48 = vmul.f32 (!%p2482_p2), %v1982_v58, %v1982_v58 }
 0x226   : > { %v1986_v27 = vsub.f32 (!%p2482_p2), %v1984_v42, %v1985_v48 }
 0x228   : > { %v1987_v51 = vadd.f32 (!%p2482_p2), 1e-05, %v1986_v27 }
 0x22a   : > { %2648 = vrsqrt.f32 (!%p2482_p2), %v1987_v51 }
 0x234   : > { %v2649_v14 = vpop.eup (!%p2482_p2), %2648 }
 0x235   : > { %v1990_v18 = vmul.f32 (!%p2482_p2), %v2649_v14, %v1989_v16 }
 0x237   : > { %v1991_v1 = vmul.f32 (!%p2482_p2), %v1990_v18, %v1982_v58  ;;  %v2033_v62 = vrot.slane (!%p2482_p2), %v1990_v18, %v2032_v61 }
 0x238   : > { %1978 = sbr.rel (%p2482_p2) target bundleno = 958 (0x3be), region = 56 }
 0x239   : > { %v1993_v2 = vsub.f32 (!%p2482_p2), %v1992_v30, %v1991_v1 }
 0x23a   : > { %v1743_v38 = vpop.f32.mrb[0].mxu1 }
 0x23b   : > { %1762 = vst [vmem:[%s4798_s15 + $0x20] sm:$0xff] %v1743_v38  ;;  %v1745_v44 = vpop.f32.mrb[1].mxu1  ;;  %2072 = vperm.xlu0 (!%p2482_p2), %2631, %v1993_v2  }
 0x23c   : > { %1763 = vst [vmem:[%s4798_s15 + $0x28] sm:$0xff] %v1745_v44  ;;  %v1747_v35 = vpop.f32.mrb[2].mxu1 }
 0x23d   : > { %1764 = vst [vmem:[%s4798_s15 + $0x30] sm:$0xff] %v1747_v35  ;;  %v1749_v54 = vpop.f32.mrb[3].mxu1 }
 0x23e   : > { %1765 = vst [vmem:[%s4798_s15 + $0x38] sm:$0xff] %v1749_v54 }
 0x23f   : > { %2035 = vperm.xlu0 %2631, %v2033_v62  }
 0x245   : > { %v1998_v17 = vld [vmem:[#allocation2 + $0x8] sm:$0xff]  ;;  %v2000_v28 = vld [vmem:[#allocation2 + $0x18] sm:$0xff]  ;;  %v1997_v60 = vld [vmem:[#allocation2] sm:$0xff] }
 0x246   : > { %v2014_v55 = vld [vmem:[#allocation2 + $0x88] sm:$0xff]  ;;  %v2016_v41 = vld [vmem:[#allocation2 + $0x98] sm:$0xff]  ;;  %v1999_v25 = vld [vmem:[#allocation2 + $0x10] sm:$0xff] }
 0x247   : > { %v2013_v13 = vld [vmem:[#allocation2 + $0x80] sm:$0xff]  ;;  %v2015_v47 = vld [vmem:[#allocation2 + $0x90] sm:$0xff]  ;;  %v2002_v5 = vld [vmem:[#allocation2 + $0x28] sm:$0xff] }
 0x248   : > { %v2004_v46 = vld [vmem:[#allocation2 + $0x38] sm:$0xff]  ;;  %v2018_v45 = vld [vmem:[#allocation2 + $0xa8] sm:$0xff]  ;;  %v2001_v53 = vld [vmem:[#allocation2 + $0x20] sm:$0xff] }
 0x249   : > { %v2020_v0 = vld [vmem:[#allocation2 + $0xb8] sm:$0xff]  ;;  %v2003_v30 = vld [vmem:[#allocation2 + $0x30] sm:$0xff]  ;;  %v2017_v62 = vld [vmem:[#allocation2 + $0xa0] sm:$0xff] }
 0x24a   : > { %v2019_v8 = vld [vmem:[#allocation2 + $0xb0] sm:$0xff]  ;;  %v2006_v22 = vld [vmem:[#allocation2 + $0x48] sm:$0xff] }
 0x2ba   : > { %v2073_v43 = vpop.permute.xlu0 %2072 }
 0x2bb   : > { %v2078_v49 = vrot.slane %v2073_v43, %v2032_v61 }
 0x2bd   : > { %v2079_v32 = vmul.f32 %v2485_v20, %v2078_v49 }
 0x2be   : > { %v4863_v7 = vpop.permute.xlu0 %2035 }
 0x2bf   : > { %v2080_v21 = vadd.f32 %v2079_v32, %v1994_v15  ;;  %v2039_v40 = vmul.f32 %v4863_v7, %v1998_v17  ;;  %v2041_v4 = vmul.f32 %v4863_v7, %v2000_v28  ;;  %v2055_v33 = vmul.f32 %v4863_v7, %v2014_v55  ;;  %v2008_v17 = vld [vmem:[#allocation2 + $0x58] sm:$0xff]  ;;  %v2022_v32 = vld [vmem:[#allocation2 + $0xc8] sm:$0xff] }
 0x2c0   : > { %v2057_v29 = vmul.f32 %v4863_v7, %v2016_v41  ;;  %v2038_v19 = vmul.f32 %v4863_v7, %v1997_v60  ;;  %v2040_v38 = vmul.f32 %v4863_v7, %v1999_v25  ;;  %v2054_v44 = vmul.f32 %v4863_v7, %v2013_v13  ;;  %v2024_v60 = vld [vmem:[#allocation2 + $0xd8] sm:$0xff] }
 0x2c1   : > { %v4872_v35 = vrot.slane %v2080_v21, %v2032_v61  ;;  %v4874_v54 = vrot.slane %v2080_v21, %v2088_v37  ;;  %v2056_v12 = vmul.f32 %v4863_v7, %v2015_v47  ;;  %v2043_v57 = vmul.f32 %v4863_v7, %v2002_v5 }
 0x2c2   : > { %v2045_v63 = vmul.f32 %v4863_v7, %v2004_v46  ;;  %v2059_v10 = vmul.f32 %v4863_v7, %v2018_v45  ;;  %v2061_v58 = vmul.f32 %v4863_v7, %v2020_v0  ;;  %v2042_v42 = vmul.f32 %v4863_v7, %v2001_v53  ;;  %v2005_v46 = vld [vmem:[#allocation2 + $0x40] sm:$0xff] }
 0x2c3   : > { %v2093_v36 = vadd.f32 %v4874_v54, %v2039_v40  ;;  %v2095_v48 = vadd.f32 %v4874_v54, %v2041_v4  ;;  %v2109_v31 = vadd.f32 %v4874_v54, %v2055_v33  ;;  %v2111_v3 = vadd.f32 %v4874_v54, %v2057_v29 }
 0x2c4   : > { %v2092_v27 = vadd.f32 %v4872_v35, %v2038_v19  ;;  %v2094_v52 = vadd.f32 %v4872_v35, %v2040_v38  ;;  %v2108_v51 = vadd.f32 %v4872_v35, %v2054_v44  ;;  %v2110_v23 = vadd.f32 %v4872_v35, %v2056_v12  ;;  %v2007_v19 = vld [vmem:[#allocation2 + $0x50] sm:$0xff] }
 0x2c5   : > { %v2125_v9 = vmax.f32 %v2093_v36, 0.0  ;;  %v2127_v26 = vmax.f32 %v2095_v48, 0.0  ;;  %v2141_v50 = vmax.f32 %v2109_v31, 0.0  ;;  %v2143_v34 = vmax.f32 %v2111_v3, 0.0  ;;  %v2010_v31 = vld [vmem:[#allocation2 + $0x68] sm:$0xff] }
 0x2c6   : > { %v2124_v16 = vmax.f32 %v2092_v27, 0.0  ;;  %v2126_v56 = vmax.f32 %v2094_v52, 0.0  ;;  %v2140_v14 = vmax.f32 %v2108_v51, 0.0  ;;  %v2142_v18 = vmax.f32 %v2110_v23, 0.0  ;;  %v2012_v23 = vld [vmem:[#allocation2 + $0x78] sm:$0xff] }
 0x2c7   : > { %v2157_v1 = vpack.c.bf16 %v2127_v26, %v2125_v9  ;;  %v2165_v61 = vpack.c.bf16 %v2143_v34, %v2141_v50  ;;  %v2097_v2 = vadd.f32 %v4874_v54, %v2043_v57  ;;  %v2099_v59 = vadd.f32 %v4874_v54, %v2045_v63  ;;  %v2021_v63 = vld [vmem:[#allocation2 + $0xc0] sm:$0xff] }
 0x2c8   : > { %v2156_v6 = vpack.c.bf16 %v2126_v56, %v2124_v16  ;;  %v2164_v11 = vpack.c.bf16 %v2142_v18, %v2140_v14  ;;  %v2113_v39 = vadd.f32 %v4874_v54, %v2059_v10  ;;  %v2115_v24 = vadd.f32 %v4874_v54, %v2061_v58  ;;  %v2023_v10 = vld [vmem:[#allocation2 + $0xd0] sm:$0xff]  ;;  %v2026_v16 = vld [vmem:[#allocation2 + $0xe8] sm:$0xff]  ;;  %v2028_v56 = vld [vmem:[#allocation2 + $0xf8] sm:$0xff] }
 0x2c9   : > { %2337 = vmatprep.mubr.bf16.mxu0 %v2157_v1  ;;  %2369 = vmatprep.mubr.bf16.mxu1 %v2165_v61  ;;  %v2129_v20 = vmax.f32 %v2097_v2, 0.0  ;;  %v2131_v43 = vmax.f32 %v2099_v59, 0.0  ;;  %v2044_v15 = vmul.f32 %v4863_v7, %v2003_v30  ;;  %v2096_v49 = vadd.f32 %v4872_v35, %v2042_v42  ;;  %v2009_v61 = vld [vmem:[#allocation2 + $0x60] sm:$0xff] }
 0x2ca   : > { %2338 = vmatmul.mubr.bf16.vlgmr.msra.gmra.mrb[0].mxu0 %v2156_v6  ;;  %2370 = vmatmul.mubr.bf16.vlgmr.msra.gmra.mrb[0].mxu1 %v2164_v11  ;;  %v2145_v28 = vmax.f32 %v2113_v39, 0.0  ;;  %v2147_v55 = vmax.f32 %v2115_v24, 0.0  ;;  %v2058_v41 = vmul.f32 %v4863_v7, %v2017_v62  ;;  %v2060_v37 = vmul.f32 %v4863_v7, %v2019_v8 }
 0x2cb   : > { %v2159_v25 = vpack.c.bf16 %v2131_v43, %v2129_v20  ;;  %v2098_v13 = vadd.f32 %v4872_v35, %v2044_v15  ;;  %v2128_v47 = vmax.f32 %v2096_v49, 0.0  ;;  %v2047_v5 = vmul.f32 %v4863_v7, %v2006_v22  ;;  %v2011_v22 = vld [vmem:[#allocation2 + $0x70] sm:$0xff] }
 0x2cc   : > { %v2167_v21 = vpack.c.bf16 %v2147_v55, %v2145_v28  ;;  %v2112_v40 = vadd.f32 %v4872_v35, %v2058_v41  ;;  %v2114_v4 = vadd.f32 %v4872_v35, %v2060_v37  ;;  %v2049_v33 = vmul.f32 %v4863_v7, %v2008_v17  ;;  %v2025_v17 = vld [vmem:[#allocation2 + $0xe0] sm:$0xff]  ;;  %v2027_v28 = vld [vmem:[#allocation2 + $0xf0] sm:$0xff] }
 0x2cd   : > { %2345 = vmatprep.mubr.bf16.mxu0 %v2159_v25  ;;  %v2130_v45 = vmax.f32 %v2098_v13, 0.0  ;;  %v2101_v0 = vadd.f32 %v4874_v54, %v2047_v5  ;;  %v2063_v53 = vmul.f32 %v4863_v7, %v2022_v32  ;;  %v2065_v29 = vmul.f32 %v4863_v7, %v2024_v60 }
 0x2ce   : > { %2377 = vmatprep.mubr.bf16.mxu1 %v2167_v21  ;;  %v2144_v38 = vmax.f32 %v2112_v40, 0.0  ;;  %v2146_v44 = vmax.f32 %v2114_v4, 0.0  ;;  %v2103_v12 = vadd.f32 %v4874_v54, %v2049_v33  ;;  %v2046_v57 = vmul.f32 %v4863_v7, %v2005_v46 }
 0x2cf   : > { %v2158_v58 = vpack.c.bf16 %v2130_v45, %v2128_v47  ;;  %v2133_v42 = vmax.f32 %v2101_v0, 0.0  ;;  %v2117_v36 = vadd.f32 %v4874_v54, %v2063_v53  ;;  %v2119_v48 = vadd.f32 %v4874_v54, %v2065_v29 }
 0x2d0   : > { %v2166_v3 = vpack.c.bf16 %v2146_v44, %v2144_v38  ;;  %v2135_v27 = vmax.f32 %v2103_v12, 0.0  ;;  %v2048_v52 = vmul.f32 %v4863_v7, %v2007_v19  ;;  %v2100_v51 = vadd.f32 %v4872_v35, %v2046_v57 }
 0x2d1   : > { %v2149_v9 = vmax.f32 %v2117_v36, 0.0  ;;  %v2151_v26 = vmax.f32 %v2119_v48, 0.0  ;;  %v2062_v50 = vmul.f32 %v4863_v7, %v2021_v63  ;;  %v2064_v34 = vmul.f32 %v4863_v7, %v2023_v10  ;;  %v4936_v63 = vld [vmem:[%s5010_s5 + $0x2] ss:$0 sm:$0xff] }
 0x2d2   : > { %2346 = vmatmul.mubr.bf16.gmra.mrb[4].mxu0 %v2158_v58  ;;  %2378 = vmatmul.mubr.bf16.gmra.mrb[4].mxu1 %v2166_v3  ;;  %v2161_v14 = vpack.c.bf16 %v2135_v27, %v2133_v42  ;;  %v2102_v18 = vadd.f32 %v4872_v35, %v2048_v52  ;;  %v2132_v30 = vmax.f32 %v2100_v51, 0.0  ;;  %v2051_v1 = vmul.f32 %v4863_v7, %v2010_v31 }
 0x2d3   : > { %v2169_v2 = vpack.c.bf16 %v2151_v26, %v2149_v9  ;;  %v2116_v59 = vadd.f32 %v4872_v35, %v2062_v50  ;;  %v2118_v62 = vadd.f32 %v4872_v35, %v2064_v34  ;;  %v2053_v8 = vmul.f32 %v4863_v7, %v2012_v23 }
 0x2d4   : > { %2353 = vmatprep.mubr.bf16.mxu0 %v2161_v14  ;;  %v2134_v6 = vmax.f32 %v2102_v18, 0.0  ;;  %v2105_v11 = vadd.f32 %v4874_v54, %v2051_v1  ;;  %v2067_v39 = vmul.f32 %v4863_v7, %v2026_v16  ;;  %v2069_v24 = vmul.f32 %v4863_v7, %v2028_v56 }
 0x2d5   : > { %2385 = vmatprep.mubr.bf16.mxu1 %v2169_v2  ;;  %v2148_v20 = vmax.f32 %v2116_v59, 0.0  ;;  %v2150_v43 = vmax.f32 %v2118_v62, 0.0  ;;  %v2107_v15 = vadd.f32 %v4874_v54, %v2053_v8  ;;  %v2050_v49 = vmul.f32 %v4863_v7, %v2009_v61 }
 0x2d6   : > { %v2160_v55 = vpack.c.bf16 %v2134_v6, %v2132_v30  ;;  %v2137_v41 = vmax.f32 %v2105_v11, 0.0  ;;  %v2121_v37 = vadd.f32 %v4874_v54, %v2067_v39  ;;  %v2123_v32 = vadd.f32 %v4874_v54, %v2069_v24 }
 0x2d7   : > { %v2168_v60 = vpack.c.bf16 %v2150_v43, %v2148_v20  ;;  %v2139_v25 = vmax.f32 %v2107_v15, 0.0  ;;  %v2052_v13 = vmul.f32 %v4863_v7, %v2011_v22  ;;  %v2104_v47 = vadd.f32 %v4872_v35, %v2050_v49 }
 0x2d8   : > { %v2153_v5 = vmax.f32 %v2121_v37, 0.0  ;;  %v2155_v46 = vmax.f32 %v2123_v32, 0.0  ;;  %v2066_v21 = vmul.f32 %v4863_v7, %v2025_v17  ;;  %v2068_v40 = vmul.f32 %v4863_v7, %v2027_v28 }
 0x2d9   : > { %v2163_v4 = vpack.c.bf16 %v2139_v25, %v2137_v41  ;;  %v2106_v33 = vadd.f32 %v4872_v35, %v2052_v13  ;;  %v2136_v53 = vmax.f32 %v2104_v47, 0.0 }
 0x2da   : > { %2354 = vmatmul.mubr.bf16.gmra.mrb[8].mxu0 %v2160_v55  ;;  %2386 = vmatmul.mubr.bf16.gmra.mrb[8].mxu1 %v2168_v60  ;;  %v2171_v45 = vpack.c.bf16 %v2155_v46, %v2153_v5  ;;  %v2120_v54 = vadd.f32 %v4872_v35, %v2066_v21  ;;  %v2122_v0 = vadd.f32 %v4872_v35, %v2068_v40 }
 0x2db   : > { %2361 = vmatprep.mubr.bf16.mxu0 %v2163_v4  ;;  %v2138_v29 = vmax.f32 %v2106_v33, 0.0 }
 0x2dc   : > { %2393 = vmatprep.mubr.bf16.mxu1 %v2171_v45  ;;  %v2152_v19 = vmax.f32 %v2120_v54, 0.0  ;;  %v2154_v38 = vmax.f32 %v2122_v0, 0.0 }
 0x2dd   : > { %v2162_v44 = vpack.c.bf16 %v2138_v29, %v2136_v53 }
 0x2de   : > { %v2170_v12 = vpack.c.bf16 %v2154_v38, %v2152_v19 }
 0x2e2   : > { %2362 = vmatmul.mubr.bf16.gmra.mrb[12].mxu0 %v2162_v44  ;;  %2394 = vmatmul.mubr.bf16.gmra.mrb[12].mxu1 %v2170_v12 }
 0x39d   : > { %v2523_v7 = vpop.f32.mrb[0].mxu0  ;;  %v2547_v57 = vpop.f32.mrb[0].mxu1 }
 0x39e   : > { %v2524_v10 = vpop.f32.mrb[1].mxu0  ;;  %v2548_v58 = vpop.f32.mrb[1].mxu1 }
 0x39f   : > { %v2525_v35 = vadd.f32 %v2524_v10, %v2523_v7  ;;  %v2549_v42 = vadd.f32 %v2548_v58, %v2547_v57  ;;  %v2526_v36 = vpop.f32.mrb[2].mxu0  ;;  %v2550_v48 = vpop.f32.mrb[2].mxu1 }
 0x3a0   : > { %v2527_v31 = vpop.f32.mrb[3].mxu0  ;;  %v2551_v3 = vpop.f32.mrb[3].mxu1 }
 0x3a1   : > { %v2340_v27 = vadd.f32 %v2525_v35, %v4936_v63  ;;  %v2372_v52 = vadd.f32 %v2549_v42, %v4936_v63  ;;  %v2528_v51 = vadd.f32 %v2527_v31, %v2526_v36  ;;  %v2552_v23 = vadd.f32 %v2551_v3, %v2550_v48 }
 0x3a3   : > { %2402 = vst [vmem:[%s5011_s6] sm:$0xff] %v2340_v27  ;;  %2410 = vst [vmem:[%s5011_s6 + $0x40] sm:$0xff] %v2372_v52  ;;  %v2343_v9 = vadd.f32 %v2528_v51, %v4936_v63  ;;  %v2375_v26 = vadd.f32 %v2552_v23, %v4936_v63 }
 0x3a5   : > { %2403 = vst [vmem:[%s5011_s6 + $0x8] sm:$0xff] %v2343_v9  ;;  %2411 = vst [vmem:[%s5011_s6 + $0x48] sm:$0xff] %v2375_v26  ;;  %v2529_v50 = vpop.f32.mrb[4].mxu0  ;;  %v2553_v34 = vpop.f32.mrb[4].mxu1 }
 0x3a6   : > { %v2530_v16 = vpop.f32.mrb[5].mxu0  ;;  %v2554_v56 = vpop.f32.mrb[5].mxu1 }
 0x3a7   : > { %v2531_v14 = vadd.f32 %v2530_v16, %v2529_v50  ;;  %v2555_v18 = vadd.f32 %v2554_v56, %v2553_v34  ;;  %v2532_v30 = vpop.f32.mrb[6].mxu0  ;;  %v2556_v1 = vpop.f32.mrb[6].mxu1 }
 0x3a8   : > { %v2533_v61 = vpop.f32.mrb[7].mxu0  ;;  %v2557_v2 = vpop.f32.mrb[7].mxu1 }
 0x3a9   : > { %v2348_v59 = vadd.f32 %v2531_v14, %v4936_v63  ;;  %v2380_v62 = vadd.f32 %v2555_v18, %v4936_v63  ;;  %v2534_v8 = vadd.f32 %v2533_v61, %v2532_v30  ;;  %v2558_v6 = vadd.f32 %v2557_v2, %v2556_v1 }
 0x3ab   : > { %2404 = vst [vmem:[%s5011_s6 + $0x10] sm:$0xff] %v2348_v59  ;;  %2412 = vst [vmem:[%s5011_s6 + $0x50] sm:$0xff] %v2380_v62  ;;  %v2351_v11 = vadd.f32 %v2534_v8, %v4936_v63  ;;  %v2383_v39 = vadd.f32 %v2558_v6, %v4936_v63 }
 0x3ad   : > { %2405 = vst [vmem:[%s5011_s6 + $0x18] sm:$0xff] %v2351_v11  ;;  %2413 = vst [vmem:[%s5011_s6 + $0x58] sm:$0xff] %v2383_v39  ;;  %v2535_v24 = vpop.f32.mrb[8].mxu0  ;;  %v2559_v22 = vpop.f32.mrb[8].mxu1 }
 0x3ae   : > { %v2536_v20 = vpop.f32.mrb[9].mxu0  ;;  %v2560_v43 = vpop.f32.mrb[9].mxu1 }
 0x3af   : > { %v2537_v15 = vadd.f32 %v2536_v20, %v2535_v24  ;;  %v2561_v49 = vadd.f32 %v2560_v43, %v2559_v22  ;;  %v2538_v17 = vpop.f32.mrb[10].mxu0  ;;  %v2562_v28 = vpop.f32.mrb[10].mxu1 }
 0x3b0   : > { %v2539_v55 = vpop.f32.mrb[11].mxu0  ;;  %v2563_v41 = vpop.f32.mrb[11].mxu1 }
 0x3b1   : > { %v2356_v37 = vadd.f32 %v2537_v15, %v4936_v63  ;;  %v2388_v32 = vadd.f32 %v2561_v49, %v4936_v63  ;;  %v2540_v60 = vadd.f32 %v2539_v55, %v2538_v17  ;;  %v2564_v25 = vadd.f32 %v2563_v41, %v2562_v28 }
 0x3b3   : > { %2406 = vst [vmem:[%s5011_s6 + $0x20] sm:$0xff] %v2356_v37  ;;  %2414 = vst [vmem:[%s5011_s6 + $0x60] sm:$0xff] %v2388_v32  ;;  %v2359_v13 = vadd.f32 %v2540_v60, %v4936_v63  ;;  %v2391_v47 = vadd.f32 %v2564_v25, %v4936_v63 }
 0x3b5   : > { %2407 = vst [vmem:[%s5011_s6 + $0x28] sm:$0xff] %v2359_v13  ;;  %2415 = vst [vmem:[%s5011_s6 + $0x68] sm:$0xff] %v2391_v47  ;;  %v2541_v5 = vpop.f32.mrb[12].mxu0  ;;  %v2565_v46 = vpop.f32.mrb[12].mxu1 }
 0x3b6   : > { %v2542_v21 = vpop.f32.mrb[13].mxu0  ;;  %v2566_v40 = vpop.f32.mrb[13].mxu1 }
 0x3b7   : > { %v2543_v4 = vadd.f32 %v2542_v21, %v2541_v5  ;;  %v2567_v33 = vadd.f32 %v2566_v40, %v2565_v46  ;;  %v2544_v45 = vpop.f32.mrb[14].mxu0  ;;  %v2568_v54 = vpop.f32.mrb[14].mxu1 }
 0x3b8   : > { %v2545_v0 = vpop.f32.mrb[15].mxu0  ;;  %v2569_v53 = vpop.f32.mrb[15].mxu1 }
 0x3b9   : > { %v2364_v29 = vadd.f32 %v2543_v4, %v4936_v63  ;;  %v2396_v19 = vadd.f32 %v2567_v33, %v4936_v63  ;;  %v2546_v38 = vadd.f32 %v2545_v0, %v2544_v45  ;;  %v2570_v44 = vadd.f32 %v2569_v53, %v2568_v54 }
 0x3bb   : > { %2408 = vst [vmem:[%s5011_s6 + $0x30] sm:$0xff] %v2364_v29  ;;  %2416 = vst [vmem:[%s5011_s6 + $0x70] sm:$0xff] %v2396_v19  ;;  %v2367_v12 = vadd.f32 %v2546_v38, %v4936_v63  ;;  %v2399_v7 = vadd.f32 %v2570_v44, %v4936_v63 }
 0x3bd   : > { %2409 = vst [vmem:[%s5011_s6 + $0x38] sm:$0xff] %v2367_v12  ;;  %2417 = vst [vmem:[%s5011_s6 + $0x78] sm:$0xff] %v2399_v7 }
 0x3be PF: > { %s17_s21 = sadd.s32 1, %s2675_s21  }
 0x3bf   : > { %p14_p3 = scmp.ge.s32.totalorder %s17_s21, 6  }
 0x3c1   :  { %16 = sbr.rel (!%p14_p3) target bundleno = 1 (0x1), region = 85 }
 0x3c8   :  { %2429 = vsyncpa [#allocation6], 1 }
 0x3c9   :  { %2431 = vsyncpa [#allocation6 + $0x1], 1 }

</bundles_post_ra>
